<compile_context>
chip_gen: v7x
topology: tpu7x:2x2x1
jax: 0.10.0
libtpu: 0.0.40
codegen_flags: <defaults>
</compile_context>

<pallas_src>
import functools

import jax
import jax.numpy as jnp
from jax.experimental import pallas as pl
from jax.experimental.pallas import tpu as pltpu


def _nr_reciprocal(x):
    """EUP approximate reciprocal + one Newton-Raphson step (~f32 accuracy);
    keeps the divide off the VALU critical path."""
    r = pl.reciprocal(x, approx=True)
    return r * (2.0 - x * r)


def portfolio_kernel(x2d_ref,     # (T*B, DP)     time-major, batch/feature padded
                     wg_ref,      # (16, KR, H)   per-gate weight slabs:
                                  #   rows 0..3  : W_ih0^T   (first DP rows valid)
                                  #   rows 4..7  : W_hh0^T
                                  #   rows 8..11 : W_ih1^T
                                  #   rows 12..15: W_hh1^T   (gate order i,f,g,o)
                     tail_ref,    # (16+2H, H)    biases + allocation head weights
                     out_ref,     # (B, A)
                     xg0_ref,     # VMEM scratch (4, T*B, H): hoisted x-projection
                     *, T, B, DP, H, A):
    f32 = jnp.float32
    x_all = x2d_ref[...]                                   # (T*B, DP)

    # ---- Hoisted layer-0 input projection: one (T*B,DP)@(DP,H) dot per gate.
    # Per-gate results are lane-0 aligned and parked in VMEM scratch so they
    # don't fight for vregs across the unrolled recurrence.
    for k in range(4):
        xg0_ref[k] = (jnp.dot(x_all, wg_ref[k, :DP, :],
                              preferred_element_type=f32)
                      + tail_ref[k:k + 1, :])              # + (b_ih0 + b_hh0)_k

    # Hoisted layer-1 bias broadcasts (JAX does not CSE broadcasts).
    b1 = [jnp.broadcast_to(tail_ref[4 + k:5 + k, :], (B, H)) for k in range(4)]

    def cell(pre, c):
        # pre = [i, f, g, o] pre-activations, each (B, H) at lanes 0..H-1:
        # zero cross-lane realignment anywhere inside the cell.
        i = jax.nn.sigmoid(pre[0])
        f = jax.nn.sigmoid(pre[1])
        g = jnp.tanh(pre[2])
        o = jax.nn.sigmoid(pre[3])
        c_new = f * c + i * g
        return o * jnp.tanh(c_new), c_new

    h0 = jnp.zeros((B, H), f32)
    c0 = jnp.zeros((B, H), f32)
    h1 = jnp.zeros((B, H), f32)
    c1 = jnp.zeros((B, H), f32)

    # Fully unrolled time loop (T small & static).  Inter-layer dropout (p=0.2)
    # is a training-time op -> eval-mode no-op.
    # TODO(synk): switch to lax.fori_loop(..., unroll=4..8) if T grows beyond ~32.
    for t in range(T):
        r = t * B
        # Layer 0: four independent per-gate recurrent dots (un-fused, so this
        # step only depends on h0(t-1), not on the previous step's layer 1).
        pre0 = [xg0_ref[k, r:r + B, :]
                + jnp.dot(h0, wg_ref[4 + k, :H, :], preferred_element_type=f32)
                for k in range(4)]
        h0, c0 = cell(pre0, c0)

        # Layer 1: recurrent dots use the old h1 (ready early); only the
        # inter-layer dots on the fresh h0 sit on the dependent chain.
        pre1 = [b1[k]
                + jnp.dot(h1, wg_ref[12 + k, :H, :], preferred_element_type=f32)
                + jnp.dot(h0, wg_ref[8 + k, :H, :], preferred_element_type=f32)
                for k in range(4)]
        h1, c1 = cell(pre1, c1)

    # ---- Allocation head: Linear -> ReLU -> Linear -> Softmax -> MinMaxScaler.
    wa1 = tail_ref[8:8 + H, :]                    # (H, H)
    ba1 = tail_ref[8 + H:9 + H, :]                # (1, H)
    ba2 = tail_ref[9 + H:10 + H, :]               # (1, H)  lanes A.. are zero
    wa2 = tail_ref[16 + H:16 + 2 * H, :]          # (H, H)  cols  A.. are zero

    z = jnp.maximum(jnp.dot(h1, wa1, preferred_element_type=f32) + ba1, 0.0)
    logits = (jnp.dot(z, wa2, preferred_element_type=f32) + ba2)[:, :A]

    m = jnp.max(logits, axis=-1, keepdims=True)
    e = jnp.exp(logits - m)
    p = e * _nr_reciprocal(jnp.sum(e, axis=-1, keepdims=True))

    # MinMaxScaler: clamp then renormalize (matches the PyTorch module).
    p = jnp.clip(p, 0.05, 0.4)
    out_ref[...] = p * _nr_reciprocal(jnp.sum(p, axis=-1, keepdims=True))


def init_params(key, input_dim, hidden_dim, num_assets):
    """PyTorch-style uniform(-1/sqrt(H), 1/sqrt(H)) init, deterministic."""
    H = hidden_dim
    k = 1.0 / jnp.sqrt(jnp.float32(H))
    keys = jax.random.split(key, 12)
    u = lambda kk, shape: jax.random.uniform(kk, shape, jnp.float32, -k, k)
    return {
        # LSTM layer 0
        "w_ih0": u(keys[0], (4 * H, input_dim)),
        "w_hh0": u(keys[1], (4 * H, H)),
        "b_ih0": u(keys[2], (4 * H,)),
        "b_hh0": u(keys[3], (4 * H,)),
        # LSTM layer 1
        "w_ih1": u(keys[4], (4 * H, H)),
        "w_hh1": u(keys[5], (4 * H, H)),
        "b_ih1": u(keys[6], (4 * H,)),
        "b_hh1": u(keys[7], (4 * H,)),
        # allocation head
        "wa1": u(keys[8], (H, H)),
        "ba1": u(keys[9], (H,)),
        "wa2": u(keys[10], (num_assets, H)),
        "ba2": u(keys[11], (num_assets,)),
    }


def prepare_params(params, input_dim):
    """One-time weight prep (outside the per-call path): per-gate split,
    transposes for row-major activations@weights, fused bias pairs, packing
    into two sublane/lane-aligned slabs (cuts input DMAs from 10 to 3)."""
    H = params["w_hh0"].shape[1]
    D = input_dim
    A = params["wa2"].shape[0]
    DP = ((D + 7) // 8) * 8            # pad the x-contraction dim to sublane width
    KR = max(DP, H)

    def gate_slabs(w):                 # (4H, in) -> 4 x (in, H), order [i,f,g,o]
        return [w[k * H:(k + 1) * H, :].T for k in range(4)]

    wg = jnp.zeros((16, KR, H), jnp.float32)
    mats = [(gate_slabs(params["w_ih0"]), D),
            (gate_slabs(params["w_hh0"]), H),
            (gate_slabs(params["w_ih1"]), H),
            (gate_slabs(params["w_hh1"]), H)]
    for m, (slabs, rows) in enumerate(mats):
        for k in range(4):
            wg = wg.at[4 * m + k, :rows, :].set(slabs[k])

    b0 = (params["b_ih0"] + params["b_hh0"]).reshape(4, H)
    b1 = (params["b_ih1"] + params["b_hh1"]).reshape(4, H)

    tail = jnp.zeros((16 + 2 * H, H), jnp.float32)
    tail = tail.at[0:4].set(b0)                              # layer-0 bias / gate
    tail = tail.at[4:8].set(b1)                              # layer-1 bias / gate
    tail = tail.at[8:8 + H].set(params["wa1"].T)             # head Linear 1
    tail = tail.at[8 + H].set(params["ba1"])
    tail = tail.at[9 + H, :A].set(params["ba2"])
    tail = tail.at[16 + H:16 + 2 * H, :A].set(params["wa2"].T)  # head Linear 2
    return wg, tail


@functools.partial(jax.jit, static_argnames=("num_assets",))
def hybrid_portfolio_forward(x, wg, tail, *, num_assets):
    """x: (B, T, D) float32 (batch_first, like the PyTorch module)."""
    B, T, D = x.shape
    H = wg.shape[-1]
    A = num_assets
    B_pad = max(8, ((B + 7) // 8) * 8)          # f32 sublane width
    DP = ((D + 7) // 8) * 8

    # Time-major, batch-padded, feature-padded, batch-flattened input.
    x_tm = jnp.transpose(x, (1, 0, 2)).astype(jnp.float32)          # (T, B, D)
    x_tm = jnp.pad(x_tm, ((0, 0), (0, B_pad - B), (0, DP - D)))     # (T, Bp, DP)
    x2d = x_tm.reshape(T * B_pad, DP)

    kernel = functools.partial(portfolio_kernel, T=T, B=B_pad, DP=DP, H=H, A=A)
    vmem = pl.BlockSpec(memory_space=pltpu.MemorySpace.VMEM)

    # Everything is KB-scale -> whole-array VMEM residency, grid-less call.
    # Scale-up notes (shape-conditional, no effect at these sizes):
    #   * production batch: add a batch grid + dimension_semantics=("parallel",)
    #     so v7x's second TensorCore is used.
    #   * large T*B*H: tile the hoisted x-projection over T ("arbitrary" axis or
    #     emit_pipeline) to respect v7x's 64 MiB VMEM, and feed the MXU bf16
    #     operands (keep cell elementwise math / transcendentals in f32).
    out = pl.pallas_call(
        kernel,
        out_shape=jax.ShapeDtypeStruct((B_pad, A), jnp.float32),
        in_specs=[vmem, vmem, vmem],
        out_specs=vmem,
        scratch_shapes=[pltpu.VMEM((4, T * B_pad, H), jnp.float32)],
    )(x2d, wg, tail)
    return out[:B]


def reference_forward(x, params):
    """Pure-JAX reference mirroring PyTorch semantics (eval mode)."""
    B, T, D = x.shape
    H = params["w_hh0"].shape[1]

    def cell(x_t, h, c, w_ih, w_hh, b_ih, b_hh):
        gates = x_t @ w_ih.T + h @ w_hh.T + b_ih + b_hh
        i, f, g, o = jnp.split(gates, 4, axis=-1)
        c_new = jax.nn.sigmoid(f) * c + jax.nn.sigmoid(i) * jnp.tanh(g)
        h_new = jax.nn.sigmoid(o) * jnp.tanh(c_new)
        return h_new, c_new

    h0 = c0 = h1 = c1 = jnp.zeros((B, H), jnp.float32)
    for t in range(T):
        h0, c0 = cell(x[:, t, :], h0, c0, params["w_ih0"], params["w_hh0"],
                      params["b_ih0"], params["b_hh0"])
        h1, c1 = cell(h0, h1, c1, params["w_ih1"], params["w_hh1"],
                      params["b_ih1"], params["b_hh1"])

    z = jax.nn.relu(h1 @ params["wa1"].T + params["ba1"])
    logits = z @ params["wa2"].T + params["ba2"]
    p = jax.nn.softmax(logits, axis=-1)
    p = jnp.clip(p, 0.05, 0.4)
    return p / jnp.sum(p, axis=-1, keepdims=True)


if __name__ == "__main__":
    # Small shapes: batch=2, seq=8, input_dim=4, hidden=32, assets=5
    B, T, D, H, A = 2, 8, 4, 32, 5

    key = jax.random.PRNGKey(0)
    k_x, k_p = jax.random.split(key)
    x = jax.random.normal(k_x, (B, T, D), jnp.float32)
    params = init_params(k_p, D, H, A)

    wg, tail = prepare_params(params, D)     # one-time prep, outside per-call path

    out = hybrid_portfolio_forward(x, wg, tail, num_assets=A)
    out = jax.block_until_ready(out)

    ref = reference_forward(x, params)
    assert out.shape == (B, A)
    assert jnp.allclose(out, ref, atol=1e-4, rtol=1e-4), (out, ref)
    # allocations sum to 1
    assert jnp.allclose(jnp.sum(out, axis=-1), 1.0, atol=1e-4)

    print("KERNEL_OK")
</pallas_src>

<mosaic_0001>
module attributes {stable_mosaic.version = 11 : i64} {
  func.func @portfolio_kernel(%arg0: memref<64x8xf32, #tpu.memory_space<vmem>>, %arg1: memref<16x32x32xf32, #tpu.memory_space<vmem>>, %arg2: memref<80x32xf32, #tpu.memory_space<vmem>>, %arg3: memref<8x5xf32, #tpu.memory_space<vmem>>, %arg4: memref<4x64x32xf32, #tpu.memory_space<vmem>>) attributes {dimension_semantics = [], scalar_prefetch = 0 : i64, scratch_operands = 1 : i64, tpu.core_type = #tpu.core_type<tc>} {
    %c0 = arith.constant 0 : index
    %c0_0 = arith.constant 0 : index
    %0 = vector.load %arg0[%c0, %c0_0] : memref<64x8xf32, #tpu.memory_space<vmem>>, vector<64x8xf32>
    %c0_1 = arith.constant 0 : index
    %c0_2 = arith.constant 0 : index
    %c0_3 = arith.constant 0 : index
    %1 = vector.load %arg1[%c0_1, %c0_2, %c0_3] : memref<16x32x32xf32, #tpu.memory_space<vmem>>, vector<1x8x32xf32>
    %2 = vector.shape_cast %1 : vector<1x8x32xf32> to vector<8x32xf32>
    %cst = arith.constant dense<0.000000e+00> : vector<64x32xf32>
    %3 = tpu.matmul %0, %2, %cst {dimension_numbers = #tpu.dot_dimension_numbers<[1], [0], [0], [1], [0, 0, 1, 1], [], []>} : vector<64x8xf32>, vector<8x32xf32>, vector<64x32xf32> -> vector<64x32xf32>
    %c0_4 = arith.constant 0 : index
    %c0_5 = arith.constant 0 : index
    %4 = vector.load %arg2[%c0_4, %c0_5] : memref<80x32xf32, #tpu.memory_space<vmem>>, vector<1x32xf32>
    %5 = vector.broadcast %4 : vector<1x32xf32> to vector<64x32xf32>
    %6 = arith.addf %3, %5 : vector<64x32xf32>
    %c0_6 = arith.constant 0 : index
    %c0_7 = arith.constant 0 : index
    %c0_8 = arith.constant 0 : index
    %7 = vector.load %arg4[%c0_6, %c0_7, %c0_8] : memref<4x64x32xf32, #tpu.memory_space<vmem>>, vector<1x64x32xf32>
    %8 = vector.shape_cast %7 : vector<1x64x32xf32> to vector<64x32xf32>
    %9 = vector.shape_cast %6 : vector<64x32xf32> to vector<1x64x32xf32>
    tpu.vector_store %arg4[%c0_6, %c0_7, %c0_8], %9 {strides = array<i32>} : memref<4x64x32xf32, #tpu.memory_space<vmem>>, vector<1x64x32xf32>,
    %c1 = arith.constant 1 : index
    %c0_9 = arith.constant 0 : index
    %c0_10 = arith.constant 0 : index
    %10 = vector.load %arg1[%c1, %c0_9, %c0_10] : memref<16x32x32xf32, #tpu.memory_space<vmem>>, vector<1x8x32xf32>
    %11 = vector.shape_cast %10 : vector<1x8x32xf32> to vector<8x32xf32>
    %cst_11 = arith.constant dense<0.000000e+00> : vector<64x32xf32>
    %12 = tpu.matmul %0, %11, %cst_11 {dimension_numbers = #tpu.dot_dimension_numbers<[1], [0], [0], [1], [0, 0, 1, 1], [], []>} : vector<64x8xf32>, vector<8x32xf32>, vector<64x32xf32> -> vector<64x32xf32>
    %c1_12 = arith.constant 1 : index
    %c0_13 = arith.constant 0 : index
    %13 = vector.load %arg2[%c1_12, %c0_13] : memref<80x32xf32, #tpu.memory_space<vmem>>, vector<1x32xf32>
    %14 = vector.broadcast %13 : vector<1x32xf32> to vector<64x32xf32>
    %15 = arith.addf %12, %14 : vector<64x32xf32>
    %c1_14 = arith.constant 1 : index
    %c0_15 = arith.constant 0 : index
    %c0_16 = arith.constant 0 : index
    %16 = vector.load %arg4[%c1_14, %c0_15, %c0_16] : memref<4x64x32xf32, #tpu.memory_space<vmem>>, vector<1x64x32xf32>
    %17 = vector.shape_cast %16 : vector<1x64x32xf32> to vector<64x32xf32>
    %18 = vector.shape_cast %15 : vector<64x32xf32> to vector<1x64x32xf32>
    tpu.vector_store %arg4[%c1_14, %c0_15, %c0_16], %18 {strides = array<i32>} : memref<4x64x32xf32, #tpu.memory_space<vmem>>, vector<1x64x32xf32>,
    %c2 = arith.constant 2 : index
    %c0_17 = arith.constant 0 : index
    %c0_18 = arith.constant 0 : index
    %19 = vector.load %arg1[%c2, %c0_17, %c0_18] : memref<16x32x32xf32, #tpu.memory_space<vmem>>, vector<1x8x32xf32>
    %20 = vector.shape_cast %19 : vector<1x8x32xf32> to vector<8x32xf32>
    %cst_19 = arith.constant dense<0.000000e+00> : vector<64x32xf32>
    %21 = tpu.matmul %0, %20, %cst_19 {dimension_numbers = #tpu.dot_dimension_numbers<[1], [0], [0], [1], [0, 0, 1, 1], [], []>} : vector<64x8xf32>, vector<8x32xf32>, vector<64x32xf32> -> vector<64x32xf32>
    %c2_20 = arith.constant 2 : index
    %c0_21 = arith.constant 0 : index
    %22 = vector.load %arg2[%c2_20, %c0_21] : memref<80x32xf32, #tpu.memory_space<vmem>>, vector<1x32xf32>
    %23 = vector.broadcast %22 : vector<1x32xf32> to vector<64x32xf32>
    %24 = arith.addf %21, %23 : vector<64x32xf32>
    %c2_22 = arith.constant 2 : index
    %c0_23 = arith.constant 0 : index
    %c0_24 = arith.constant 0 : index
    %25 = vector.load %arg4[%c2_22, %c0_23, %c0_24] : memref<4x64x32xf32, #tpu.memory_space<vmem>>, vector<1x64x32xf32>
    %26 = vector.shape_cast %25 : vector<1x64x32xf32> to vector<64x32xf32>
    %27 = vector.shape_cast %24 : vector<64x32xf32> to vector<1x64x32xf32>
    tpu.vector_store %arg4[%c2_22, %c0_23, %c0_24], %27 {strides = array<i32>} : memref<4x64x32xf32, #tpu.memory_space<vmem>>, vector<1x64x32xf32>,
    %c3 = arith.constant 3 : index
    %c0_25 = arith.constant 0 : index
    %c0_26 = arith.constant 0 : index
    %28 = vector.load %arg1[%c3, %c0_25, %c0_26] : memref<16x32x32xf32, #tpu.memory_space<vmem>>, vector<1x8x32xf32>
    %29 = vector.shape_cast %28 : vector<1x8x32xf32> to vector<8x32xf32>
    %cst_27 = arith.constant dense<0.000000e+00> : vector<64x32xf32>
    %30 = tpu.matmul %0, %29, %cst_27 {dimension_numbers = #tpu.dot_dimension_numbers<[1], [0], [0], [1], [0, 0, 1, 1], [], []>} : vector<64x8xf32>, vector<8x32xf32>, vector<64x32xf32> -> vector<64x32xf32>
    %c3_28 = arith.constant 3 : index
    %c0_29 = arith.constant 0 : index
    %31 = vector.load %arg2[%c3_28, %c0_29] : memref<80x32xf32, #tpu.memory_space<vmem>>, vector<1x32xf32>
    %32 = vector.broadcast %31 : vector<1x32xf32> to vector<64x32xf32>
    %33 = arith.addf %30, %32 : vector<64x32xf32>
    %c3_30 = arith.constant 3 : index
    %c0_31 = arith.constant 0 : index
    %c0_32 = arith.constant 0 : index
    %34 = vector.load %arg4[%c3_30, %c0_31, %c0_32] : memref<4x64x32xf32, #tpu.memory_space<vmem>>, vector<1x64x32xf32>
    %35 = vector.shape_cast %34 : vector<1x64x32xf32> to vector<64x32xf32>
    %36 = vector.shape_cast %33 : vector<64x32xf32> to vector<1x64x32xf32>
    tpu.vector_store %arg4[%c3_30, %c0_31, %c0_32], %36 {strides = array<i32>} : memref<4x64x32xf32, #tpu.memory_space<vmem>>, vector<1x64x32xf32>,
    %c4 = arith.constant 4 : index
    %c0_33 = arith.constant 0 : index
    %37 = vector.load %arg2[%c4, %c0_33] : memref<80x32xf32, #tpu.memory_space<vmem>>, vector<1x32xf32>
    %38 = vector.shape_cast %37 : vector<1x32xf32> to vector<1x32xf32>
    %39 = vector.broadcast %38 : vector<1x32xf32> to vector<8x32xf32>
    %c5 = arith.constant 5 : index
    %c0_34 = arith.constant 0 : index
    %40 = vector.load %arg2[%c5, %c0_34] : memref<80x32xf32, #tpu.memory_space<vmem>>, vector<1x32xf32>
    %41 = vector.shape_cast %40 : vector<1x32xf32> to vector<1x32xf32>
    %42 = vector.broadcast %41 : vector<1x32xf32> to vector<8x32xf32>
    %c6 = arith.constant 6 : index
    %c0_35 = arith.constant 0 : index
    %43 = vector.load %arg2[%c6, %c0_35] : memref<80x32xf32, #tpu.memory_space<vmem>>, vector<1x32xf32>
    %44 = vector.shape_cast %43 : vector<1x32xf32> to vector<1x32xf32>
    %45 = vector.broadcast %44 : vector<1x32xf32> to vector<8x32xf32>
    %c7 = arith.constant 7 : index
    %c0_36 = arith.constant 0 : index
    %46 = vector.load %arg2[%c7, %c0_36] : memref<80x32xf32, #tpu.memory_space<vmem>>, vector<1x32xf32>
    %47 = vector.shape_cast %46 : vector<1x32xf32> to vector<1x32xf32>
    %48 = vector.broadcast %47 : vector<1x32xf32> to vector<8x32xf32>
    %cst_37 = arith.constant 0.000000e+00 : f32
    %49 = vector.broadcast %cst_37 : f32 to vector<8x32xf32>
    %cst_38 = arith.constant 0.000000e+00 : f32
    %50 = vector.broadcast %cst_38 : f32 to vector<8x32xf32>
    %cst_39 = arith.constant 0.000000e+00 : f32
    %51 = vector.broadcast %cst_39 : f32 to vector<8x32xf32>
    %cst_40 = arith.constant 0.000000e+00 : f32
    %52 = vector.broadcast %cst_40 : f32 to vector<8x32xf32>
    %c0_41 = arith.constant 0 : index
    %c0_42 = arith.constant 0 : index
    %c0_43 = arith.constant 0 : index
    %53 = vector.load %arg4[%c0_41, %c0_42, %c0_43] : memref<4x64x32xf32, #tpu.memory_space<vmem>>, vector<1x8x32xf32>
    %54 = vector.shape_cast %53 : vector<1x8x32xf32> to vector<8x32xf32>
    %c4_44 = arith.constant 4 : index
    %c0_45 = arith.constant 0 : index
    %c0_46 = arith.constant 0 : index
    %55 = vector.load %arg1[%c4_44, %c0_45, %c0_46] : memref<16x32x32xf32, #tpu.memory_space<vmem>>, vector<1x32x32xf32>
    %56 = vector.shape_cast %55 : vector<1x32x32xf32> to vector<32x32xf32>
    %cst_47 = arith.constant dense<0.000000e+00> : vector<8x32xf32>
    %57 = tpu.matmul %49, %56, %cst_47 {dimension_numbers = #tpu.dot_dimension_numbers<[1], [0], [0], [1], [0, 0, 1, 1], [], []>} : vector<8x32xf32>, vector<32x32xf32>, vector<8x32xf32> -> vector<8x32xf32>
    %58 = arith.addf %54, %57 : vector<8x32xf32>
    %c1_48 = arith.constant 1 : index
    %c0_49 = arith.constant 0 : index
    %c0_50 = arith.constant 0 : index
    %59 = vector.load %arg4[%c1_48, %c0_49, %c0_50] : memref<4x64x32xf32, #tpu.memory_space<vmem>>, vector<1x8x32xf32>
    %60 = vector.shape_cast %59 : vector<1x8x32xf32> to vector<8x32xf32>
    %c5_51 = arith.constant 5 : index
    %c0_52 = arith.constant 0 : index
    %c0_53 = arith.constant 0 : index
    %61 = vector.load %arg1[%c5_51, %c0_52, %c0_53] : memref<16x32x32xf32, #tpu.memory_space<vmem>>, vector<1x32x32xf32>
    %62 = vector.shape_cast %61 : vector<1x32x32xf32> to vector<32x32xf32>
    %cst_54 = arith.constant dense<0.000000e+00> : vector<8x32xf32>
    %63 = tpu.matmul %49, %62, %cst_54 {dimension_numbers = #tpu.dot_dimension_numbers<[1], [0], [0], [1], [0, 0, 1, 1], [], []>} : vector<8x32xf32>, vector<32x32xf32>, vector<8x32xf32> -> vector<8x32xf32>
    %64 = arith.addf %60, %63 : vector<8x32xf32>
    %c2_55 = arith.constant 2 : index
    %c0_56 = arith.constant 0 : index
    %c0_57 = arith.constant 0 : index
    %65 = vector.load %arg4[%c2_55, %c0_56, %c0_57] : memref<4x64x32xf32, #tpu.memory_space<vmem>>, vector<1x8x32xf32>
    %66 = vector.shape_cast %65 : vector<1x8x32xf32> to vector<8x32xf32>
    %c6_58 = arith.constant 6 : index
    %c0_59 = arith.constant 0 : index
    %c0_60 = arith.constant 0 : index
    %67 = vector.load %arg1[%c6_58, %c0_59, %c0_60] : memref<16x32x32xf32, #tpu.memory_space<vmem>>, vector<1x32x32xf32>
    %68 = vector.shape_cast %67 : vector<1x32x32xf32> to vector<32x32xf32>
    %cst_61 = arith.constant dense<0.000000e+00> : vector<8x32xf32>
    %69 = tpu.matmul %49, %68, %cst_61 {dimension_numbers = #tpu.dot_dimension_numbers<[1], [0], [0], [1], [0, 0, 1, 1], [], []>} : vector<8x32xf32>, vector<32x32xf32>, vector<8x32xf32> -> vector<8x32xf32>
    %70 = arith.addf %66, %69 : vector<8x32xf32>
    %c3_62 = arith.constant 3 : index
    %c0_63 = arith.constant 0 : index
    %c0_64 = arith.constant 0 : index
    %71 = vector.load %arg4[%c3_62, %c0_63, %c0_64] : memref<4x64x32xf32, #tpu.memory_space<vmem>>, vector<1x8x32xf32>
    %72 = vector.shape_cast %71 : vector<1x8x32xf32> to vector<8x32xf32>
    %c7_65 = arith.constant 7 : index
    %c0_66 = arith.constant 0 : index
    %c0_67 = arith.constant 0 : index
    %73 = vector.load %arg1[%c7_65, %c0_66, %c0_67] : memref<16x32x32xf32, #tpu.memory_space<vmem>>, vector<1x32x32xf32>
    %74 = vector.shape_cast %73 : vector<1x32x32xf32> to vector<32x32xf32>
    %cst_68 = arith.constant dense<0.000000e+00> : vector<8x32xf32>
    %75 = tpu.matmul %49, %74, %cst_68 {dimension_numbers = #tpu.dot_dimension_numbers<[1], [0], [0], [1], [0, 0, 1, 1], [], []>} : vector<8x32xf32>, vector<32x32xf32>, vector<8x32xf32> -> vector<8x32xf32>
    %76 = arith.addf %72, %75 : vector<8x32xf32>
    %77 = arith.negf %58 : vector<8x32xf32>
    %78 = math.exp %77 : vector<8x32xf32>
    %cst_69 = arith.constant 1.000000e+00 : f32
    %79 = vector.broadcast %cst_69 : f32 to vector<8x32xf32>
    %80 = arith.addf %79, %78 : vector<8x32xf32>
    %81 = arith.divf %79, %80 : vector<8x32xf32>
    %82 = arith.negf %64 : vector<8x32xf32>
    %83 = math.exp %82 : vector<8x32xf32>
    %cst_70 = arith.constant 1.000000e+00 : f32
    %84 = vector.broadcast %cst_70 : f32 to vector<8x32xf32>
    %85 = arith.addf %84, %83 : vector<8x32xf32>
    %86 = arith.divf %84, %85 : vector<8x32xf32>
    %87 = math.tanh %70 : vector<8x32xf32>
    %88 = arith.negf %76 : vector<8x32xf32>
    %89 = math.exp %88 : vector<8x32xf32>
    %cst_71 = arith.constant 1.000000e+00 : f32
    %90 = vector.broadcast %cst_71 : f32 to vector<8x32xf32>
    %91 = arith.addf %90, %89 : vector<8x32xf32>
    %92 = arith.divf %90, %91 : vector<8x32xf32>
    %93 = arith.mulf %86, %50 : vector<8x32xf32>
    %94 = arith.mulf %81, %87 : vector<8x32xf32>
    %95 = arith.addf %93, %94 : vector<8x32xf32>
    %96 = math.tanh %95 : vector<8x32xf32>
    %97 = arith.mulf %92, %96 : vector<8x32xf32>
    %c12 = arith.constant 12 : index
    %c0_72 = arith.constant 0 : index
    %c0_73 = arith.constant 0 : index
    %98 = vector.load %arg1[%c12, %c0_72, %c0_73] : memref<16x32x32xf32, #tpu.memory_space<vmem>>, vector<1x32x32xf32>
    %99 = vector.shape_cast %98 : vector<1x32x32xf32> to vector<32x32xf32>
    %cst_74 = arith.constant dense<0.000000e+00> : vector<8x32xf32>
    %100 = tpu.matmul %51, %99, %cst_74 {dimension_numbers = #tpu.dot_dimension_numbers<[1], [0], [0], [1], [0, 0, 1, 1], [], []>} : vector<8x32xf32>, vector<32x32xf32>, vector<8x32xf32> -> vector<8x32xf32>
    %101 = arith.addf %39, %100 : vector<8x32xf32>
    %c8 = arith.constant 8 : index
    %c0_75 = arith.constant 0 : index
    %c0_76 = arith.constant 0 : index
    %102 = vector.load %arg1[%c8, %c0_75, %c0_76] : memref<16x32x32xf32, #tpu.memory_space<vmem>>, vector<1x32x32xf32>
    %103 = vector.shape_cast %102 : vector<1x32x32xf32> to vector<32x32xf32>
    %cst_77 = arith.constant dense<0.000000e+00> : vector<8x32xf32>
    %104 = tpu.matmul %97, %103, %cst_77 {dimension_numbers = #tpu.dot_dimension_numbers<[1], [0], [0], [1], [0, 0, 1, 1], [], []>} : vector<8x32xf32>, vector<32x32xf32>, vector<8x32xf32> -> vector<8x32xf32>
    %105 = arith.addf %101, %104 : vector<8x32xf32>
    %c13 = arith.constant 13 : index
    %c0_78 = arith.constant 0 : index
    %c0_79 = arith.constant 0 : index
    %106 = vector.load %arg1[%c13, %c0_78, %c0_79] : memref<16x32x32xf32, #tpu.memory_space<vmem>>, vector<1x32x32xf32>
    %107 = vector.shape_cast %106 : vector<1x32x32xf32> to vector<32x32xf32>
    %cst_80 = arith.constant dense<0.000000e+00> : vector<8x32xf32>
    %108 = tpu.matmul %51, %107, %cst_80 {dimension_numbers = #tpu.dot_dimension_numbers<[1], [0], [0], [1], [0, 0, 1, 1], [], []>} : vector<8x32xf32>, vector<32x32xf32>, vector<8x32xf32> -> vector<8x32xf32>
    %109 = arith.addf %42, %108 : vector<8x32xf32>
    %c9 = arith.constant 9 : index
    %c0_81 = arith.constant 0 : index
    %c0_82 = arith.constant 0 : index
    %110 = vector.load %arg1[%c9, %c0_81, %c0_82] : memref<16x32x32xf32, #tpu.memory_space<vmem>>, vector<1x32x32xf32>
    %111 = vector.shape_cast %110 : vector<1x32x32xf32> to vector<32x32xf32>
    %cst_83 = arith.constant dense<0.000000e+00> : vector<8x32xf32>
    %112 = tpu.matmul %97, %111, %cst_83 {dimension_numbers = #tpu.dot_dimension_numbers<[1], [0], [0], [1], [0, 0, 1, 1], [], []>} : vector<8x32xf32>, vector<32x32xf32>, vector<8x32xf32> -> vector<8x32xf32>
    %113 = arith.addf %109, %112 : vector<8x32xf32>
    %c14 = arith.constant 14 : index
    %c0_84 = arith.constant 0 : index
    %c0_85 = arith.constant 0 : index
    %114 = vector.load %arg1[%c14, %c0_84, %c0_85] : memref<16x32x32xf32, #tpu.memory_space<vmem>>, vector<1x32x32xf32>
    %115 = vector.shape_cast %114 : vector<1x32x32xf32> to vector<32x32xf32>
    %cst_86 = arith.constant dense<0.000000e+00> : vector<8x32xf32>
    %116 = tpu.matmul %51, %115, %cst_86 {dimension_numbers = #tpu.dot_dimension_numbers<[1], [0], [0], [1], [0, 0, 1, 1], [], []>} : vector<8x32xf32>, vector<32x32xf32>, vector<8x32xf32> -> vector<8x32xf32>
    %117 = arith.addf %45, %116 : vector<8x32xf32>
    %c10 = arith.constant 10 : index
    %c0_87 = arith.constant 0 : index
    %c0_88 = arith.constant 0 : index
    %118 = vector.load %arg1[%c10, %c0_87, %c0_88] : memref<16x32x32xf32, #tpu.memory_space<vmem>>, vector<1x32x32xf32>
    %119 = vector.shape_cast %118 : vector<1x32x32xf32> to vector<32x32xf32>
    %cst_89 = arith.constant dense<0.000000e+00> : vector<8x32xf32>
    %120 = tpu.matmul %97, %119, %cst_89 {dimension_numbers = #tpu.dot_dimension_numbers<[1], [0], [0], [1], [0, 0, 1, 1], [], []>} : vector<8x32xf32>, vector<32x32xf32>, vector<8x32xf32> -> vector<8x32xf32>
    %121 = arith.addf %117, %120 : vector<8x32xf32>
    %c15 = arith.constant 15 : index
    %c0_90 = arith.constant 0 : index
    %c0_91 = arith.constant 0 : index
    %122 = vector.load %arg1[%c15, %c0_90, %c0_91] : memref<16x32x32xf32, #tpu.memory_space<vmem>>, vector<1x32x32xf32>
    %123 = vector.shape_cast %122 : vector<1x32x32xf32> to vector<32x32xf32>
    %cst_92 = arith.constant dense<0.000000e+00> : vector<8x32xf32>
    %124 = tpu.matmul %51, %123, %cst_92 {dimension_numbers = #tpu.dot_dimension_numbers<[1], [0], [0], [1], [0, 0, 1, 1], [], []>} : vector<8x32xf32>, vector<32x32xf32>, vector<8x32xf32> -> vector<8x32xf32>
    %125 = arith.addf %48, %124 : vector<8x32xf32>
    %c11 = arith.constant 11 : index
    %c0_93 = arith.constant 0 : index
    %c0_94 = arith.constant 0 : index
    %126 = vector.load %arg1[%c11, %c0_93, %c0_94] : memref<16x32x32xf32, #tpu.memory_space<vmem>>, vector<1x32x32xf32>
    %127 = vector.shape_cast %126 : vector<1x32x32xf32> to vector<32x32xf32>
    %cst_95 = arith.constant dense<0.000000e+00> : vector<8x32xf32>
    %128 = tpu.matmul %97, %127, %cst_95 {dimension_numbers = #tpu.dot_dimension_numbers<[1], [0], [0], [1], [0, 0, 1, 1], [], []>} : vector<8x32xf32>, vector<32x32xf32>, vector<8x32xf32> -> vector<8x32xf32>
    %129 = arith.addf %125, %128 : vector<8x32xf32>
    %130 = arith.negf %105 : vector<8x32xf32>
    %131 = math.exp %130 : vector<8x32xf32>
    %cst_96 = arith.constant 1.000000e+00 : f32
    %132 = vector.broadcast %cst_96 : f32 to vector<8x32xf32>
    %133 = arith.addf %132, %131 : vector<8x32xf32>
    %134 = arith.divf %132, %133 : vector<8x32xf32>
    %135 = arith.negf %113 : vector<8x32xf32>
    %136 = math.exp %135 : vector<8x32xf32>
    %cst_97 = arith.constant 1.000000e+00 : f32
    %137 = vector.broadcast %cst_97 : f32 to vector<8x32xf32>
    %138 = arith.addf %137, %136 : vector<8x32xf32>
    %139 = arith.divf %137, %138 : vector<8x32xf32>
    %140 = math.tanh %121 : vector<8x32xf32>
    %141 = arith.negf %129 : vector<8x32xf32>
    %142 = math.exp %141 : vector<8x32xf32>
    %cst_98 = arith.constant 1.000000e+00 : f32
    %143 = vector.broadcast %cst_98 : f32 to vector<8x32xf32>
    %144 = arith.addf %143, %142 : vector<8x32xf32>
    %145 = arith.divf %143, %144 : vector<8x32xf32>
    %146 = arith.mulf %139, %52 : vector<8x32xf32>
    %147 = arith.mulf %134, %140 : vector<8x32xf32>
    %148 = arith.addf %146, %147 : vector<8x32xf32>
    %149 = math.tanh %148 : vector<8x32xf32>
    %150 = arith.mulf %145, %149 : vector<8x32xf32>
    %c0_99 = arith.constant 0 : index
    %c8_100 = arith.constant 8 : index
    %c0_101 = arith.constant 0 : index
    %151 = vector.load %arg4[%c0_99, %c8_100, %c0_101] : memref<4x64x32xf32, #tpu.memory_space<vmem>>, vector<1x8x32xf32>
    %152 = vector.shape_cast %151 : vector<1x8x32xf32> to vector<8x32xf32>
    %c4_102 = arith.constant 4 : index
    %c0_103 = arith.constant 0 : index
    %c0_104 = arith.constant 0 : index
    %153 = vector.load %arg1[%c4_102, %c0_103, %c0_104] : memref<16x32x32xf32, #tpu.memory_space<vmem>>, vector<1x32x32xf32>
    %154 = vector.shape_cast %153 : vector<1x32x32xf32> to vector<32x32xf32>
    %cst_105 = arith.constant dense<0.000000e+00> : vector<8x32xf32>
    %155 = tpu.matmul %97, %154, %cst_105 {dimension_numbers = #tpu.dot_dimension_numbers<[1], [0], [0], [1], [0, 0, 1, 1], [], []>} : vector<8x32xf32>, vector<32x32xf32>, vector<8x32xf32> -> vector<8x32xf32>
    %156 = arith.addf %152, %155 : vector<8x32xf32>
    %c1_106 = arith.constant 1 : index
    %c8_107 = arith.constant 8 : index
    %c0_108 = arith.constant 0 : index
    %157 = vector.load %arg4[%c1_106, %c8_107, %c0_108] : memref<4x64x32xf32, #tpu.memory_space<vmem>>, vector<1x8x32xf32>
    %158 = vector.shape_cast %157 : vector<1x8x32xf32> to vector<8x32xf32>
    %c5_109 = arith.constant 5 : index
    %c0_110 = arith.constant 0 : index
    %c0_111 = arith.constant 0 : index
    %159 = vector.load %arg1[%c5_109, %c0_110, %c0_111] : memref<16x32x32xf32, #tpu.memory_space<vmem>>, vector<1x32x32xf32>
    %160 = vector.shape_cast %159 : vector<1x32x32xf32> to vector<32x32xf32>
    %cst_112 = arith.constant dense<0.000000e+00> : vector<8x32xf32>
    %161 = tpu.matmul %97, %160, %cst_112 {dimension_numbers = #tpu.dot_dimension_numbers<[1], [0], [0], [1], [0, 0, 1, 1], [], []>} : vector<8x32xf32>, vector<32x32xf32>, vector<8x32xf32> -> vector<8x32xf32>
    %162 = arith.addf %158, %161 : vector<8x32xf32>
    %c2_113 = arith.constant 2 : index
    %c8_114 = arith.constant 8 : index
    %c0_115 = arith.constant 0 : index
    %163 = vector.load %arg4[%c2_113, %c8_114, %c0_115] : memref<4x64x32xf32, #tpu.memory_space<vmem>>, vector<1x8x32xf32>
    %164 = vector.shape_cast %163 : vector<1x8x32xf32> to vector<8x32xf32>
    %c6_116 = arith.constant 6 : index
    %c0_117 = arith.constant 0 : index
    %c0_118 = arith.constant 0 : index
    %165 = vector.load %arg1[%c6_116, %c0_117, %c0_118] : memref<16x32x32xf32, #tpu.memory_space<vmem>>, vector<1x32x32xf32>
    %166 = vector.shape_cast %165 : vector<1x32x32xf32> to vector<32x32xf32>
    %cst_119 = arith.constant dense<0.000000e+00> : vector<8x32xf32>
    %167 = tpu.matmul %97, %166, %cst_119 {dimension_numbers = #tpu.dot_dimension_numbers<[1], [0], [0], [1], [0, 0, 1, 1], [], []>} : vector<8x32xf32>, vector<32x32xf32>, vector<8x32xf32> -> vector<8x32xf32>
    %168 = arith.addf %164, %167 : vector<8x32xf32>
    %c3_120 = arith.constant 3 : index
    %c8_121 = arith.constant 8 : index
    %c0_122 = arith.constant 0 : index
    %169 = vector.load %arg4[%c3_120, %c8_121, %c0_122] : memref<4x64x32xf32, #tpu.memory_space<vmem>>, vector<1x8x32xf32>
    %170 = vector.shape_cast %169 : vector<1x8x32xf32> to vector<8x32xf32>
    %c7_123 = arith.constant 7 : index
    %c0_124 = arith.constant 0 : index
    %c0_125 = arith.constant 0 : index
    %171 = vector.load %arg1[%c7_123, %c0_124, %c0_125] : memref<16x32x32xf32, #tpu.memory_space<vmem>>, vector<1x32x32xf32>
    %172 = vector.shape_cast %171 : vector<1x32x32xf32> to vector<32x32xf32>
    %cst_126 = arith.constant dense<0.000000e+00> : vector<8x32xf32>
    %173 = tpu.matmul %97, %172, %cst_126 {dimension_numbers = #tpu.dot_dimension_numbers<[1], [0], [0], [1], [0, 0, 1, 1], [], []>} : vector<8x32xf32>, vector<32x32xf32>, vector<8x32xf32> -> vector<8x32xf32>
    %174 = arith.addf %170, %173 : vector<8x32xf32>
    %175 = arith.negf %156 : vector<8x32xf32>
    %176 = math.exp %175 : vector<8x32xf32>
    %cst_127 = arith.constant 1.000000e+00 : f32
    %177 = vector.broadcast %cst_127 : f32 to vector<8x32xf32>
    %178 = arith.addf %177, %176 : vector<8x32xf32>
    %179 = arith.divf %177, %178 : vector<8x32xf32>
    %180 = arith.negf %162 : vector<8x32xf32>
    %181 = math.exp %180 : vector<8x32xf32>
    %cst_128 = arith.constant 1.000000e+00 : f32
    %182 = vector.broadcast %cst_128 : f32 to vector<8x32xf32>
    %183 = arith.addf %182, %181 : vector<8x32xf32>
    %184 = arith.divf %182, %183 : vector<8x32xf32>
    %185 = math.tanh %168 : vector<8x32xf32>
    %186 = arith.negf %174 : vector<8x32xf32>
    %187 = math.exp %186 : vector<8x32xf32>
    %cst_129 = arith.constant 1.000000e+00 : f32
    %188 = vector.broadcast %cst_129 : f32 to vector<8x32xf32>
    %189 = arith.addf %188, %187 : vector<8x32xf32>
    %190 = arith.divf %188, %189 : vector<8x32xf32>
    %191 = arith.mulf %184, %95 : vector<8x32xf32>
    %192 = arith.mulf %179, %185 : vector<8x32xf32>
    %193 = arith.addf %191, %192 : vector<8x32xf32>
    %194 = math.tanh %193 : vector<8x32xf32>
    %195 = arith.mulf %190, %194 : vector<8x32xf32>
    %c12_130 = arith.constant 12 : index
    %c0_131 = arith.constant 0 : index
    %c0_132 = arith.constant 0 : index
    %196 = vector.load %arg1[%c12_130, %c0_131, %c0_132] : memref<16x32x32xf32, #tpu.memory_space<vmem>>, vector<1x32x32xf32>
    %197 = vector.shape_cast %196 : vector<1x32x32xf32> to vector<32x32xf32>
    %cst_133 = arith.constant dense<0.000000e+00> : vector<8x32xf32>
    %198 = tpu.matmul %150, %197, %cst_133 {dimension_numbers = #tpu.dot_dimension_numbers<[1], [0], [0], [1], [0, 0, 1, 1], [], []>} : vector<8x32xf32>, vector<32x32xf32>, vector<8x32xf32> -> vector<8x32xf32>
    %199 = arith.addf %39, %198 : vector<8x32xf32>
    %c8_134 = arith.constant 8 : index
    %c0_135 = arith.constant 0 : index
    %c0_136 = arith.constant 0 : index
    %200 = vector.load %arg1[%c8_134, %c0_135, %c0_136] : memref<16x32x32xf32, #tpu.memory_space<vmem>>, vector<1x32x32xf32>
    %201 = vector.shape_cast %200 : vector<1x32x32xf32> to vector<32x32xf32>
    %cst_137 = arith.constant dense<0.000000e+00> : vector<8x32xf32>
    %202 = tpu.matmul %195, %201, %cst_137 {dimension_numbers = #tpu.dot_dimension_numbers<[1], [0], [0], [1], [0, 0, 1, 1], [], []>} : vector<8x32xf32>, vector<32x32xf32>, vector<8x32xf32> -> vector<8x32xf32>
    %203 = arith.addf %199, %202 : vector<8x32xf32>
    %c13_138 = arith.constant 13 : index
    %c0_139 = arith.constant 0 : index
    %c0_140 = arith.constant 0 : index
    %204 = vector.load %arg1[%c13_138, %c0_139, %c0_140] : memref<16x32x32xf32, #tpu.memory_space<vmem>>, vector<1x32x32xf32>
    %205 = vector.shape_cast %204 : vector<1x32x32xf32> to vector<32x32xf32>
    %cst_141 = arith.constant dense<0.000000e+00> : vector<8x32xf32>
    %206 = tpu.matmul %150, %205, %cst_141 {dimension_numbers = #tpu.dot_dimension_numbers<[1], [0], [0], [1], [0, 0, 1, 1], [], []>} : vector<8x32xf32>, vector<32x32xf32>, vector<8x32xf32> -> vector<8x32xf32>
    %207 = arith.addf %42, %206 : vector<8x32xf32>
    %c9_142 = arith.constant 9 : index
    %c0_143 = arith.constant 0 : index
    %c0_144 = arith.constant 0 : index
    %208 = vector.load %arg1[%c9_142, %c0_143, %c0_144] : memref<16x32x32xf32, #tpu.memory_space<vmem>>, vector<1x32x32xf32>
    %209 = vector.shape_cast %208 : vector<1x32x32xf32> to vector<32x32xf32>
    %cst_145 = arith.constant dense<0.000000e+00> : vector<8x32xf32>
    %210 = tpu.matmul %195, %209, %cst_145 {dimension_numbers = #tpu.dot_dimension_numbers<[1], [0], [0], [1], [0, 0, 1, 1], [], []>} : vector<8x32xf32>, vector<32x32xf32>, vector<8x32xf32> -> vector<8x32xf32>
    %211 = arith.addf %207, %210 : vector<8x32xf32>
    %c14_146 = arith.constant 14 : index
    %c0_147 = arith.constant 0 : index
    %c0_148 = arith.constant 0 : index
    %212 = vector.load %arg1[%c14_146, %c0_147, %c0_148] : memref<16x32x32xf32, #tpu.memory_space<vmem>>, vector<1x32x32xf32>
    %213 = vector.shape_cast %212 : vector<1x32x32xf32> to vector<32x32xf32>
    %cst_149 = arith.constant dense<0.000000e+00> : vector<8x32xf32>
    %214 = tpu.matmul %150, %213, %cst_149 {dimension_numbers = #tpu.dot_dimension_numbers<[1], [0], [0], [1], [0, 0, 1, 1], [], []>} : vector<8x32xf32>, vector<32x32xf32>, vector<8x32xf32> -> vector<8x32xf32>
    %215 = arith.addf %45, %214 : vector<8x32xf32>
    %c10_150 = arith.constant 10 : index
    %c0_151 = arith.constant 0 : index
    %c0_152 = arith.constant 0 : index
    %216 = vector.load %arg1[%c10_150, %c0_151, %c0_152] : memref<16x32x32xf32, #tpu.memory_space<vmem>>, vector<1x32x32xf32>
    %217 = vector.shape_cast %216 : vector<1x32x32xf32> to vector<32x32xf32>
    %cst_153 = arith.constant dense<0.000000e+00> : vector<8x32xf32>
    %218 = tpu.matmul %195, %217, %cst_153 {dimension_numbers = #tpu.dot_dimension_numbers<[1], [0], [0], [1], [0, 0, 1, 1], [], []>} : vector<8x32xf32>, vector<32x32xf32>, vector<8x32xf32> -> vector<8x32xf32>
    %219 = arith.addf %215, %218 : vector<8x32xf32>
    %c15_154 = arith.constant 15 : index
    %c0_155 = arith.constant 0 : index
    %c0_156 = arith.constant 0 : index
    %220 = vector.load %arg1[%c15_154, %c0_155, %c0_156] : memref<16x32x32xf32, #tpu.memory_space<vmem>>, vector<1x32x32xf32>
    %221 = vector.shape_cast %220 : vector<1x32x32xf32> to vector<32x32xf32>
    %cst_157 = arith.constant dense<0.000000e+00> : vector<8x32xf32>
    %222 = tpu.matmul %150, %221, %cst_157 {dimension_numbers = #tpu.dot_dimension_numbers<[1], [0], [0], [1], [0, 0, 1, 1], [], []>} : vector<8x32xf32>, vector<32x32xf32>, vector<8x32xf32> -> vector<8x32xf32>
    %223 = arith.addf %48, %222 : vector<8x32xf32>
    %c11_158 = arith.constant 11 : index
    %c0_159 = arith.constant 0 : index
    %c0_160 = arith.constant 0 : index
    %224 = vector.load %arg1[%c11_158, %c0_159, %c0_160] : memref<16x32x32xf32, #tpu.memory_space<vmem>>, vector<1x32x32xf32>
    %225 = vector.shape_cast %224 : vector<1x32x32xf32> to vector<32x32xf32>
    %cst_161 = arith.constant dense<0.000000e+00> : vector<8x32xf32>
    %226 = tpu.matmul %195, %225, %cst_161 {dimension_numbers = #tpu.dot_dimension_numbers<[1], [0], [0], [1], [0, 0, 1, 1], [], []>} : vector<8x32xf32>, vector<32x32xf32>, vector<8x32xf32> -> vector<8x32xf32>
    %227 = arith.addf %223, %226 : vector<8x32xf32>
    %228 = arith.negf %203 : vector<8x32xf32>
    %229 = math.exp %228 : vector<8x32xf32>
    %cst_162 = arith.constant 1.000000e+00 : f32
    %230 = vector.broadcast %cst_162 : f32 to vector<8x32xf32>
    %231 = arith.addf %230, %229 : vector<8x32xf32>
    %232 = arith.divf %230, %231 : vector<8x32xf32>
    %233 = arith.negf %211 : vector<8x32xf32>
    %234 = math.exp %233 : vector<8x32xf32>
    %cst_163 = arith.constant 1.000000e+00 : f32
    %235 = vector.broadcast %cst_163 : f32 to vector<8x32xf32>
    %236 = arith.addf %235, %234 : vector<8x32xf32>
    %237 = arith.divf %235, %236 : vector<8x32xf32>
    %238 = math.tanh %219 : vector<8x32xf32>
    %239 = arith.negf %227 : vector<8x32xf32>
    %240 = math.exp %239 : vector<8x32xf32>
    %cst_164 = arith.constant 1.000000e+00 : f32
    %241 = vector.broadcast %cst_164 : f32 to vector<8x32xf32>
    %242 = arith.addf %241, %240 : vector<8x32xf32>
    %243 = arith.divf %241, %242 : vector<8x32xf32>
    %244 = arith.mulf %237, %148 : vector<8x32xf32>
    %245 = arith.mulf %232, %238 : vector<8x32xf32>
    %246 = arith.addf %244, %245 : vector<8x32xf32>
    %247 = math.tanh %246 : vector<8x32xf32>
    %248 = arith.mulf %243, %247 : vector<8x32xf32>
    %c0_165 = arith.constant 0 : index
    %c16 = arith.constant 16 : index
    %c0_166 = arith.constant 0 : index
    %249 = vector.load %arg4[%c0_165, %c16, %c0_166] : memref<4x64x32xf32, #tpu.memory_space<vmem>>, vector<1x8x32xf32>
    %250 = vector.shape_cast %249 : vector<1x8x32xf32> to vector<8x32xf32>
    %c4_167 = arith.constant 4 : index
    %c0_168 = arith.constant 0 : index
    %c0_169 = arith.constant 0 : index
    %251 = vector.load %arg1[%c4_167, %c0_168, %c0_169] : memref<16x32x32xf32, #tpu.memory_space<vmem>>, vector<1x32x32xf32>
    %252 = vector.shape_cast %251 : vector<1x32x32xf32> to vector<32x32xf32>
    %cst_170 = arith.constant dense<0.000000e+00> : vector<8x32xf32>
    %253 = tpu.matmul %195, %252, %cst_170 {dimension_numbers = #tpu.dot_dimension_numbers<[1], [0], [0], [1], [0, 0, 1, 1], [], []>} : vector<8x32xf32>, vector<32x32xf32>, vector<8x32xf32> -> vector<8x32xf32>
    %254 = arith.addf %250, %253 : vector<8x32xf32>
    %c1_171 = arith.constant 1 : index
    %c16_172 = arith.constant 16 : index
    %c0_173 = arith.constant 0 : index
    %255 = vector.load %arg4[%c1_171, %c16_172, %c0_173] : memref<4x64x32xf32, #tpu.memory_space<vmem>>, vector<1x8x32xf32>
    %256 = vector.shape_cast %255 : vector<1x8x32xf32> to vector<8x32xf32>
    %c5_174 = arith.constant 5 : index
    %c0_175 = arith.constant 0 : index
    %c0_176 = arith.constant 0 : index
    %257 = vector.load %arg1[%c5_174, %c0_175, %c0_176] : memref<16x32x32xf32, #tpu.memory_space<vmem>>, vector<1x32x32xf32>
    %258 = vector.shape_cast %257 : vector<1x32x32xf32> to vector<32x32xf32>
    %cst_177 = arith.constant dense<0.000000e+00> : vector<8x32xf32>
    %259 = tpu.matmul %195, %258, %cst_177 {dimension_numbers = #tpu.dot_dimension_numbers<[1], [0], [0], [1], [0, 0, 1, 1], [], []>} : vector<8x32xf32>, vector<32x32xf32>, vector<8x32xf32> -> vector<8x32xf32>
    %260 = arith.addf %256, %259 : vector<8x32xf32>
    %c2_178 = arith.constant 2 : index
    %c16_179 = arith.constant 16 : index
    %c0_180 = arith.constant 0 : index
    %261 = vector.load %arg4[%c2_178, %c16_179, %c0_180] : memref<4x64x32xf32, #tpu.memory_space<vmem>>, vector<1x8x32xf32>
    %262 = vector.shape_cast %261 : vector<1x8x32xf32> to vector<8x32xf32>
    %c6_181 = arith.constant 6 : index
    %c0_182 = arith.constant 0 : index
    %c0_183 = arith.constant 0 : index
    %263 = vector.load %arg1[%c6_181, %c0_182, %c0_183] : memref<16x32x32xf32, #tpu.memory_space<vmem>>, vector<1x32x32xf32>
    %264 = vector.shape_cast %263 : vector<1x32x32xf32> to vector<32x32xf32>
    %cst_184 = arith.constant dense<0.000000e+00> : vector<8x32xf32>
    %265 = tpu.matmul %195, %264, %cst_184 {dimension_numbers = #tpu.dot_dimension_numbers<[1], [0], [0], [1], [0, 0, 1, 1], [], []>} : vector<8x32xf32>, vector<32x32xf32>, vector<8x32xf32> -> vector<8x32xf32>
    %266 = arith.addf %262, %265 : vector<8x32xf32>
    %c3_185 = arith.constant 3 : index
    %c16_186 = arith.constant 16 : index
    %c0_187 = arith.constant 0 : index
    %267 = vector.load %arg4[%c3_185, %c16_186, %c0_187] : memref<4x64x32xf32, #tpu.memory_space<vmem>>, vector<1x8x32xf32>
    %268 = vector.shape_cast %267 : vector<1x8x32xf32> to vector<8x32xf32>
    %c7_188 = arith.constant 7 : index
    %c0_189 = arith.constant 0 : index
    %c0_190 = arith.constant 0 : index
    %269 = vector.load %arg1[%c7_188, %c0_189, %c0_190] : memref<16x32x32xf32, #tpu.memory_space<vmem>>, vector<1x32x32xf32>
    %270 = vector.shape_cast %269 : vector<1x32x32xf32> to vector<32x32xf32>
    %cst_191 = arith.constant dense<0.000000e+00> : vector<8x32xf32>
    %271 = tpu.matmul %195, %270, %cst_191 {dimension_numbers = #tpu.dot_dimension_numbers<[1], [0], [0], [1], [0, 0, 1, 1], [], []>} : vector<8x32xf32>, vector<32x32xf32>, vector<8x32xf32> -> vector<8x32xf32>
    %272 = arith.addf %268, %271 : vector<8x32xf32>
    %273 = arith.negf %254 : vector<8x32xf32>
    %274 = math.exp %273 : vector<8x32xf32>
    %cst_192 = arith.constant 1.000000e+00 : f32
    %275 = vector.broadcast %cst_192 : f32 to vector<8x32xf32>
    %276 = arith.addf %275, %274 : vector<8x32xf32>
    %277 = arith.divf %275, %276 : vector<8x32xf32>
    %278 = arith.negf %260 : vector<8x32xf32>
    %279 = math.exp %278 : vector<8x32xf32>
    %cst_193 = arith.constant 1.000000e+00 : f32
    %280 = vector.broadcast %cst_193 : f32 to vector<8x32xf32>
    %281 = arith.addf %280, %279 : vector<8x32xf32>
    %282 = arith.divf %280, %281 : vector<8x32xf32>
    %283 = math.tanh %266 : vector<8x32xf32>
    %284 = arith.negf %272 : vector<8x32xf32>
    %285 = math.exp %284 : vector<8x32xf32>
    %cst_194 = arith.constant 1.000000e+00 : f32
    %286 = vector.broadcast %cst_194 : f32 to vector<8x32xf32>
    %287 = arith.addf %286, %285 : vector<8x32xf32>
    %288 = arith.divf %286, %287 : vector<8x32xf32>
    %289 = arith.mulf %282, %193 : vector<8x32xf32>
    %290 = arith.mulf %277, %283 : vector<8x32xf32>
    %291 = arith.addf %289, %290 : vector<8x32xf32>
    %292 = math.tanh %291 : vector<8x32xf32>
    %293 = arith.mulf %288, %292 : vector<8x32xf32>
    %c12_195 = arith.constant 12 : index
    %c0_196 = arith.constant 0 : index
    %c0_197 = arith.constant 0 : index
    %294 = vector.load %arg1[%c12_195, %c0_196, %c0_197] : memref<16x32x32xf32, #tpu.memory_space<vmem>>, vector<1x32x32xf32>
    %295 = vector.shape_cast %294 : vector<1x32x32xf32> to vector<32x32xf32>
    %cst_198 = arith.constant dense<0.000000e+00> : vector<8x32xf32>
    %296 = tpu.matmul %248, %295, %cst_198 {dimension_numbers = #tpu.dot_dimension_numbers<[1], [0], [0], [1], [0, 0, 1, 1], [], []>} : vector<8x32xf32>, vector<32x32xf32>, vector<8x32xf32> -> vector<8x32xf32>
    %297 = arith.addf %39, %296 : vector<8x32xf32>
    %c8_199 = arith.constant 8 : index
    %c0_200 = arith.constant 0 : index
    %c0_201 = arith.constant 0 : index
    %298 = vector.load %arg1[%c8_199, %c0_200, %c0_201] : memref<16x32x32xf32, #tpu.memory_space<vmem>>, vector<1x32x32xf32>
    %299 = vector.shape_cast %298 : vector<1x32x32xf32> to vector<32x32xf32>
    %cst_202 = arith.constant dense<0.000000e+00> : vector<8x32xf32>
    %300 = tpu.matmul %293, %299, %cst_202 {dimension_numbers = #tpu.dot_dimension_numbers<[1], [0], [0], [1], [0, 0, 1, 1], [], []>} : vector<8x32xf32>, vector<32x32xf32>, vector<8x32xf32> -> vector<8x32xf32>
    %301 = arith.addf %297, %300 : vector<8x32xf32>
    %c13_203 = arith.constant 13 : index
    %c0_204 = arith.constant 0 : index
    %c0_205 = arith.constant 0 : index
    %302 = vector.load %arg1[%c13_203, %c0_204, %c0_205] : memref<16x32x32xf32, #tpu.memory_space<vmem>>, vector<1x32x32xf32>
    %303 = vector.shape_cast %302 : vector<1x32x32xf32> to vector<32x32xf32>
    %cst_206 = arith.constant dense<0.000000e+00> : vector<8x32xf32>
    %304 = tpu.matmul %248, %303, %cst_206 {dimension_numbers = #tpu.dot_dimension_numbers<[1], [0], [0], [1], [0, 0, 1, 1], [], []>} : vector<8x32xf32>, vector<32x32xf32>, vector<8x32xf32> -> vector<8x32xf32>
    %305 = arith.addf %42, %304 : vector<8x32xf32>
    %c9_207 = arith.constant 9 : index
    %c0_208 = arith.constant 0 : index
    %c0_209 = arith.constant 0 : index
    %306 = vector.load %arg1[%c9_207, %c0_208, %c0_209] : memref<16x32x32xf32, #tpu.memory_space<vmem>>, vector<1x32x32xf32>
    %307 = vector.shape_cast %306 : vector<1x32x32xf32> to vector<32x32xf32>
    %cst_210 = arith.constant dense<0.000000e+00> : vector<8x32xf32>
    %308 = tpu.matmul %293, %307, %cst_210 {dimension_numbers = #tpu.dot_dimension_numbers<[1], [0], [0], [1], [0, 0, 1, 1], [], []>} : vector<8x32xf32>, vector<32x32xf32>, vector<8x32xf32> -> vector<8x32xf32>
    %309 = arith.addf %305, %308 : vector<8x32xf32>
    %c14_211 = arith.constant 14 : index
    %c0_212 = arith.constant 0 : index
    %c0_213 = arith.constant 0 : index
    %310 = vector.load %arg1[%c14_211, %c0_212, %c0_213] : memref<16x32x32xf32, #tpu.memory_space<vmem>>, vector<1x32x32xf32>
    %311 = vector.shape_cast %310 : vector<1x32x32xf32> to vector<32x32xf32>
    %cst_214 = arith.constant dense<0.000000e+00> : vector<8x32xf32>
    %312 = tpu.matmul %248, %311, %cst_214 {dimension_numbers = #tpu.dot_dimension_numbers<[1], [0], [0], [1], [0, 0, 1, 1], [], []>} : vector<8x32xf32>, vector<32x32xf32>, vector<8x32xf32> -> vector<8x32xf32>
    %313 = arith.addf %45, %312 : vector<8x32xf32>
    %c10_215 = arith.constant 10 : index
    %c0_216 = arith.constant 0 : index
    %c0_217 = arith.constant 0 : index
    %314 = vector.load %arg1[%c10_215, %c0_216, %c0_217] : memref<16x32x32xf32, #tpu.memory_space<vmem>>, vector<1x32x32xf32>
    %315 = vector.shape_cast %314 : vector<1x32x32xf32> to vector<32x32xf32>
    %cst_218 = arith.constant dense<0.000000e+00> : vector<8x32xf32>
    %316 = tpu.matmul %293, %315, %cst_218 {dimension_numbers = #tpu.dot_dimension_numbers<[1], [0], [0], [1], [0, 0, 1, 1], [], []>} : vector<8x32xf32>, vector<32x32xf32>, vector<8x32xf32> -> vector<8x32xf32>
    %317 = arith.addf %313, %316 : vector<8x32xf32>
    %c15_219 = arith.constant 15 : index
    %c0_220 = arith.constant 0 : index
    %c0_221 = arith.constant 0 : index
    %318 = vector.load %arg1[%c15_219, %c0_220, %c0_221] : memref<16x32x32xf32, #tpu.memory_space<vmem>>, vector<1x32x32xf32>
    %319 = vector.shape_cast %318 : vector<1x32x32xf32> to vector<32x32xf32>
    %cst_222 = arith.constant dense<0.000000e+00> : vector<8x32xf32>
    %320 = tpu.matmul %248, %319, %cst_222 {dimension_numbers = #tpu.dot_dimension_numbers<[1], [0], [0], [1], [0, 0, 1, 1], [], []>} : vector<8x32xf32>, vector<32x32xf32>, vector<8x32xf32> -> vector<8x32xf32>
    %321 = arith.addf %48, %320 : vector<8x32xf32>
    %c11_223 = arith.constant 11 : index
    %c0_224 = arith.constant 0 : index
    %c0_225 = arith.constant 0 : index
    %322 = vector.load %arg1[%c11_223, %c0_224, %c0_225] : memref<16x32x32xf32, #tpu.memory_space<vmem>>, vector<1x32x32xf32>
    %323 = vector.shape_cast %322 : vector<1x32x32xf32> to vector<32x32xf32>
    %cst_226 = arith.constant dense<0.000000e+00> : vector<8x32xf32>
    %324 = tpu.matmul %293, %323, %cst_226 {dimension_numbers = #tpu.dot_dimension_numbers<[1], [0], [0], [1], [0, 0, 1, 1], [], []>} : vector<8x32xf32>, vector<32x32xf32>, vector<8x32xf32> -> vector<8x32xf32>
    %325 = arith.addf %321, %324 : vector<8x32xf32>
    %326 = arith.negf %301 : vector<8x32xf32>
    %327 = math.exp %326 : vector<8x32xf32>
    %cst_227 = arith.constant 1.000000e+00 : f32
    %328 = vector.broadcast %cst_227 : f32 to vector<8x32xf32>
    %329 = arith.addf %328, %327 : vector<8x32xf32>
    %330 = arith.divf %328, %329 : vector<8x32xf32>
    %331 = arith.negf %309 : vector<8x32xf32>
    %332 = math.exp %331 : vector<8x32xf32>
    %cst_228 = arith.constant 1.000000e+00 : f32
    %333 = vector.broadcast %cst_228 : f32 to vector<8x32xf32>
    %334 = arith.addf %333, %332 : vector<8x32xf32>
    %335 = arith.divf %333, %334 : vector<8x32xf32>
    %336 = math.tanh %317 : vector<8x32xf32>
    %337 = arith.negf %325 : vector<8x32xf32>
    %338 = math.exp %337 : vector<8x32xf32>
    %cst_229 = arith.constant 1.000000e+00 : f32
    %339 = vector.broadcast %cst_229 : f32 to vector<8x32xf32>
    %340 = arith.addf %339, %338 : vector<8x32xf32>
    %341 = arith.divf %339, %340 : vector<8x32xf32>
    %342 = arith.mulf %335, %246 : vector<8x32xf32>
    %343 = arith.mulf %330, %336 : vector<8x32xf32>
    %344 = arith.addf %342, %343 : vector<8x32xf32>
    %345 = math.tanh %344 : vector<8x32xf32>
    %346 = arith.mulf %341, %345 : vector<8x32xf32>
    %c0_230 = arith.constant 0 : index
    %c24 = arith.constant 24 : index
    %c0_231 = arith.constant 0 : index
    %347 = vector.load %arg4[%c0_230, %c24, %c0_231] : memref<4x64x32xf32, #tpu.memory_space<vmem>>, vector<1x8x32xf32>
    %348 = vector.shape_cast %347 : vector<1x8x32xf32> to vector<8x32xf32>
    %c4_232 = arith.constant 4 : index
    %c0_233 = arith.constant 0 : index
    %c0_234 = arith.constant 0 : index
    %349 = vector.load %arg1[%c4_232, %c0_233, %c0_234] : memref<16x32x32xf32, #tpu.memory_space<vmem>>, vector<1x32x32xf32>
    %350 = vector.shape_cast %349 : vector<1x32x32xf32> to vector<32x32xf32>
    %cst_235 = arith.constant dense<0.000000e+00> : vector<8x32xf32>
    %351 = tpu.matmul %293, %350, %cst_235 {dimension_numbers = #tpu.dot_dimension_numbers<[1], [0], [0], [1], [0, 0, 1, 1], [], []>} : vector<8x32xf32>, vector<32x32xf32>, vector<8x32xf32> -> vector<8x32xf32>
    %352 = arith.addf %348, %351 : vector<8x32xf32>
    %c1_236 = arith.constant 1 : index
    %c24_237 = arith.constant 24 : index
    %c0_238 = arith.constant 0 : index
    %353 = vector.load %arg4[%c1_236, %c24_237, %c0_238] : memref<4x64x32xf32, #tpu.memory_space<vmem>>, vector<1x8x32xf32>
    %354 = vector.shape_cast %353 : vector<1x8x32xf32> to vector<8x32xf32>
    %c5_239 = arith.constant 5 : index
    %c0_240 = arith.constant 0 : index
    %c0_241 = arith.constant 0 : index
    %355 = vector.load %arg1[%c5_239, %c0_240, %c0_241] : memref<16x32x32xf32, #tpu.memory_space<vmem>>, vector<1x32x32xf32>
    %356 = vector.shape_cast %355 : vector<1x32x32xf32> to vector<32x32xf32>
    %cst_242 = arith.constant dense<0.000000e+00> : vector<8x32xf32>
    %357 = tpu.matmul %293, %356, %cst_242 {dimension_numbers = #tpu.dot_dimension_numbers<[1], [0], [0], [1], [0, 0, 1, 1], [], []>} : vector<8x32xf32>, vector<32x32xf32>, vector<8x32xf32> -> vector<8x32xf32>
    %358 = arith.addf %354, %357 : vector<8x32xf32>
    %c2_243 = arith.constant 2 : index
    %c24_244 = arith.constant 24 : index
    %c0_245 = arith.constant 0 : index
    %359 = vector.load %arg4[%c2_243, %c24_244, %c0_245] : memref<4x64x32xf32, #tpu.memory_space<vmem>>, vector<1x8x32xf32>
    %360 = vector.shape_cast %359 : vector<1x8x32xf32> to vector<8x32xf32>
    %c6_246 = arith.constant 6 : index
    %c0_247 = arith.constant 0 : index
    %c0_248 = arith.constant 0 : index
    %361 = vector.load %arg1[%c6_246, %c0_247, %c0_248] : memref<16x32x32xf32, #tpu.memory_space<vmem>>, vector<1x32x32xf32>
    %362 = vector.shape_cast %361 : vector<1x32x32xf32> to vector<32x32xf32>
    %cst_249 = arith.constant dense<0.000000e+00> : vector<8x32xf32>
    %363 = tpu.matmul %293, %362, %cst_249 {dimension_numbers = #tpu.dot_dimension_numbers<[1], [0], [0], [1], [0, 0, 1, 1], [], []>} : vector<8x32xf32>, vector<32x32xf32>, vector<8x32xf32> -> vector<8x32xf32>
    %364 = arith.addf %360, %363 : vector<8x32xf32>
    %c3_250 = arith.constant 3 : index
    %c24_251 = arith.constant 24 : index
    %c0_252 = arith.constant 0 : index
    %365 = vector.load %arg4[%c3_250, %c24_251, %c0_252] : memref<4x64x32xf32, #tpu.memory_space<vmem>>, vector<1x8x32xf32>
    %366 = vector.shape_cast %365 : vector<1x8x32xf32> to vector<8x32xf32>
    %c7_253 = arith.constant 7 : index
    %c0_254 = arith.constant 0 : index
    %c0_255 = arith.constant 0 : index
    %367 = vector.load %arg1[%c7_253, %c0_254, %c0_255] : memref<16x32x32xf32, #tpu.memory_space<vmem>>, vector<1x32x32xf32>
    %368 = vector.shape_cast %367 : vector<1x32x32xf32> to vector<32x32xf32>
    %cst_256 = arith.constant dense<0.000000e+00> : vector<8x32xf32>
    %369 = tpu.matmul %293, %368, %cst_256 {dimension_numbers = #tpu.dot_dimension_numbers<[1], [0], [0], [1], [0, 0, 1, 1], [], []>} : vector<8x32xf32>, vector<32x32xf32>, vector<8x32xf32> -> vector<8x32xf32>
    %370 = arith.addf %366, %369 : vector<8x32xf32>
    %371 = arith.negf %352 : vector<8x32xf32>
    %372 = math.exp %371 : vector<8x32xf32>
    %cst_257 = arith.constant 1.000000e+00 : f32
    %373 = vector.broadcast %cst_257 : f32 to vector<8x32xf32>
    %374 = arith.addf %373, %372 : vector<8x32xf32>
    %375 = arith.divf %373, %374 : vector<8x32xf32>
    %376 = arith.negf %358 : vector<8x32xf32>
    %377 = math.exp %376 : vector<8x32xf32>
    %cst_258 = arith.constant 1.000000e+00 : f32
    %378 = vector.broadcast %cst_258 : f32 to vector<8x32xf32>
    %379 = arith.addf %378, %377 : vector<8x32xf32>
    %380 = arith.divf %378, %379 : vector<8x32xf32>
    %381 = math.tanh %364 : vector<8x32xf32>
    %382 = arith.negf %370 : vector<8x32xf32>
    %383 = math.exp %382 : vector<8x32xf32>
    %cst_259 = arith.constant 1.000000e+00 : f32
    %384 = vector.broadcast %cst_259 : f32 to vector<8x32xf32>
    %385 = arith.addf %384, %383 : vector<8x32xf32>
    %386 = arith.divf %384, %385 : vector<8x32xf32>
    %387 = arith.mulf %380, %291 : vector<8x32xf32>
    %388 = arith.mulf %375, %381 : vector<8x32xf32>
    %389 = arith.addf %387, %388 : vector<8x32xf32>
    %390 = math.tanh %389 : vector<8x32xf32>
    %391 = arith.mulf %386, %390 : vector<8x32xf32>
    %c12_260 = arith.constant 12 : index
    %c0_261 = arith.constant 0 : index
    %c0_262 = arith.constant 0 : index
    %392 = vector.load %arg1[%c12_260, %c0_261, %c0_262] : memref<16x32x32xf32, #tpu.memory_space<vmem>>, vector<1x32x32xf32>
    %393 = vector.shape_cast %392 : vector<1x32x32xf32> to vector<32x32xf32>
    %cst_263 = arith.constant dense<0.000000e+00> : vector<8x32xf32>
    %394 = tpu.matmul %346, %393, %cst_263 {dimension_numbers = #tpu.dot_dimension_numbers<[1], [0], [0], [1], [0, 0, 1, 1], [], []>} : vector<8x32xf32>, vector<32x32xf32>, vector<8x32xf32> -> vector<8x32xf32>
    %395 = arith.addf %39, %394 : vector<8x32xf32>
    %c8_264 = arith.constant 8 : index
    %c0_265 = arith.constant 0 : index
    %c0_266 = arith.constant 0 : index
    %396 = vector.load %arg1[%c8_264, %c0_265, %c0_266] : memref<16x32x32xf32, #tpu.memory_space<vmem>>, vector<1x32x32xf32>
    %397 = vector.shape_cast %396 : vector<1x32x32xf32> to vector<32x32xf32>
    %cst_267 = arith.constant dense<0.000000e+00> : vector<8x32xf32>
    %398 = tpu.matmul %391, %397, %cst_267 {dimension_numbers = #tpu.dot_dimension_numbers<[1], [0], [0], [1], [0, 0, 1, 1], [], []>} : vector<8x32xf32>, vector<32x32xf32>, vector<8x32xf32> -> vector<8x32xf32>
    %399 = arith.addf %395, %398 : vector<8x32xf32>
    %c13_268 = arith.constant 13 : index
    %c0_269 = arith.constant 0 : index
    %c0_270 = arith.constant 0 : index
    %400 = vector.load %arg1[%c13_268, %c0_269, %c0_270] : memref<16x32x32xf32, #tpu.memory_space<vmem>>, vector<1x32x32xf32>
    %401 = vector.shape_cast %400 : vector<1x32x32xf32> to vector<32x32xf32>
    %cst_271 = arith.constant dense<0.000000e+00> : vector<8x32xf32>
    %402 = tpu.matmul %346, %401, %cst_271 {dimension_numbers = #tpu.dot_dimension_numbers<[1], [0], [0], [1], [0, 0, 1, 1], [], []>} : vector<8x32xf32>, vector<32x32xf32>, vector<8x32xf32> -> vector<8x32xf32>
    %403 = arith.addf %42, %402 : vector<8x32xf32>
    %c9_272 = arith.constant 9 : index
    %c0_273 = arith.constant 0 : index
    %c0_274 = arith.constant 0 : index
    %404 = vector.load %arg1[%c9_272, %c0_273, %c0_274] : memref<16x32x32xf32, #tpu.memory_space<vmem>>, vector<1x32x32xf32>
    %405 = vector.shape_cast %404 : vector<1x32x32xf32> to vector<32x32xf32>
    %cst_275 = arith.constant dense<0.000000e+00> : vector<8x32xf32>
    %406 = tpu.matmul %391, %405, %cst_275 {dimension_numbers = #tpu.dot_dimension_numbers<[1], [0], [0], [1], [0, 0, 1, 1], [], []>} : vector<8x32xf32>, vector<32x32xf32>, vector<8x32xf32> -> vector<8x32xf32>
    %407 = arith.addf %403, %406 : vector<8x32xf32>
    %c14_276 = arith.constant 14 : index
    %c0_277 = arith.constant 0 : index
    %c0_278 = arith.constant 0 : index
    %408 = vector.load %arg1[%c14_276, %c0_277, %c0_278] : memref<16x32x32xf32, #tpu.memory_space<vmem>>, vector<1x32x32xf32>
    %409 = vector.shape_cast %408 : vector<1x32x32xf32> to vector<32x32xf32>
    %cst_279 = arith.constant dense<0.000000e+00> : vector<8x32xf32>
    %410 = tpu.matmul %346, %409, %cst_279 {dimension_numbers = #tpu.dot_dimension_numbers<[1], [0], [0], [1], [0, 0, 1, 1], [], []>} : vector<8x32xf32>, vector<32x32xf32>, vector<8x32xf32> -> vector<8x32xf32>
    %411 = arith.addf %45, %410 : vector<8x32xf32>
    %c10_280 = arith.constant 10 : index
    %c0_281 = arith.constant 0 : index
    %c0_282 = arith.constant 0 : index
    %412 = vector.load %arg1[%c10_280, %c0_281, %c0_282] : memref<16x32x32xf32, #tpu.memory_space<vmem>>, vector<1x32x32xf32>
    %413 = vector.shape_cast %412 : vector<1x32x32xf32> to vector<32x32xf32>
    %cst_283 = arith.constant dense<0.000000e+00> : vector<8x32xf32>
    %414 = tpu.matmul %391, %413, %cst_283 {dimension_numbers = #tpu.dot_dimension_numbers<[1], [0], [0], [1], [0, 0, 1, 1], [], []>} : vector<8x32xf32>, vector<32x32xf32>, vector<8x32xf32> -> vector<8x32xf32>
    %415 = arith.addf %411, %414 : vector<8x32xf32>
    %c15_284 = arith.constant 15 : index
    %c0_285 = arith.constant 0 : index
    %c0_286 = arith.constant 0 : index
    %416 = vector.load %arg1[%c15_284, %c0_285, %c0_286] : memref<16x32x32xf32, #tpu.memory_space<vmem>>, vector<1x32x32xf32>
    %417 = vector.shape_cast %416 : vector<1x32x32xf32> to vector<32x32xf32>
    %cst_287 = arith.constant dense<0.000000e+00> : vector<8x32xf32>
    %418 = tpu.matmul %346, %417, %cst_287 {dimension_numbers = #tpu.dot_dimension_numbers<[1], [0], [0], [1], [0, 0, 1, 1], [], []>} : vector<8x32xf32>, vector<32x32xf32>, vector<8x32xf32> -> vector<8x32xf32>
    %419 = arith.addf %48, %418 : vector<8x32xf32>
    %c11_288 = arith.constant 11 : index
    %c0_289 = arith.constant 0 : index
    %c0_290 = arith.constant 0 : index
    %420 = vector.load %arg1[%c11_288, %c0_289, %c0_290] : memref<16x32x32xf32, #tpu.memory_space<vmem>>, vector<1x32x32xf32>
    %421 = vector.shape_cast %420 : vector<1x32x32xf32> to vector<32x32xf32>
    %cst_291 = arith.constant dense<0.000000e+00> : vector<8x32xf32>
    %422 = tpu.matmul %391, %421, %cst_291 {dimension_numbers = #tpu.dot_dimension_numbers<[1], [0], [0], [1], [0, 0, 1, 1], [], []>} : vector<8x32xf32>, vector<32x32xf32>, vector<8x32xf32> -> vector<8x32xf32>
    %423 = arith.addf %419, %422 : vector<8x32xf32>
    %424 = arith.negf %399 : vector<8x32xf32>
    %425 = math.exp %424 : vector<8x32xf32>
    %cst_292 = arith.constant 1.000000e+00 : f32
    %426 = vector.broadcast %cst_292 : f32 to vector<8x32xf32>
    %427 = arith.addf %426, %425 : vector<8x32xf32>
    %428 = arith.divf %426, %427 : vector<8x32xf32>
    %429 = arith.negf %407 : vector<8x32xf32>
    %430 = math.exp %429 : vector<8x32xf32>
    %cst_293 = arith.constant 1.000000e+00 : f32
    %431 = vector.broadcast %cst_293 : f32 to vector<8x32xf32>
    %432 = arith.addf %431, %430 : vector<8x32xf32>
    %433 = arith.divf %431, %432 : vector<8x32xf32>
    %434 = math.tanh %415 : vector<8x32xf32>
    %435 = arith.negf %423 : vector<8x32xf32>
    %436 = math.exp %435 : vector<8x32xf32>
    %cst_294 = arith.constant 1.000000e+00 : f32
    %437 = vector.broadcast %cst_294 : f32 to vector<8x32xf32>
    %438 = arith.addf %437, %436 : vector<8x32xf32>
    %439 = arith.divf %437, %438 : vector<8x32xf32>
    %440 = arith.mulf %433, %344 : vector<8x32xf32>
    %441 = arith.mulf %428, %434 : vector<8x32xf32>
    %442 = arith.addf %440, %441 : vector<8x32xf32>
    %443 = math.tanh %442 : vector<8x32xf32>
    %444 = arith.mulf %439, %443 : vector<8x32xf32>
    %c0_295 = arith.constant 0 : index
    %c32 = arith.constant 32 : index
    %c0_296 = arith.constant 0 : index
    %445 = vector.load %arg4[%c0_295, %c32, %c0_296] : memref<4x64x32xf32, #tpu.memory_space<vmem>>, vector<1x8x32xf32>
    %446 = vector.shape_cast %445 : vector<1x8x32xf32> to vector<8x32xf32>
    %c4_297 = arith.constant 4 : index
    %c0_298 = arith.constant 0 : index
    %c0_299 = arith.constant 0 : index
    %447 = vector.load %arg1[%c4_297, %c0_298, %c0_299] : memref<16x32x32xf32, #tpu.memory_space<vmem>>, vector<1x32x32xf32>
    %448 = vector.shape_cast %447 : vector<1x32x32xf32> to vector<32x32xf32>
    %cst_300 = arith.constant dense<0.000000e+00> : vector<8x32xf32>
    %449 = tpu.matmul %391, %448, %cst_300 {dimension_numbers = #tpu.dot_dimension_numbers<[1], [0], [0], [1], [0, 0, 1, 1], [], []>} : vector<8x32xf32>, vector<32x32xf32>, vector<8x32xf32> -> vector<8x32xf32>
    %450 = arith.addf %446, %449 : vector<8x32xf32>
    %c1_301 = arith.constant 1 : index
    %c32_302 = arith.constant 32 : index
    %c0_303 = arith.constant 0 : index
    %451 = vector.load %arg4[%c1_301, %c32_302, %c0_303] : memref<4x64x32xf32, #tpu.memory_space<vmem>>, vector<1x8x32xf32>
    %452 = vector.shape_cast %451 : vector<1x8x32xf32> to vector<8x32xf32>
    %c5_304 = arith.constant 5 : index
    %c0_305 = arith.constant 0 : index
    %c0_306 = arith.constant 0 : index
    %453 = vector.load %arg1[%c5_304, %c0_305, %c0_306] : memref<16x32x32xf32, #tpu.memory_space<vmem>>, vector<1x32x32xf32>
    %454 = vector.shape_cast %453 : vector<1x32x32xf32> to vector<32x32xf32>
    %cst_307 = arith.constant dense<0.000000e+00> : vector<8x32xf32>
    %455 = tpu.matmul %391, %454, %cst_307 {dimension_numbers = #tpu.dot_dimension_numbers<[1], [0], [0], [1], [0, 0, 1, 1], [], []>} : vector<8x32xf32>, vector<32x32xf32>, vector<8x32xf32> -> vector<8x32xf32>
    %456 = arith.addf %452, %455 : vector<8x32xf32>
    %c2_308 = arith.constant 2 : index
    %c32_309 = arith.constant 32 : index
    %c0_310 = arith.constant 0 : index
    %457 = vector.load %arg4[%c2_308, %c32_309, %c0_310] : memref<4x64x32xf32, #tpu.memory_space<vmem>>, vector<1x8x32xf32>
    %458 = vector.shape_cast %457 : vector<1x8x32xf32> to vector<8x32xf32>
    %c6_311 = arith.constant 6 : index
    %c0_312 = arith.constant 0 : index
    %c0_313 = arith.constant 0 : index
    %459 = vector.load %arg1[%c6_311, %c0_312, %c0_313] : memref<16x32x32xf32, #tpu.memory_space<vmem>>, vector<1x32x32xf32>
    %460 = vector.shape_cast %459 : vector<1x32x32xf32> to vector<32x32xf32>
    %cst_314 = arith.constant dense<0.000000e+00> : vector<8x32xf32>
    %461 = tpu.matmul %391, %460, %cst_314 {dimension_numbers = #tpu.dot_dimension_numbers<[1], [0], [0], [1], [0, 0, 1, 1], [], []>} : vector<8x32xf32>, vector<32x32xf32>, vector<8x32xf32> -> vector<8x32xf32>
    %462 = arith.addf %458, %461 : vector<8x32xf32>
    %c3_315 = arith.constant 3 : index
    %c32_316 = arith.constant 32 : index
    %c0_317 = arith.constant 0 : index
    %463 = vector.load %arg4[%c3_315, %c32_316, %c0_317] : memref<4x64x32xf32, #tpu.memory_space<vmem>>, vector<1x8x32xf32>
    %464 = vector.shape_cast %463 : vector<1x8x32xf32> to vector<8x32xf32>
    %c7_318 = arith.constant 7 : index
    %c0_319 = arith.constant 0 : index
    %c0_320 = arith.constant 0 : index
    %465 = vector.load %arg1[%c7_318, %c0_319, %c0_320] : memref<16x32x32xf32, #tpu.memory_space<vmem>>, vector<1x32x32xf32>
    %466 = vector.shape_cast %465 : vector<1x32x32xf32> to vector<32x32xf32>
    %cst_321 = arith.constant dense<0.000000e+00> : vector<8x32xf32>
    %467 = tpu.matmul %391, %466, %cst_321 {dimension_numbers = #tpu.dot_dimension_numbers<[1], [0], [0], [1], [0, 0, 1, 1], [], []>} : vector<8x32xf32>, vector<32x32xf32>, vector<8x32xf32> -> vector<8x32xf32>
    %468 = arith.addf %464, %467 : vector<8x32xf32>
    %469 = arith.negf %450 : vector<8x32xf32>
    %470 = math.exp %469 : vector<8x32xf32>
    %cst_322 = arith.constant 1.000000e+00 : f32
    %471 = vector.broadcast %cst_322 : f32 to vector<8x32xf32>
    %472 = arith.addf %471, %470 : vector<8x32xf32>
    %473 = arith.divf %471, %472 : vector<8x32xf32>
    %474 = arith.negf %456 : vector<8x32xf32>
    %475 = math.exp %474 : vector<8x32xf32>
    %cst_323 = arith.constant 1.000000e+00 : f32
    %476 = vector.broadcast %cst_323 : f32 to vector<8x32xf32>
    %477 = arith.addf %476, %475 : vector<8x32xf32>
    %478 = arith.divf %476, %477 : vector<8x32xf32>
    %479 = math.tanh %462 : vector<8x32xf32>
    %480 = arith.negf %468 : vector<8x32xf32>
    %481 = math.exp %480 : vector<8x32xf32>
    %cst_324 = arith.constant 1.000000e+00 : f32
    %482 = vector.broadcast %cst_324 : f32 to vector<8x32xf32>
    %483 = arith.addf %482, %481 : vector<8x32xf32>
    %484 = arith.divf %482, %483 : vector<8x32xf32>
    %485 = arith.mulf %478, %389 : vector<8x32xf32>
    %486 = arith.mulf %473, %479 : vector<8x32xf32>
    %487 = arith.addf %485, %486 : vector<8x32xf32>
    %488 = math.tanh %487 : vector<8x32xf32>
    %489 = arith.mulf %484, %488 : vector<8x32xf32>
    %c12_325 = arith.constant 12 : index
    %c0_326 = arith.constant 0 : index
    %c0_327 = arith.constant 0 : index
    %490 = vector.load %arg1[%c12_325, %c0_326, %c0_327] : memref<16x32x32xf32, #tpu.memory_space<vmem>>, vector<1x32x32xf32>
    %491 = vector.shape_cast %490 : vector<1x32x32xf32> to vector<32x32xf32>
    %cst_328 = arith.constant dense<0.000000e+00> : vector<8x32xf32>
    %492 = tpu.matmul %444, %491, %cst_328 {dimension_numbers = #tpu.dot_dimension_numbers<[1], [0], [0], [1], [0, 0, 1, 1], [], []>} : vector<8x32xf32>, vector<32x32xf32>, vector<8x32xf32> -> vector<8x32xf32>
    %493 = arith.addf %39, %492 : vector<8x32xf32>
    %c8_329 = arith.constant 8 : index
    %c0_330 = arith.constant 0 : index
    %c0_331 = arith.constant 0 : index
    %494 = vector.load %arg1[%c8_329, %c0_330, %c0_331] : memref<16x32x32xf32, #tpu.memory_space<vmem>>, vector<1x32x32xf32>
    %495 = vector.shape_cast %494 : vector<1x32x32xf32> to vector<32x32xf32>
    %cst_332 = arith.constant dense<0.000000e+00> : vector<8x32xf32>
    %496 = tpu.matmul %489, %495, %cst_332 {dimension_numbers = #tpu.dot_dimension_numbers<[1], [0], [0], [1], [0, 0, 1, 1], [], []>} : vector<8x32xf32>, vector<32x32xf32>, vector<8x32xf32> -> vector<8x32xf32>
    %497 = arith.addf %493, %496 : vector<8x32xf32>
    %c13_333 = arith.constant 13 : index
    %c0_334 = arith.constant 0 : index
    %c0_335 = arith.constant 0 : index
    %498 = vector.load %arg1[%c13_333, %c0_334, %c0_335] : memref<16x32x32xf32, #tpu.memory_space<vmem>>, vector<1x32x32xf32>
    %499 = vector.shape_cast %498 : vector<1x32x32xf32> to vector<32x32xf32>
    %cst_336 = arith.constant dense<0.000000e+00> : vector<8x32xf32>
    %500 = tpu.matmul %444, %499, %cst_336 {dimension_numbers = #tpu.dot_dimension_numbers<[1], [0], [0], [1], [0, 0, 1, 1], [], []>} : vector<8x32xf32>, vector<32x32xf32>, vector<8x32xf32> -> vector<8x32xf32>
    %501 = arith.addf %42, %500 : vector<8x32xf32>
    %c9_337 = arith.constant 9 : index
    %c0_338 = arith.constant 0 : index
    %c0_339 = arith.constant 0 : index
    %502 = vector.load %arg1[%c9_337, %c0_338, %c0_339] : memref<16x32x32xf32, #tpu.memory_space<vmem>>, vector<1x32x32xf32>
    %503 = vector.shape_cast %502 : vector<1x32x32xf32> to vector<32x32xf32>
    %cst_340 = arith.constant dense<0.000000e+00> : vector<8x32xf32>
    %504 = tpu.matmul %489, %503, %cst_340 {dimension_numbers = #tpu.dot_dimension_numbers<[1], [0], [0], [1], [0, 0, 1, 1], [], []>} : vector<8x32xf32>, vector<32x32xf32>, vector<8x32xf32> -> vector<8x32xf32>
    %505 = arith.addf %501, %504 : vector<8x32xf32>
    %c14_341 = arith.constant 14 : index
    %c0_342 = arith.constant 0 : index
    %c0_343 = arith.constant 0 : index
    %506 = vector.load %arg1[%c14_341, %c0_342, %c0_343] : memref<16x32x32xf32, #tpu.memory_space<vmem>>, vector<1x32x32xf32>
    %507 = vector.shape_cast %506 : vector<1x32x32xf32> to vector<32x32xf32>
    %cst_344 = arith.constant dense<0.000000e+00> : vector<8x32xf32>
    %508 = tpu.matmul %444, %507, %cst_344 {dimension_numbers = #tpu.dot_dimension_numbers<[1], [0], [0], [1], [0, 0, 1, 1], [], []>} : vector<8x32xf32>, vector<32x32xf32>, vector<8x32xf32> -> vector<8x32xf32>
    %509 = arith.addf %45, %508 : vector<8x32xf32>
    %c10_345 = arith.constant 10 : index
    %c0_346 = arith.constant 0 : index
    %c0_347 = arith.constant 0 : index
    %510 = vector.load %arg1[%c10_345, %c0_346, %c0_347] : memref<16x32x32xf32, #tpu.memory_space<vmem>>, vector<1x32x32xf32>
    %511 = vector.shape_cast %510 : vector<1x32x32xf32> to vector<32x32xf32>
    %cst_348 = arith.constant dense<0.000000e+00> : vector<8x32xf32>
    %512 = tpu.matmul %489, %511, %cst_348 {dimension_numbers = #tpu.dot_dimension_numbers<[1], [0], [0], [1], [0, 0, 1, 1], [], []>} : vector<8x32xf32>, vector<32x32xf32>, vector<8x32xf32> -> vector<8x32xf32>
    %513 = arith.addf %509, %512 : vector<8x32xf32>
    %c15_349 = arith.constant 15 : index
    %c0_350 = arith.constant 0 : index
    %c0_351 = arith.constant 0 : index
    %514 = vector.load %arg1[%c15_349, %c0_350, %c0_351] : memref<16x32x32xf32, #tpu.memory_space<vmem>>, vector<1x32x32xf32>
    %515 = vector.shape_cast %514 : vector<1x32x32xf32> to vector<32x32xf32>
    %cst_352 = arith.constant dense<0.000000e+00> : vector<8x32xf32>
    %516 = tpu.matmul %444, %515, %cst_352 {dimension_numbers = #tpu.dot_dimension_numbers<[1], [0], [0], [1], [0, 0, 1, 1], [], []>} : vector<8x32xf32>, vector<32x32xf32>, vector<8x32xf32> -> vector<8x32xf32>
    %517 = arith.addf %48, %516 : vector<8x32xf32>
    %c11_353 = arith.constant 11 : index
    %c0_354 = arith.constant 0 : index
    %c0_355 = arith.constant 0 : index
    %518 = vector.load %arg1[%c11_353, %c0_354, %c0_355] : memref<16x32x32xf32, #tpu.memory_space<vmem>>, vector<1x32x32xf32>
    %519 = vector.shape_cast %518 : vector<1x32x32xf32> to vector<32x32xf32>
    %cst_356 = arith.constant dense<0.000000e+00> : vector<8x32xf32>
    %520 = tpu.matmul %489, %519, %cst_356 {dimension_numbers = #tpu.dot_dimension_numbers<[1], [0], [0], [1], [0, 0, 1, 1], [], []>} : vector<8x32xf32>, vector<32x32xf32>, vector<8x32xf32> -> vector<8x32xf32>
    %521 = arith.addf %517, %520 : vector<8x32xf32>
    %522 = arith.negf %497 : vector<8x32xf32>
    %523 = math.exp %522 : vector<8x32xf32>
    %cst_357 = arith.constant 1.000000e+00 : f32
    %524 = vector.broadcast %cst_357 : f32 to vector<8x32xf32>
    %525 = arith.addf %524, %523 : vector<8x32xf32>
    %526 = arith.divf %524, %525 : vector<8x32xf32>
    %527 = arith.negf %505 : vector<8x32xf32>
    %528 = math.exp %527 : vector<8x32xf32>
    %cst_358 = arith.constant 1.000000e+00 : f32
    %529 = vector.broadcast %cst_358 : f32 to vector<8x32xf32>
    %530 = arith.addf %529, %528 : vector<8x32xf32>
    %531 = arith.divf %529, %530 : vector<8x32xf32>
    %532 = math.tanh %513 : vector<8x32xf32>
    %533 = arith.negf %521 : vector<8x32xf32>
    %534 = math.exp %533 : vector<8x32xf32>
    %cst_359 = arith.constant 1.000000e+00 : f32
    %535 = vector.broadcast %cst_359 : f32 to vector<8x32xf32>
    %536 = arith.addf %535, %534 : vector<8x32xf32>
    %537 = arith.divf %535, %536 : vector<8x32xf32>
    %538 = arith.mulf %531, %442 : vector<8x32xf32>
    %539 = arith.mulf %526, %532 : vector<8x32xf32>
    %540 = arith.addf %538, %539 : vector<8x32xf32>
    %541 = math.tanh %540 : vector<8x32xf32>
    %542 = arith.mulf %537, %541 : vector<8x32xf32>
    %c0_360 = arith.constant 0 : index
    %c40 = arith.constant 40 : index
    %c0_361 = arith.constant 0 : index
    %543 = vector.load %arg4[%c0_360, %c40, %c0_361] : memref<4x64x32xf32, #tpu.memory_space<vmem>>, vector<1x8x32xf32>
    %544 = vector.shape_cast %543 : vector<1x8x32xf32> to vector<8x32xf32>
    %c4_362 = arith.constant 4 : index
    %c0_363 = arith.constant 0 : index
    %c0_364 = arith.constant 0 : index
    %545 = vector.load %arg1[%c4_362, %c0_363, %c0_364] : memref<16x32x32xf32, #tpu.memory_space<vmem>>, vector<1x32x32xf32>
    %546 = vector.shape_cast %545 : vector<1x32x32xf32> to vector<32x32xf32>
    %cst_365 = arith.constant dense<0.000000e+00> : vector<8x32xf32>
    %547 = tpu.matmul %489, %546, %cst_365 {dimension_numbers = #tpu.dot_dimension_numbers<[1], [0], [0], [1], [0, 0, 1, 1], [], []>} : vector<8x32xf32>, vector<32x32xf32>, vector<8x32xf32> -> vector<8x32xf32>
    %548 = arith.addf %544, %547 : vector<8x32xf32>
    %c1_366 = arith.constant 1 : index
    %c40_367 = arith.constant 40 : index
    %c0_368 = arith.constant 0 : index
    %549 = vector.load %arg4[%c1_366, %c40_367, %c0_368] : memref<4x64x32xf32, #tpu.memory_space<vmem>>, vector<1x8x32xf32>
    %550 = vector.shape_cast %549 : vector<1x8x32xf32> to vector<8x32xf32>
    %c5_369 = arith.constant 5 : index
    %c0_370 = arith.constant 0 : index
    %c0_371 = arith.constant 0 : index
    %551 = vector.load %arg1[%c5_369, %c0_370, %c0_371] : memref<16x32x32xf32, #tpu.memory_space<vmem>>, vector<1x32x32xf32>
    %552 = vector.shape_cast %551 : vector<1x32x32xf32> to vector<32x32xf32>
    %cst_372 = arith.constant dense<0.000000e+00> : vector<8x32xf32>
    %553 = tpu.matmul %489, %552, %cst_372 {dimension_numbers = #tpu.dot_dimension_numbers<[1], [0], [0], [1], [0, 0, 1, 1], [], []>} : vector<8x32xf32>, vector<32x32xf32>, vector<8x32xf32> -> vector<8x32xf32>
    %554 = arith.addf %550, %553 : vector<8x32xf32>
    %c2_373 = arith.constant 2 : index
    %c40_374 = arith.constant 40 : index
    %c0_375 = arith.constant 0 : index
    %555 = vector.load %arg4[%c2_373, %c40_374, %c0_375] : memref<4x64x32xf32, #tpu.memory_space<vmem>>, vector<1x8x32xf32>
    %556 = vector.shape_cast %555 : vector<1x8x32xf32> to vector<8x32xf32>
    %c6_376 = arith.constant 6 : index
    %c0_377 = arith.constant 0 : index
    %c0_378 = arith.constant 0 : index
    %557 = vector.load %arg1[%c6_376, %c0_377, %c0_378] : memref<16x32x32xf32, #tpu.memory_space<vmem>>, vector<1x32x32xf32>
    %558 = vector.shape_cast %557 : vector<1x32x32xf32> to vector<32x32xf32>
    %cst_379 = arith.constant dense<0.000000e+00> : vector<8x32xf32>
    %559 = tpu.matmul %489, %558, %cst_379 {dimension_numbers = #tpu.dot_dimension_numbers<[1], [0], [0], [1], [0, 0, 1, 1], [], []>} : vector<8x32xf32>, vector<32x32xf32>, vector<8x32xf32> -> vector<8x32xf32>
    %560 = arith.addf %556, %559 : vector<8x32xf32>
    %c3_380 = arith.constant 3 : index
    %c40_381 = arith.constant 40 : index
    %c0_382 = arith.constant 0 : index
    %561 = vector.load %arg4[%c3_380, %c40_381, %c0_382] : memref<4x64x32xf32, #tpu.memory_space<vmem>>, vector<1x8x32xf32>
    %562 = vector.shape_cast %561 : vector<1x8x32xf32> to vector<8x32xf32>
    %c7_383 = arith.constant 7 : index
    %c0_384 = arith.constant 0 : index
    %c0_385 = arith.constant 0 : index
    %563 = vector.load %arg1[%c7_383, %c0_384, %c0_385] : memref<16x32x32xf32, #tpu.memory_space<vmem>>, vector<1x32x32xf32>
    %564 = vector.shape_cast %563 : vector<1x32x32xf32> to vector<32x32xf32>
    %cst_386 = arith.constant dense<0.000000e+00> : vector<8x32xf32>
    %565 = tpu.matmul %489, %564, %cst_386 {dimension_numbers = #tpu.dot_dimension_numbers<[1], [0], [0], [1], [0, 0, 1, 1], [], []>} : vector<8x32xf32>, vector<32x32xf32>, vector<8x32xf32> -> vector<8x32xf32>
    %566 = arith.addf %562, %565 : vector<8x32xf32>
    %567 = arith.negf %548 : vector<8x32xf32>
    %568 = math.exp %567 : vector<8x32xf32>
    %cst_387 = arith.constant 1.000000e+00 : f32
    %569 = vector.broadcast %cst_387 : f32 to vector<8x32xf32>
    %570 = arith.addf %569, %568 : vector<8x32xf32>
    %571 = arith.divf %569, %570 : vector<8x32xf32>
    %572 = arith.negf %554 : vector<8x32xf32>
    %573 = math.exp %572 : vector<8x32xf32>
    %cst_388 = arith.constant 1.000000e+00 : f32
    %574 = vector.broadcast %cst_388 : f32 to vector<8x32xf32>
    %575 = arith.addf %574, %573 : vector<8x32xf32>
    %576 = arith.divf %574, %575 : vector<8x32xf32>
    %577 = math.tanh %560 : vector<8x32xf32>
    %578 = arith.negf %566 : vector<8x32xf32>
    %579 = math.exp %578 : vector<8x32xf32>
    %cst_389 = arith.constant 1.000000e+00 : f32
    %580 = vector.broadcast %cst_389 : f32 to vector<8x32xf32>
    %581 = arith.addf %580, %579 : vector<8x32xf32>
    %582 = arith.divf %580, %581 : vector<8x32xf32>
    %583 = arith.mulf %576, %487 : vector<8x32xf32>
    %584 = arith.mulf %571, %577 : vector<8x32xf32>
    %585 = arith.addf %583, %584 : vector<8x32xf32>
    %586 = math.tanh %585 : vector<8x32xf32>
    %587 = arith.mulf %582, %586 : vector<8x32xf32>
    %c12_390 = arith.constant 12 : index
    %c0_391 = arith.constant 0 : index
    %c0_392 = arith.constant 0 : index
    %588 = vector.load %arg1[%c12_390, %c0_391, %c0_392] : memref<16x32x32xf32, #tpu.memory_space<vmem>>, vector<1x32x32xf32>
    %589 = vector.shape_cast %588 : vector<1x32x32xf32> to vector<32x32xf32>
    %cst_393 = arith.constant dense<0.000000e+00> : vector<8x32xf32>
    %590 = tpu.matmul %542, %589, %cst_393 {dimension_numbers = #tpu.dot_dimension_numbers<[1], [0], [0], [1], [0, 0, 1, 1], [], []>} : vector<8x32xf32>, vector<32x32xf32>, vector<8x32xf32> -> vector<8x32xf32>
    %591 = arith.addf %39, %590 : vector<8x32xf32>
    %c8_394 = arith.constant 8 : index
    %c0_395 = arith.constant 0 : index
    %c0_396 = arith.constant 0 : index
    %592 = vector.load %arg1[%c8_394, %c0_395, %c0_396] : memref<16x32x32xf32, #tpu.memory_space<vmem>>, vector<1x32x32xf32>
    %593 = vector.shape_cast %592 : vector<1x32x32xf32> to vector<32x32xf32>
    %cst_397 = arith.constant dense<0.000000e+00> : vector<8x32xf32>
    %594 = tpu.matmul %587, %593, %cst_397 {dimension_numbers = #tpu.dot_dimension_numbers<[1], [0], [0], [1], [0, 0, 1, 1], [], []>} : vector<8x32xf32>, vector<32x32xf32>, vector<8x32xf32> -> vector<8x32xf32>
    %595 = arith.addf %591, %594 : vector<8x32xf32>
    %c13_398 = arith.constant 13 : index
    %c0_399 = arith.constant 0 : index
    %c0_400 = arith.constant 0 : index
    %596 = vector.load %arg1[%c13_398, %c0_399, %c0_400] : memref<16x32x32xf32, #tpu.memory_space<vmem>>, vector<1x32x32xf32>
    %597 = vector.shape_cast %596 : vector<1x32x32xf32> to vector<32x32xf32>
    %cst_401 = arith.constant dense<0.000000e+00> : vector<8x32xf32>
    %598 = tpu.matmul %542, %597, %cst_401 {dimension_numbers = #tpu.dot_dimension_numbers<[1], [0], [0], [1], [0, 0, 1, 1], [], []>} : vector<8x32xf32>, vector<32x32xf32>, vector<8x32xf32> -> vector<8x32xf32>
    %599 = arith.addf %42, %598 : vector<8x32xf32>
    %c9_402 = arith.constant 9 : index
    %c0_403 = arith.constant 0 : index
    %c0_404 = arith.constant 0 : index
    %600 = vector.load %arg1[%c9_402, %c0_403, %c0_404] : memref<16x32x32xf32, #tpu.memory_space<vmem>>, vector<1x32x32xf32>
    %601 = vector.shape_cast %600 : vector<1x32x32xf32> to vector<32x32xf32>
    %cst_405 = arith.constant dense<0.000000e+00> : vector<8x32xf32>
    %602 = tpu.matmul %587, %601, %cst_405 {dimension_numbers = #tpu.dot_dimension_numbers<[1], [0], [0], [1], [0, 0, 1, 1], [], []>} : vector<8x32xf32>, vector<32x32xf32>, vector<8x32xf32> -> vector<8x32xf32>
    %603 = arith.addf %599, %602 : vector<8x32xf32>
    %c14_406 = arith.constant 14 : index
    %c0_407 = arith.constant 0 : index
    %c0_408 = arith.constant 0 : index
    %604 = vector.load %arg1[%c14_406, %c0_407, %c0_408] : memref<16x32x32xf32, #tpu.memory_space<vmem>>, vector<1x32x32xf32>
    %605 = vector.shape_cast %604 : vector<1x32x32xf32> to vector<32x32xf32>
    %cst_409 = arith.constant dense<0.000000e+00> : vector<8x32xf32>
    %606 = tpu.matmul %542, %605, %cst_409 {dimension_numbers = #tpu.dot_dimension_numbers<[1], [0], [0], [1], [0, 0, 1, 1], [], []>} : vector<8x32xf32>, vector<32x32xf32>, vector<8x32xf32> -> vector<8x32xf32>
    %607 = arith.addf %45, %606 : vector<8x32xf32>
    %c10_410 = arith.constant 10 : index
    %c0_411 = arith.constant 0 : index
    %c0_412 = arith.constant 0 : index
    %608 = vector.load %arg1[%c10_410, %c0_411, %c0_412] : memref<16x32x32xf32, #tpu.memory_space<vmem>>, vector<1x32x32xf32>
    %609 = vector.shape_cast %608 : vector<1x32x32xf32> to vector<32x32xf32>
    %cst_413 = arith.constant dense<0.000000e+00> : vector<8x32xf32>
    %610 = tpu.matmul %587, %609, %cst_413 {dimension_numbers = #tpu.dot_dimension_numbers<[1], [0], [0], [1], [0, 0, 1, 1], [], []>} : vector<8x32xf32>, vector<32x32xf32>, vector<8x32xf32> -> vector<8x32xf32>
    %611 = arith.addf %607, %610 : vector<8x32xf32>
    %c15_414 = arith.constant 15 : index
    %c0_415 = arith.constant 0 : index
    %c0_416 = arith.constant 0 : index
    %612 = vector.load %arg1[%c15_414, %c0_415, %c0_416] : memref<16x32x32xf32, #tpu.memory_space<vmem>>, vector<1x32x32xf32>
    %613 = vector.shape_cast %612 : vector<1x32x32xf32> to vector<32x32xf32>
    %cst_417 = arith.constant dense<0.000000e+00> : vector<8x32xf32>
    %614 = tpu.matmul %542, %613, %cst_417 {dimension_numbers = #tpu.dot_dimension_numbers<[1], [0], [0], [1], [0, 0, 1, 1], [], []>} : vector<8x32xf32>, vector<32x32xf32>, vector<8x32xf32> -> vector<8x32xf32>
    %615 = arith.addf %48, %614 : vector<8x32xf32>
    %c11_418 = arith.constant 11 : index
    %c0_419 = arith.constant 0 : index
    %c0_420 = arith.constant 0 : index
    %616 = vector.load %arg1[%c11_418, %c0_419, %c0_420] : memref<16x32x32xf32, #tpu.memory_space<vmem>>, vector<1x32x32xf32>
    %617 = vector.shape_cast %616 : vector<1x32x32xf32> to vector<32x32xf32>
    %cst_421 = arith.constant dense<0.000000e+00> : vector<8x32xf32>
    %618 = tpu.matmul %587, %617, %cst_421 {dimension_numbers = #tpu.dot_dimension_numbers<[1], [0], [0], [1], [0, 0, 1, 1], [], []>} : vector<8x32xf32>, vector<32x32xf32>, vector<8x32xf32> -> vector<8x32xf32>
    %619 = arith.addf %615, %618 : vector<8x32xf32>
    %620 = arith.negf %595 : vector<8x32xf32>
    %621 = math.exp %620 : vector<8x32xf32>
    %cst_422 = arith.constant 1.000000e+00 : f32
    %622 = vector.broadcast %cst_422 : f32 to vector<8x32xf32>
    %623 = arith.addf %622, %621 : vector<8x32xf32>
    %624 = arith.divf %622, %623 : vector<8x32xf32>
    %625 = arith.negf %603 : vector<8x32xf32>
    %626 = math.exp %625 : vector<8x32xf32>
    %cst_423 = arith.constant 1.000000e+00 : f32
    %627 = vector.broadcast %cst_423 : f32 to vector<8x32xf32>
    %628 = arith.addf %627, %626 : vector<8x32xf32>
    %629 = arith.divf %627, %628 : vector<8x32xf32>
    %630 = math.tanh %611 : vector<8x32xf32>
    %631 = arith.negf %619 : vector<8x32xf32>
    %632 = math.exp %631 : vector<8x32xf32>
    %cst_424 = arith.constant 1.000000e+00 : f32
    %633 = vector.broadcast %cst_424 : f32 to vector<8x32xf32>
    %634 = arith.addf %633, %632 : vector<8x32xf32>
    %635 = arith.divf %633, %634 : vector<8x32xf32>
    %636 = arith.mulf %629, %540 : vector<8x32xf32>
    %637 = arith.mulf %624, %630 : vector<8x32xf32>
    %638 = arith.addf %636, %637 : vector<8x32xf32>
    %639 = math.tanh %638 : vector<8x32xf32>
    %640 = arith.mulf %635, %639 : vector<8x32xf32>
    %c0_425 = arith.constant 0 : index
    %c48 = arith.constant 48 : index
    %c0_426 = arith.constant 0 : index
    %641 = vector.load %arg4[%c0_425, %c48, %c0_426] : memref<4x64x32xf32, #tpu.memory_space<vmem>>, vector<1x8x32xf32>
    %642 = vector.shape_cast %641 : vector<1x8x32xf32> to vector<8x32xf32>
    %c4_427 = arith.constant 4 : index
    %c0_428 = arith.constant 0 : index
    %c0_429 = arith.constant 0 : index
    %643 = vector.load %arg1[%c4_427, %c0_428, %c0_429] : memref<16x32x32xf32, #tpu.memory_space<vmem>>, vector<1x32x32xf32>
    %644 = vector.shape_cast %643 : vector<1x32x32xf32> to vector<32x32xf32>
    %cst_430 = arith.constant dense<0.000000e+00> : vector<8x32xf32>
    %645 = tpu.matmul %587, %644, %cst_430 {dimension_numbers = #tpu.dot_dimension_numbers<[1], [0], [0], [1], [0, 0, 1, 1], [], []>} : vector<8x32xf32>, vector<32x32xf32>, vector<8x32xf32> -> vector<8x32xf32>
    %646 = arith.addf %642, %645 : vector<8x32xf32>
    %c1_431 = arith.constant 1 : index
    %c48_432 = arith.constant 48 : index
    %c0_433 = arith.constant 0 : index
    %647 = vector.load %arg4[%c1_431, %c48_432, %c0_433] : memref<4x64x32xf32, #tpu.memory_space<vmem>>, vector<1x8x32xf32>
    %648 = vector.shape_cast %647 : vector<1x8x32xf32> to vector<8x32xf32>
    %c5_434 = arith.constant 5 : index
    %c0_435 = arith.constant 0 : index
    %c0_436 = arith.constant 0 : index
    %649 = vector.load %arg1[%c5_434, %c0_435, %c0_436] : memref<16x32x32xf32, #tpu.memory_space<vmem>>, vector<1x32x32xf32>
    %650 = vector.shape_cast %649 : vector<1x32x32xf32> to vector<32x32xf32>
    %cst_437 = arith.constant dense<0.000000e+00> : vector<8x32xf32>
    %651 = tpu.matmul %587, %650, %cst_437 {dimension_numbers = #tpu.dot_dimension_numbers<[1], [0], [0], [1], [0, 0, 1, 1], [], []>} : vector<8x32xf32>, vector<32x32xf32>, vector<8x32xf32> -> vector<8x32xf32>
    %652 = arith.addf %648, %651 : vector<8x32xf32>
    %c2_438 = arith.constant 2 : index
    %c48_439 = arith.constant 48 : index
    %c0_440 = arith.constant 0 : index
    %653 = vector.load %arg4[%c2_438, %c48_439, %c0_440] : memref<4x64x32xf32, #tpu.memory_space<vmem>>, vector<1x8x32xf32>
    %654 = vector.shape_cast %653 : vector<1x8x32xf32> to vector<8x32xf32>
    %c6_441 = arith.constant 6 : index
    %c0_442 = arith.constant 0 : index
    %c0_443 = arith.constant 0 : index
    %655 = vector.load %arg1[%c6_441, %c0_442, %c0_443] : memref<16x32x32xf32, #tpu.memory_space<vmem>>, vector<1x32x32xf32>
    %656 = vector.shape_cast %655 : vector<1x32x32xf32> to vector<32x32xf32>
    %cst_444 = arith.constant dense<0.000000e+00> : vector<8x32xf32>
    %657 = tpu.matmul %587, %656, %cst_444 {dimension_numbers = #tpu.dot_dimension_numbers<[1], [0], [0], [1], [0, 0, 1, 1], [], []>} : vector<8x32xf32>, vector<32x32xf32>, vector<8x32xf32> -> vector<8x32xf32>
    %658 = arith.addf %654, %657 : vector<8x32xf32>
    %c3_445 = arith.constant 3 : index
    %c48_446 = arith.constant 48 : index
    %c0_447 = arith.constant 0 : index
    %659 = vector.load %arg4[%c3_445, %c48_446, %c0_447] : memref<4x64x32xf32, #tpu.memory_space<vmem>>, vector<1x8x32xf32>
    %660 = vector.shape_cast %659 : vector<1x8x32xf32> to vector<8x32xf32>
    %c7_448 = arith.constant 7 : index
    %c0_449 = arith.constant 0 : index
    %c0_450 = arith.constant 0 : index
    %661 = vector.load %arg1[%c7_448, %c0_449, %c0_450] : memref<16x32x32xf32, #tpu.memory_space<vmem>>, vector<1x32x32xf32>
    %662 = vector.shape_cast %661 : vector<1x32x32xf32> to vector<32x32xf32>
    %cst_451 = arith.constant dense<0.000000e+00> : vector<8x32xf32>
    %663 = tpu.matmul %587, %662, %cst_451 {dimension_numbers = #tpu.dot_dimension_numbers<[1], [0], [0], [1], [0, 0, 1, 1], [], []>} : vector<8x32xf32>, vector<32x32xf32>, vector<8x32xf32> -> vector<8x32xf32>
    %664 = arith.addf %660, %663 : vector<8x32xf32>
    %665 = arith.negf %646 : vector<8x32xf32>
    %666 = math.exp %665 : vector<8x32xf32>
    %cst_452 = arith.constant 1.000000e+00 : f32
    %667 = vector.broadcast %cst_452 : f32 to vector<8x32xf32>
    %668 = arith.addf %667, %666 : vector<8x32xf32>
    %669 = arith.divf %667, %668 : vector<8x32xf32>
    %670 = arith.negf %652 : vector<8x32xf32>
    %671 = math.exp %670 : vector<8x32xf32>
    %cst_453 = arith.constant 1.000000e+00 : f32
    %672 = vector.broadcast %cst_453 : f32 to vector<8x32xf32>
    %673 = arith.addf %672, %671 : vector<8x32xf32>
    %674 = arith.divf %672, %673 : vector<8x32xf32>
    %675 = math.tanh %658 : vector<8x32xf32>
    %676 = arith.negf %664 : vector<8x32xf32>
    %677 = math.exp %676 : vector<8x32xf32>
    %cst_454 = arith.constant 1.000000e+00 : f32
    %678 = vector.broadcast %cst_454 : f32 to vector<8x32xf32>
    %679 = arith.addf %678, %677 : vector<8x32xf32>
    %680 = arith.divf %678, %679 : vector<8x32xf32>
    %681 = arith.mulf %674, %585 : vector<8x32xf32>
    %682 = arith.mulf %669, %675 : vector<8x32xf32>
    %683 = arith.addf %681, %682 : vector<8x32xf32>
    %684 = math.tanh %683 : vector<8x32xf32>
    %685 = arith.mulf %680, %684 : vector<8x32xf32>
    %c12_455 = arith.constant 12 : index
    %c0_456 = arith.constant 0 : index
    %c0_457 = arith.constant 0 : index
    %686 = vector.load %arg1[%c12_455, %c0_456, %c0_457] : memref<16x32x32xf32, #tpu.memory_space<vmem>>, vector<1x32x32xf32>
    %687 = vector.shape_cast %686 : vector<1x32x32xf32> to vector<32x32xf32>
    %cst_458 = arith.constant dense<0.000000e+00> : vector<8x32xf32>
    %688 = tpu.matmul %640, %687, %cst_458 {dimension_numbers = #tpu.dot_dimension_numbers<[1], [0], [0], [1], [0, 0, 1, 1], [], []>} : vector<8x32xf32>, vector<32x32xf32>, vector<8x32xf32> -> vector<8x32xf32>
    %689 = arith.addf %39, %688 : vector<8x32xf32>
    %c8_459 = arith.constant 8 : index
    %c0_460 = arith.constant 0 : index
    %c0_461 = arith.constant 0 : index
    %690 = vector.load %arg1[%c8_459, %c0_460, %c0_461] : memref<16x32x32xf32, #tpu.memory_space<vmem>>, vector<1x32x32xf32>
    %691 = vector.shape_cast %690 : vector<1x32x32xf32> to vector<32x32xf32>
    %cst_462 = arith.constant dense<0.000000e+00> : vector<8x32xf32>
    %692 = tpu.matmul %685, %691, %cst_462 {dimension_numbers = #tpu.dot_dimension_numbers<[1], [0], [0], [1], [0, 0, 1, 1], [], []>} : vector<8x32xf32>, vector<32x32xf32>, vector<8x32xf32> -> vector<8x32xf32>
    %693 = arith.addf %689, %692 : vector<8x32xf32>
    %c13_463 = arith.constant 13 : index
    %c0_464 = arith.constant 0 : index
    %c0_465 = arith.constant 0 : index
    %694 = vector.load %arg1[%c13_463, %c0_464, %c0_465] : memref<16x32x32xf32, #tpu.memory_space<vmem>>, vector<1x32x32xf32>
    %695 = vector.shape_cast %694 : vector<1x32x32xf32> to vector<32x32xf32>
    %cst_466 = arith.constant dense<0.000000e+00> : vector<8x32xf32>
    %696 = tpu.matmul %640, %695, %cst_466 {dimension_numbers = #tpu.dot_dimension_numbers<[1], [0], [0], [1], [0, 0, 1, 1], [], []>} : vector<8x32xf32>, vector<32x32xf32>, vector<8x32xf32> -> vector<8x32xf32>
    %697 = arith.addf %42, %696 : vector<8x32xf32>
    %c9_467 = arith.constant 9 : index
    %c0_468 = arith.constant 0 : index
    %c0_469 = arith.constant 0 : index
    %698 = vector.load %arg1[%c9_467, %c0_468, %c0_469] : memref<16x32x32xf32, #tpu.memory_space<vmem>>, vector<1x32x32xf32>
    %699 = vector.shape_cast %698 : vector<1x32x32xf32> to vector<32x32xf32>
    %cst_470 = arith.constant dense<0.000000e+00> : vector<8x32xf32>
    %700 = tpu.matmul %685, %699, %cst_470 {dimension_numbers = #tpu.dot_dimension_numbers<[1], [0], [0], [1], [0, 0, 1, 1], [], []>} : vector<8x32xf32>, vector<32x32xf32>, vector<8x32xf32> -> vector<8x32xf32>
    %701 = arith.addf %697, %700 : vector<8x32xf32>
    %c14_471 = arith.constant 14 : index
    %c0_472 = arith.constant 0 : index
    %c0_473 = arith.constant 0 : index
    %702 = vector.load %arg1[%c14_471, %c0_472, %c0_473] : memref<16x32x32xf32, #tpu.memory_space<vmem>>, vector<1x32x32xf32>
    %703 = vector.shape_cast %702 : vector<1x32x32xf32> to vector<32x32xf32>
    %cst_474 = arith.constant dense<0.000000e+00> : vector<8x32xf32>
    %704 = tpu.matmul %640, %703, %cst_474 {dimension_numbers = #tpu.dot_dimension_numbers<[1], [0], [0], [1], [0, 0, 1, 1], [], []>} : vector<8x32xf32>, vector<32x32xf32>, vector<8x32xf32> -> vector<8x32xf32>
    %705 = arith.addf %45, %704 : vector<8x32xf32>
    %c10_475 = arith.constant 10 : index
    %c0_476 = arith.constant 0 : index
    %c0_477 = arith.constant 0 : index
    %706 = vector.load %arg1[%c10_475, %c0_476, %c0_477] : memref<16x32x32xf32, #tpu.memory_space<vmem>>, vector<1x32x32xf32>
    %707 = vector.shape_cast %706 : vector<1x32x32xf32> to vector<32x32xf32>
    %cst_478 = arith.constant dense<0.000000e+00> : vector<8x32xf32>
    %708 = tpu.matmul %685, %707, %cst_478 {dimension_numbers = #tpu.dot_dimension_numbers<[1], [0], [0], [1], [0, 0, 1, 1], [], []>} : vector<8x32xf32>, vector<32x32xf32>, vector<8x32xf32> -> vector<8x32xf32>
    %709 = arith.addf %705, %708 : vector<8x32xf32>
    %c15_479 = arith.constant 15 : index
    %c0_480 = arith.constant 0 : index
    %c0_481 = arith.constant 0 : index
    %710 = vector.load %arg1[%c15_479, %c0_480, %c0_481] : memref<16x32x32xf32, #tpu.memory_space<vmem>>, vector<1x32x32xf32>
    %711 = vector.shape_cast %710 : vector<1x32x32xf32> to vector<32x32xf32>
    %cst_482 = arith.constant dense<0.000000e+00> : vector<8x32xf32>
    %712 = tpu.matmul %640, %711, %cst_482 {dimension_numbers = #tpu.dot_dimension_numbers<[1], [0], [0], [1], [0, 0, 1, 1], [], []>} : vector<8x32xf32>, vector<32x32xf32>, vector<8x32xf32> -> vector<8x32xf32>
    %713 = arith.addf %48, %712 : vector<8x32xf32>
    %c11_483 = arith.constant 11 : index
    %c0_484 = arith.constant 0 : index
    %c0_485 = arith.constant 0 : index
    %714 = vector.load %arg1[%c11_483, %c0_484, %c0_485] : memref<16x32x32xf32, #tpu.memory_space<vmem>>, vector<1x32x32xf32>
    %715 = vector.shape_cast %714 : vector<1x32x32xf32> to vector<32x32xf32>
    %cst_486 = arith.constant dense<0.000000e+00> : vector<8x32xf32>
    %716 = tpu.matmul %685, %715, %cst_486 {dimension_numbers = #tpu.dot_dimension_numbers<[1], [0], [0], [1], [0, 0, 1, 1], [], []>} : vector<8x32xf32>, vector<32x32xf32>, vector<8x32xf32> -> vector<8x32xf32>
    %717 = arith.addf %713, %716 : vector<8x32xf32>
    %718 = arith.negf %693 : vector<8x32xf32>
    %719 = math.exp %718 : vector<8x32xf32>
    %cst_487 = arith.constant 1.000000e+00 : f32
    %720 = vector.broadcast %cst_487 : f32 to vector<8x32xf32>
    %721 = arith.addf %720, %719 : vector<8x32xf32>
    %722 = arith.divf %720, %721 : vector<8x32xf32>
    %723 = arith.negf %701 : vector<8x32xf32>
    %724 = math.exp %723 : vector<8x32xf32>
    %cst_488 = arith.constant 1.000000e+00 : f32
    %725 = vector.broadcast %cst_488 : f32 to vector<8x32xf32>
    %726 = arith.addf %725, %724 : vector<8x32xf32>
    %727 = arith.divf %725, %726 : vector<8x32xf32>
    %728 = math.tanh %709 : vector<8x32xf32>
    %729 = arith.negf %717 : vector<8x32xf32>
    %730 = math.exp %729 : vector<8x32xf32>
    %cst_489 = arith.constant 1.000000e+00 : f32
    %731 = vector.broadcast %cst_489 : f32 to vector<8x32xf32>
    %732 = arith.addf %731, %730 : vector<8x32xf32>
    %733 = arith.divf %731, %732 : vector<8x32xf32>
    %734 = arith.mulf %727, %638 : vector<8x32xf32>
    %735 = arith.mulf %722, %728 : vector<8x32xf32>
    %736 = arith.addf %734, %735 : vector<8x32xf32>
    %737 = math.tanh %736 : vector<8x32xf32>
    %738 = arith.mulf %733, %737 : vector<8x32xf32>
    %c0_490 = arith.constant 0 : index
    %c56 = arith.constant 56 : index
    %c0_491 = arith.constant 0 : index
    %739 = vector.load %arg4[%c0_490, %c56, %c0_491] : memref<4x64x32xf32, #tpu.memory_space<vmem>>, vector<1x8x32xf32>
    %740 = vector.shape_cast %739 : vector<1x8x32xf32> to vector<8x32xf32>
    %c4_492 = arith.constant 4 : index
    %c0_493 = arith.constant 0 : index
    %c0_494 = arith.constant 0 : index
    %741 = vector.load %arg1[%c4_492, %c0_493, %c0_494] : memref<16x32x32xf32, #tpu.memory_space<vmem>>, vector<1x32x32xf32>
    %742 = vector.shape_cast %741 : vector<1x32x32xf32> to vector<32x32xf32>
    %cst_495 = arith.constant dense<0.000000e+00> : vector<8x32xf32>
    %743 = tpu.matmul %685, %742, %cst_495 {dimension_numbers = #tpu.dot_dimension_numbers<[1], [0], [0], [1], [0, 0, 1, 1], [], []>} : vector<8x32xf32>, vector<32x32xf32>, vector<8x32xf32> -> vector<8x32xf32>
    %744 = arith.addf %740, %743 : vector<8x32xf32>
    %c1_496 = arith.constant 1 : index
    %c56_497 = arith.constant 56 : index
    %c0_498 = arith.constant 0 : index
    %745 = vector.load %arg4[%c1_496, %c56_497, %c0_498] : memref<4x64x32xf32, #tpu.memory_space<vmem>>, vector<1x8x32xf32>
    %746 = vector.shape_cast %745 : vector<1x8x32xf32> to vector<8x32xf32>
    %c5_499 = arith.constant 5 : index
    %c0_500 = arith.constant 0 : index
    %c0_501 = arith.constant 0 : index
    %747 = vector.load %arg1[%c5_499, %c0_500, %c0_501] : memref<16x32x32xf32, #tpu.memory_space<vmem>>, vector<1x32x32xf32>
    %748 = vector.shape_cast %747 : vector<1x32x32xf32> to vector<32x32xf32>
    %cst_502 = arith.constant dense<0.000000e+00> : vector<8x32xf32>
    %749 = tpu.matmul %685, %748, %cst_502 {dimension_numbers = #tpu.dot_dimension_numbers<[1], [0], [0], [1], [0, 0, 1, 1], [], []>} : vector<8x32xf32>, vector<32x32xf32>, vector<8x32xf32> -> vector<8x32xf32>
    %750 = arith.addf %746, %749 : vector<8x32xf32>
    %c2_503 = arith.constant 2 : index
    %c56_504 = arith.constant 56 : index
    %c0_505 = arith.constant 0 : index
    %751 = vector.load %arg4[%c2_503, %c56_504, %c0_505] : memref<4x64x32xf32, #tpu.memory_space<vmem>>, vector<1x8x32xf32>
    %752 = vector.shape_cast %751 : vector<1x8x32xf32> to vector<8x32xf32>
    %c6_506 = arith.constant 6 : index
    %c0_507 = arith.constant 0 : index
    %c0_508 = arith.constant 0 : index
    %753 = vector.load %arg1[%c6_506, %c0_507, %c0_508] : memref<16x32x32xf32, #tpu.memory_space<vmem>>, vector<1x32x32xf32>
    %754 = vector.shape_cast %753 : vector<1x32x32xf32> to vector<32x32xf32>
    %cst_509 = arith.constant dense<0.000000e+00> : vector<8x32xf32>
    %755 = tpu.matmul %685, %754, %cst_509 {dimension_numbers = #tpu.dot_dimension_numbers<[1], [0], [0], [1], [0, 0, 1, 1], [], []>} : vector<8x32xf32>, vector<32x32xf32>, vector<8x32xf32> -> vector<8x32xf32>
    %756 = arith.addf %752, %755 : vector<8x32xf32>
    %c3_510 = arith.constant 3 : index
    %c56_511 = arith.constant 56 : index
    %c0_512 = arith.constant 0 : index
    %757 = vector.load %arg4[%c3_510, %c56_511, %c0_512] : memref<4x64x32xf32, #tpu.memory_space<vmem>>, vector<1x8x32xf32>
    %758 = vector.shape_cast %757 : vector<1x8x32xf32> to vector<8x32xf32>
    %c7_513 = arith.constant 7 : index
    %c0_514 = arith.constant 0 : index
    %c0_515 = arith.constant 0 : index
    %759 = vector.load %arg1[%c7_513, %c0_514, %c0_515] : memref<16x32x32xf32, #tpu.memory_space<vmem>>, vector<1x32x32xf32>
    %760 = vector.shape_cast %759 : vector<1x32x32xf32> to vector<32x32xf32>
    %cst_516 = arith.constant dense<0.000000e+00> : vector<8x32xf32>
    %761 = tpu.matmul %685, %760, %cst_516 {dimension_numbers = #tpu.dot_dimension_numbers<[1], [0], [0], [1], [0, 0, 1, 1], [], []>} : vector<8x32xf32>, vector<32x32xf32>, vector<8x32xf32> -> vector<8x32xf32>
    %762 = arith.addf %758, %761 : vector<8x32xf32>
    %763 = arith.negf %744 : vector<8x32xf32>
    %764 = math.exp %763 : vector<8x32xf32>
    %cst_517 = arith.constant 1.000000e+00 : f32
    %765 = vector.broadcast %cst_517 : f32 to vector<8x32xf32>
    %766 = arith.addf %765, %764 : vector<8x32xf32>
    %767 = arith.divf %765, %766 : vector<8x32xf32>
    %768 = arith.negf %750 : vector<8x32xf32>
    %769 = math.exp %768 : vector<8x32xf32>
    %cst_518 = arith.constant 1.000000e+00 : f32
    %770 = vector.broadcast %cst_518 : f32 to vector<8x32xf32>
    %771 = arith.addf %770, %769 : vector<8x32xf32>
    %772 = arith.divf %770, %771 : vector<8x32xf32>
    %773 = math.tanh %756 : vector<8x32xf32>
    %774 = arith.negf %762 : vector<8x32xf32>
    %775 = math.exp %774 : vector<8x32xf32>
    %cst_519 = arith.constant 1.000000e+00 : f32
    %776 = vector.broadcast %cst_519 : f32 to vector<8x32xf32>
    %777 = arith.addf %776, %775 : vector<8x32xf32>
    %778 = arith.divf %776, %777 : vector<8x32xf32>
    %779 = arith.mulf %772, %683 : vector<8x32xf32>
    %780 = arith.mulf %767, %773 : vector<8x32xf32>
    %781 = arith.addf %779, %780 : vector<8x32xf32>
    %782 = math.tanh %781 : vector<8x32xf32>
    %783 = arith.mulf %778, %782 : vector<8x32xf32>
    %c12_520 = arith.constant 12 : index
    %c0_521 = arith.constant 0 : index
    %c0_522 = arith.constant 0 : index
    %784 = vector.load %arg1[%c12_520, %c0_521, %c0_522] : memref<16x32x32xf32, #tpu.memory_space<vmem>>, vector<1x32x32xf32>
    %785 = vector.shape_cast %784 : vector<1x32x32xf32> to vector<32x32xf32>
    %cst_523 = arith.constant dense<0.000000e+00> : vector<8x32xf32>
    %786 = tpu.matmul %738, %785, %cst_523 {dimension_numbers = #tpu.dot_dimension_numbers<[1], [0], [0], [1], [0, 0, 1, 1], [], []>} : vector<8x32xf32>, vector<32x32xf32>, vector<8x32xf32> -> vector<8x32xf32>
    %787 = arith.addf %39, %786 : vector<8x32xf32>
    %c8_524 = arith.constant 8 : index
    %c0_525 = arith.constant 0 : index
    %c0_526 = arith.constant 0 : index
    %788 = vector.load %arg1[%c8_524, %c0_525, %c0_526] : memref<16x32x32xf32, #tpu.memory_space<vmem>>, vector<1x32x32xf32>
    %789 = vector.shape_cast %788 : vector<1x32x32xf32> to vector<32x32xf32>
    %cst_527 = arith.constant dense<0.000000e+00> : vector<8x32xf32>
    %790 = tpu.matmul %783, %789, %cst_527 {dimension_numbers = #tpu.dot_dimension_numbers<[1], [0], [0], [1], [0, 0, 1, 1], [], []>} : vector<8x32xf32>, vector<32x32xf32>, vector<8x32xf32> -> vector<8x32xf32>
    %791 = arith.addf %787, %790 : vector<8x32xf32>
    %c13_528 = arith.constant 13 : index
    %c0_529 = arith.constant 0 : index
    %c0_530 = arith.constant 0 : index
    %792 = vector.load %arg1[%c13_528, %c0_529, %c0_530] : memref<16x32x32xf32, #tpu.memory_space<vmem>>, vector<1x32x32xf32>
    %793 = vector.shape_cast %792 : vector<1x32x32xf32> to vector<32x32xf32>
    %cst_531 = arith.constant dense<0.000000e+00> : vector<8x32xf32>
    %794 = tpu.matmul %738, %793, %cst_531 {dimension_numbers = #tpu.dot_dimension_numbers<[1], [0], [0], [1], [0, 0, 1, 1], [], []>} : vector<8x32xf32>, vector<32x32xf32>, vector<8x32xf32> -> vector<8x32xf32>
    %795 = arith.addf %42, %794 : vector<8x32xf32>
    %c9_532 = arith.constant 9 : index
    %c0_533 = arith.constant 0 : index
    %c0_534 = arith.constant 0 : index
    %796 = vector.load %arg1[%c9_532, %c0_533, %c0_534] : memref<16x32x32xf32, #tpu.memory_space<vmem>>, vector<1x32x32xf32>
    %797 = vector.shape_cast %796 : vector<1x32x32xf32> to vector<32x32xf32>
    %cst_535 = arith.constant dense<0.000000e+00> : vector<8x32xf32>
    %798 = tpu.matmul %783, %797, %cst_535 {dimension_numbers = #tpu.dot_dimension_numbers<[1], [0], [0], [1], [0, 0, 1, 1], [], []>} : vector<8x32xf32>, vector<32x32xf32>, vector<8x32xf32> -> vector<8x32xf32>
    %799 = arith.addf %795, %798 : vector<8x32xf32>
    %c14_536 = arith.constant 14 : index
    %c0_537 = arith.constant 0 : index
    %c0_538 = arith.constant 0 : index
    %800 = vector.load %arg1[%c14_536, %c0_537, %c0_538] : memref<16x32x32xf32, #tpu.memory_space<vmem>>, vector<1x32x32xf32>
    %801 = vector.shape_cast %800 : vector<1x32x32xf32> to vector<32x32xf32>
    %cst_539 = arith.constant dense<0.000000e+00> : vector<8x32xf32>
    %802 = tpu.matmul %738, %801, %cst_539 {dimension_numbers = #tpu.dot_dimension_numbers<[1], [0], [0], [1], [0, 0, 1, 1], [], []>} : vector<8x32xf32>, vector<32x32xf32>, vector<8x32xf32> -> vector<8x32xf32>
    %803 = arith.addf %45, %802 : vector<8x32xf32>
    %c10_540 = arith.constant 10 : index
    %c0_541 = arith.constant 0 : index
    %c0_542 = arith.constant 0 : index
    %804 = vector.load %arg1[%c10_540, %c0_541, %c0_542] : memref<16x32x32xf32, #tpu.memory_space<vmem>>, vector<1x32x32xf32>
    %805 = vector.shape_cast %804 : vector<1x32x32xf32> to vector<32x32xf32>
    %cst_543 = arith.constant dense<0.000000e+00> : vector<8x32xf32>
    %806 = tpu.matmul %783, %805, %cst_543 {dimension_numbers = #tpu.dot_dimension_numbers<[1], [0], [0], [1], [0, 0, 1, 1], [], []>} : vector<8x32xf32>, vector<32x32xf32>, vector<8x32xf32> -> vector<8x32xf32>
    %807 = arith.addf %803, %806 : vector<8x32xf32>
    %c15_544 = arith.constant 15 : index
    %c0_545 = arith.constant 0 : index
    %c0_546 = arith.constant 0 : index
    %808 = vector.load %arg1[%c15_544, %c0_545, %c0_546] : memref<16x32x32xf32, #tpu.memory_space<vmem>>, vector<1x32x32xf32>
    %809 = vector.shape_cast %808 : vector<1x32x32xf32> to vector<32x32xf32>
    %cst_547 = arith.constant dense<0.000000e+00> : vector<8x32xf32>
    %810 = tpu.matmul %738, %809, %cst_547 {dimension_numbers = #tpu.dot_dimension_numbers<[1], [0], [0], [1], [0, 0, 1, 1], [], []>} : vector<8x32xf32>, vector<32x32xf32>, vector<8x32xf32> -> vector<8x32xf32>
    %811 = arith.addf %48, %810 : vector<8x32xf32>
    %c11_548 = arith.constant 11 : index
    %c0_549 = arith.constant 0 : index
    %c0_550 = arith.constant 0 : index
    %812 = vector.load %arg1[%c11_548, %c0_549, %c0_550] : memref<16x32x32xf32, #tpu.memory_space<vmem>>, vector<1x32x32xf32>
    %813 = vector.shape_cast %812 : vector<1x32x32xf32> to vector<32x32xf32>
    %cst_551 = arith.constant dense<0.000000e+00> : vector<8x32xf32>
    %814 = tpu.matmul %783, %813, %cst_551 {dimension_numbers = #tpu.dot_dimension_numbers<[1], [0], [0], [1], [0, 0, 1, 1], [], []>} : vector<8x32xf32>, vector<32x32xf32>, vector<8x32xf32> -> vector<8x32xf32>
    %815 = arith.addf %811, %814 : vector<8x32xf32>
    %816 = arith.negf %791 : vector<8x32xf32>
    %817 = math.exp %816 : vector<8x32xf32>
    %cst_552 = arith.constant 1.000000e+00 : f32
    %818 = vector.broadcast %cst_552 : f32 to vector<8x32xf32>
    %819 = arith.addf %818, %817 : vector<8x32xf32>
    %820 = arith.divf %818, %819 : vector<8x32xf32>
    %821 = arith.negf %799 : vector<8x32xf32>
    %822 = math.exp %821 : vector<8x32xf32>
    %cst_553 = arith.constant 1.000000e+00 : f32
    %823 = vector.broadcast %cst_553 : f32 to vector<8x32xf32>
    %824 = arith.addf %823, %822 : vector<8x32xf32>
    %825 = arith.divf %823, %824 : vector<8x32xf32>
    %826 = math.tanh %807 : vector<8x32xf32>
    %827 = arith.negf %815 : vector<8x32xf32>
    %828 = math.exp %827 : vector<8x32xf32>
    %cst_554 = arith.constant 1.000000e+00 : f32
    %829 = vector.broadcast %cst_554 : f32 to vector<8x32xf32>
    %830 = arith.addf %829, %828 : vector<8x32xf32>
    %831 = arith.divf %829, %830 : vector<8x32xf32>
    %832 = arith.mulf %825, %736 : vector<8x32xf32>
    %833 = arith.mulf %820, %826 : vector<8x32xf32>
    %834 = arith.addf %832, %833 : vector<8x32xf32>
    %835 = math.tanh %834 : vector<8x32xf32>
    %836 = arith.mulf %831, %835 : vector<8x32xf32>
    %c8_555 = arith.constant 8 : index
    %c0_556 = arith.constant 0 : index
    %837 = vector.load %arg2[%c8_555, %c0_556] : memref<80x32xf32, #tpu.memory_space<vmem>>, vector<32x32xf32>
    %c40_557 = arith.constant 40 : index
    %c0_558 = arith.constant 0 : index
    %838 = vector.load %arg2[%c40_557, %c0_558] : memref<80x32xf32, #tpu.memory_space<vmem>>, vector<1x32xf32>
    %c41 = arith.constant 41 : index
    %c0_559 = arith.constant 0 : index
    %839 = vector.load %arg2[%c41, %c0_559] : memref<80x32xf32, #tpu.memory_space<vmem>>, vector<1x32xf32>
    %c48_560 = arith.constant 48 : index
    %c0_561 = arith.constant 0 : index
    %840 = vector.load %arg2[%c48_560, %c0_561] : memref<80x32xf32, #tpu.memory_space<vmem>>, vector<32x32xf32>
    %cst_562 = arith.constant dense<0.000000e+00> : vector<8x32xf32>
    %841 = tpu.matmul %836, %837, %cst_562 {dimension_numbers = #tpu.dot_dimension_numbers<[1], [0], [0], [1], [0, 0, 1, 1], [], []>} : vector<8x32xf32>, vector<32x32xf32>, vector<8x32xf32> -> vector<8x32xf32>
    %842 = vector.broadcast %838 : vector<1x32xf32> to vector<8x32xf32>
    %843 = arith.addf %841, %842 : vector<8x32xf32>
    %cst_563 = arith.constant 0.000000e+00 : f32
    %844 = vector.broadcast %cst_563 : f32 to vector<8x32xf32>
    %845 = arith.maximumf %843, %844 : vector<8x32xf32>
    %cst_564 = arith.constant dense<0.000000e+00> : vector<8x32xf32>
    %846 = tpu.matmul %845, %840, %cst_564 {dimension_numbers = #tpu.dot_dimension_numbers<[1], [0], [0], [1], [0, 0, 1, 1], [], []>} : vector<8x32xf32>, vector<32x32xf32>, vector<8x32xf32> -> vector<8x32xf32>
    %847 = vector.broadcast %839 : vector<1x32xf32> to vector<8x32xf32>
    %848 = arith.addf %846, %847 : vector<8x32xf32>
    %849 = vector.extract_strided_slice %848 {offsets = [0, 0], sizes = [8, 5], strides = [1, 1]} : vector<8x32xf32> to vector<8x5xf32>
    %cst_565 = arith.constant dense<0xFF800000> : vector<8xf32>
    %850 = vector.multi_reduction <maximumf>, %849, %cst_565 [1] : vector<8x5xf32> to vector<8xf32>
    %851 = vector.shape_cast %850 : vector<8xf32> to vector<8x1xf32>
    %852 = vector.broadcast %851 : vector<8x1xf32> to vector<8x5xf32>
    %853 = arith.subf %849, %852 : vector<8x5xf32>
    %854 = math.exp %853 : vector<8x5xf32>
    %cst_566 = arith.constant dense<0.000000e+00> : vector<8xf32>
    %855 = vector.multi_reduction <add>, %854, %cst_566 [1] : vector<8x5xf32> to vector<8xf32>
    %856 = vector.shape_cast %855 : vector<8xf32> to vector<8x1xf32>
    %857 = tpu.reciprocal %856 {approx = true} : vector<8x1xf32> -> vector<8x1xf32>
    %858 = arith.mulf %856, %857 : vector<8x1xf32>
    %cst_567 = arith.constant 2.000000e+00 : f32
    %859 = vector.broadcast %cst_567 : f32 to vector<8x1xf32>
    %860 = arith.subf %859, %858 : vector<8x1xf32>
    %861 = arith.mulf %857, %860 : vector<8x1xf32>
    %862 = vector.broadcast %861 : vector<8x1xf32> to vector<8x5xf32>
    %863 = arith.mulf %854, %862 : vector<8x5xf32>
    %cst_568 = arith.constant 5.000000e-02 : f32
    %cst_569 = arith.constant 4.000000e-01 : f32
    %864 = vector.broadcast %cst_568 : f32 to vector<8x5xf32>
    %865 = arith.maximumf %864, %863 : vector<8x5xf32>
    %866 = vector.broadcast %cst_569 : f32 to vector<8x5xf32>
    %867 = arith.minimumf %866, %865 : vector<8x5xf32>
    %cst_570 = arith.constant dense<0.000000e+00> : vector<8xf32>
    %868 = vector.multi_reduction <add>, %867, %cst_570 [1] : vector<8x5xf32> to vector<8xf32>
    %869 = vector.shape_cast %868 : vector<8xf32> to vector<8x1xf32>
    %870 = tpu.reciprocal %869 {approx = true} : vector<8x1xf32> -> vector<8x1xf32>
    %871 = arith.mulf %869, %870 : vector<8x1xf32>
    %cst_571 = arith.constant 2.000000e+00 : f32
    %872 = vector.broadcast %cst_571 : f32 to vector<8x1xf32>
    %873 = arith.subf %872, %871 : vector<8x1xf32>
    %874 = arith.mulf %870, %873 : vector<8x1xf32>
    %875 = vector.broadcast %874 : vector<8x1xf32> to vector<8x5xf32>
    %876 = arith.mulf %867, %875 : vector<8x5xf32>
    %c0_572 = arith.constant 0 : index
    %c0_573 = arith.constant 0 : index
    %877 = vector.load %arg3[%c0_572, %c0_573] : memref<8x5xf32, #tpu.memory_space<vmem>>, vector<8x5xf32>
    tpu.vector_store %arg3[%c0_572, %c0_573], %876 {strides = array<i32>} : memref<8x5xf32, #tpu.memory_space<vmem>>, vector<8x5xf32>,
    return
  }
}

</mosaic_0001>

<bundles_post_ra>
// kernel: hybrid_portfolio_forward.1
= control target key start
LH: loop header
LB: loop body
LE: loop exit
PB: predicated region body
PF: predicated region fallthrough
CT: control target
= control target key end

     0   :  { %8 = vsyncpa [#allocation4], 0  ;;  %s10920_s12 = smov [#allocation3]   ;;  %s11963_s0 = inlined_call_operand.vmem [shape: f32[64,8], index: 0, kind: input, shape index: {}]   ;;  %s11964_s1 = inlined_call_operand.hbm [shape: f32[16,32,32], index: 1, kind: input, shape index: {}]   ;;  %s11965_s2 = inlined_call_operand.vmem [shape: f32[80,32], index: 2, kind: input, shape index: {}]   ;;  %s11966_s3 = inlined_call_operand.vmem [shape: f32[8,5], index: 3, kind: output, shape index: {}]  }
   0x1   :  { %s16_s13 = sshll.u32 %s10920_s12, 4  ;;  %s10896_s16 = scalar_lea.hbm %s11964_s1, 8192  ;;  %s17_s13 = int_to_ptr.vmem [resolvable:$true] %s16_s13 }
   0x2   :  { %p10897_p0 = scmp.ne.s32.totalorder %s11964_s1, %s10896_s16  ;;  %p10900_p1 = scmp.lt.u32.totalorder %s10896_s16, %s11964_s1 }
   0x4   :  { %p10902_p2 = pnand %p10900_p1, %p10897_p0 }
   0x6   :  { %10905 = shalt.err (!%p10902_p2)
}
   0x7   :  { %s10906_s21 = scalar_lea.vmem %s17_s13, 8192  ;;  %p10911_p4 = scmp.lt.s32.totalorder %s17_s13, %s17_s13 }
   0x8   :  { %p10907_p3 = scmp.ne.s32.totalorder %s17_s13, %s10906_s21  ;;  %p10912_p5 = scmp.lt.s32.totalorder %s10906_s21, %s10906_s21 }
   0xa   :  { %p10913_p6 = por %p10912_p5, %p10911_p4 }
   0xc   :  { %p10914_p7 = pnand %p10913_p6, %p10907_p3 }
   0xe   :  { %10917 = shalt.err (!%p10914_p7)
}
   0xf   :  { %s10921_s22 = smov 128   ;;  %s10922_s23 = smov 8  }
  0x10   :  { %22 = dma.hbm_to_vmem [thread:$0]  %s11964_s1, 8192, %s17_s13, [#allocation4], %s10921_s22, %s10921_s22, %s10922_s23  }
  0x11   :  { %10918 = dma.done.wait [#allocation4], 8192  }
  0x12   :  { %10919 = vsyncadd [#allocation4], 4294959104  ;;  %vm42_vm0 = vcmask 64512   ;;  %v36_v0 = vld [vmem:[#allocation3] sm:$0xff]  ;;  %v29_v3 = vld [vmem:[%s11963_s0 + $0x8] sm:$0xff]  ;;  %v10923_v11 = vmov 0.0|0.0  }
  0x13   :  { %v182_v1 = vld [vmem:[#allocation3 + $0x20] sm:$0xff]  ;;  %8806 = vmatprep.subr.mxu0 %v36_v0  ;;  %v30_v6 = vld [vmem:[%s11963_s0 + $0x10] sm:$0xff]  ;;  %v31_v7 = vld [vmem:[%s11963_s0 + $0x18] sm:$0xff]  ;;  %vm10924_vm1 = vmmov 0   ;;  %v10925_v29 = vmov 0.0   ;;  %vm172_vm2 = vcmask 261120  }
  0x14   :  { %v28_v2 = vld [vmem:[%s11963_s0] sm:$0xff]  ;;  %8820 = vmatprep.subr.mxu1 %v182_v1  ;;  %8807 = vmatpush3.msra.mxu0 %v36_v0  ;;  %v33_v9 = vld [vmem:[%s11963_s0 + $0x28] sm:$0xff]  ;;  %v34_v10 = vld [vmem:[%s11963_s0 + $0x30] sm:$0xff]  ;;  %vm8069_vm3 = vcmask 39936  }
  0x15   :  { %8808 = vmatprep.mubr.msk.f32.mxu0 %vm42_vm0, %v28_v2  ;;  %v303_v4 = vld [vmem:[#allocation3 + $0x40] sm:$0xff]  ;;  %8821 = vmatpush3.msra.mxu1 %v182_v1  ;;  %v35_v12 = vld [vmem:[%s11963_s0 + $0x38] sm:$0xff]  ;;  %v567_v14 = vld [vmem:[#allocation3 + $0x88] sm:$0xff] }
  0x16   :  { %v424_v5 = vld [vmem:[#allocation3 + $0x60] sm:$0xff]  ;;  %8822 = vmatprep.mubr.msk.f32.mxu1 %vm42_vm0, %v28_v2  ;;  %8809 = vmatmul.mubr.msk.f32.vlgmr.msra.gmra.mrb[0].mxu0 %vm42_vm0, %v29_v3  ;;  %v647_v16 = vld [vmem:[#allocation3 + $0xa8] sm:$0xff]  ;;  %v568_v19 = vld [vmem:[#allocation3 + $0x90] sm:$0xff] }
  0x17   :  { %8823 = vmatmul.mubr.msk.f32.vlgmr.msra.gmra.mrb[0].mxu1 %vm42_vm0, %v29_v3  ;;  %8834 = vmatprep.subr.mxu0 %v303_v4  ;;  %v32_v8 = vld [vmem:[%s11963_s0 + $0x20] sm:$0xff]  ;;  %v569_v20 = vld [vmem:[#allocation3 + $0x98] sm:$0xff]  ;;  %v648_v21 = vld [vmem:[#allocation3 + $0xb0] sm:$0xff] }
  0x18   :  { %8848 = vmatprep.subr.mxu1 %v424_v5  ;;  %8835 = vmatpush3.msra.mxu0 %v303_v4  ;;  %v566_v13 = vld [vmem:[#allocation3 + $0x80] sm:$0xff]  ;;  %v649_v22 = vld [vmem:[#allocation3 + $0xb8] sm:$0xff]  ;;  %v11012_v23 = vpack.c.bf16 %v569_v20, %v568_v19  ;;  %v724_v26 = vld [vmem:[#allocation3 + $0xc8] sm:$0xff] }
  0x19   :  { %8849 = vmatpush3.msra.mxu1 %v424_v5  ;;  %8811 = vmatprep.mubr.msk.f32.mxu0 %vm42_vm0, %v30_v6  ;;  %v646_v15 = vld [vmem:[#allocation3 + $0xa0] sm:$0xff]  ;;  %v11002_v17 = vpack.c.bf16 %v567_v14, %v566_v13  ;;  %v11014_v24 = vpack.c.bf16 %v649_v22, %v648_v21  ;;  %v801_v28 = vld [vmem:[#allocation3 + $0xe8] sm:$0xff]  ;;  %v725_v32 = vld [vmem:[#allocation3 + $0xd0] sm:$0xff] }
  0x1a   :  { %8825 = vmatprep.mubr.msk.f32.mxu1 %vm42_vm0, %v30_v6  ;;  %8812 = vmatmul.mubr.msk.f32.gmra.mrb[2].mxu0 %vm42_vm0, %v31_v7  ;;  %v11004_v18 = vpack.c.bf16 %v647_v16, %v646_v15  ;;  %v723_v25 = vld [vmem:[#allocation3 + $0xc0] sm:$0xff]  ;;  %v726_v33 = vld [vmem:[#allocation3 + $0xd8] sm:$0xff]  ;;  %v802_v34 = vld [vmem:[#allocation3 + $0xf0] sm:$0xff] }
  0x1b   :  { %8826 = vmatmul.mubr.msk.f32.gmra.mrb[2].mxu1 %vm42_vm0, %v31_v7  ;;  %8814 = vmatprep.mubr.msk.f32.mxu0 %vm42_vm0, %v32_v8  ;;  %v800_v27 = vld [vmem:[#allocation3 + $0xe0] sm:$0xff]  ;;  %v11036_v30 = vpack.c.bf16 %v724_v26, %v723_v25  ;;  %v803_v35 = vld [vmem:[#allocation3 + $0xf8] sm:$0xff]  ;;  %v11044_v36 = vpack.c.bf16 %v726_v33, %v725_v32  ;;  %v901_v39 = vld [vmem:[#allocation3 + $0x188] sm:$0xff] }
  0x1c   :  { %8828 = vmatprep.mubr.msk.f32.mxu1 %vm42_vm0, %v32_v8  ;;  %9940 = vmatprep.subr.bf16.mxu0 %v10923_v11  ;;  %v11038_v31 = vpack.c.bf16 %v801_v28, %v800_v27  ;;  %v11046_v37 = vpack.c.bf16 %v803_v35, %v802_v34  ;;  %v900_v38 = vld [vmem:[#allocation3 + $0x180] sm:$0xff]  ;;  %v1056_v42 = vld [vmem:[#allocation3 + $0x1a8] sm:$0xff]  ;;  %v902_v44 = vld [vmem:[#allocation3 + $0x190] sm:$0xff] }
  0x1d   :  { %9946 = vmatprep.subr.bf16.mxu1 %v10923_v11  ;;  %v1055_v40 = vld [vmem:[#allocation3 + $0x1a0] sm:$0xff]  ;;  %v11064_v41 = vpack.c.bf16 %v901_v39, %v900_v38  ;;  %v903_v45 = vld [vmem:[#allocation3 + $0x198] sm:$0xff]  ;;  %v1057_v46 = vld [vmem:[#allocation3 + $0x1b0] sm:$0xff] }
  0x1e   :  { %8815 = vmatmul.mubr.msk.f32.gmra.mrb[4].mxu0 %vm42_vm0, %v33_v9  ;;  %v11066_v43 = vpack.c.bf16 %v1056_v42, %v1055_v40  ;;  %v11072_v47 = vpack.c.bf16 %v903_v45, %v902_v44  ;;  %v1058_v48 = vld [vmem:[#allocation3 + $0x1b8] sm:$0xff]  ;;  %v976_v50 = vld [vmem:[#allocation3 + $0x100] sm:$0xff]  ;;  %v977_v51 = vld [vmem:[#allocation3 + $0x108] sm:$0xff] }
  0x1f   :  { %8829 = vmatmul.mubr.msk.f32.gmra.mrb[4].mxu1 %vm42_vm0, %v33_v9  ;;  %8817 = vmatprep.mubr.msk.f32.mxu0 %vm42_vm0, %v34_v10  ;;  %v11074_v49 = vpack.c.bf16 %v1058_v48, %v1057_v46  ;;  %v1131_v52 = vld [vmem:[#allocation3 + $0x120] sm:$0xff]  ;;  %v11080_v53 = vpack.c.bf16 %v977_v51, %v976_v50  ;;  %v1132_v54 = vld [vmem:[#allocation3 + $0x128] sm:$0xff]  ;;  %v978_v56 = vld [vmem:[#allocation3 + $0x110] sm:$0xff] }
  0x20   :  { %8831 = vmatprep.mubr.msk.f32.mxu1 %vm42_vm0, %v34_v10  ;;  %v11083_v55 = vpack.c.bf16 %v1132_v54, %v1131_v52  ;;  %v979_v57 = vld [vmem:[#allocation3 + $0x118] sm:$0xff]  ;;  %v1133_v58 = vld [vmem:[#allocation3 + $0x130] sm:$0xff]  ;;  %v8100_v62 = vld [vmem:[%s11965_s2] ss:$0 sm:$0xff] }
  0x21   :  { %v11090_v59 = vpack.c.bf16 %v979_v57, %v978_v56  ;;  %v1134_v60 = vld [vmem:[#allocation3 + $0x138] sm:$0xff]  ;;  %v8109_v63 = vld [vmem:[%s11965_s2 + $0x1] ss:$0 sm:$0xff]  ;;  %v8118_v44 = vld [vmem:[%s11965_s2 + $0x2] ss:$0 sm:$0xff] }
  0x22   :  { %8818 = vmatmul.mubr.msk.f32.gmra.mrb[6].mxu0 %vm42_vm0, %v35_v12  ;;  %v11094_v61 = vpack.c.bf16 %v1134_v60, %v1133_v58  ;;  %v8127_v45 = vld [vmem:[%s11965_s2 + $0x3] ss:$0 sm:$0xff] }
  0x23   :  { %8832 = vmatmul.mubr.msk.f32.gmra.mrb[6].mxu1 %vm42_vm0, %v35_v12  ;;  %8836 = vmatprep.mubr.msk.f32.mxu0 %vm42_vm0, %v28_v2 }
  0x24   :  { %8850 = vmatprep.mubr.msk.f32.mxu1 %vm42_vm0, %v28_v2 }
  0x26   :  { %8837 = vmatmul.mubr.msk.f32.vlgmr.msra.gmra.mrb[8].mxu0 %vm42_vm0, %v29_v3 }
  0x27   :  { %8851 = vmatmul.mubr.msk.f32.vlgmr.msra.gmra.mrb[8].mxu1 %vm42_vm0, %v29_v3  ;;  %9942 = vmatpush3.bf16.msra.mxu0 %v11002_v17 }
  0x28   :  { %9948 = vmatpush3.bf16.msra.mxu1 %v11004_v18  ;;  %8839 = vmatprep.mubr.msk.f32.mxu0 %vm42_vm0, %v30_v6 }
  0x29   :  { %8853 = vmatprep.mubr.msk.f32.mxu1 %vm42_vm0, %v30_v6  ;;  %9943 = vmatprep.subr.bf16.mxu0 %v10923_v11 }
  0x2a   :  { %9949 = vmatprep.subr.bf16.mxu1 %v10923_v11  ;;  %8840 = vmatmul.mubr.msk.f32.gmra.mrb[10].mxu0 %vm42_vm0, %v31_v7 }
  0x2b   :  { %8854 = vmatmul.mubr.msk.f32.gmra.mrb[10].mxu1 %vm42_vm0, %v31_v7  ;;  %8842 = vmatprep.mubr.msk.f32.mxu0 %vm42_vm0, %v32_v8 }
  0x2c   :  { %8856 = vmatprep.mubr.msk.f32.mxu1 %vm42_vm0, %v32_v8  ;;  %9945 = vmatpush3.bf16.msra.mxu0 %v11012_v23 }
  0x2d   :  { %9951 = vmatpush3.bf16.msra.mxu1 %v11014_v24  ;;  %9952 = vmatprep.subr.bf16.mxu0 %v10923_v11 }
  0x2e   :  { %9958 = vmatprep.subr.bf16.mxu1 %v10923_v11  ;;  %8843 = vmatmul.mubr.msk.f32.gmra.mrb[12].mxu0 %vm42_vm0, %v33_v9 }
  0x2f   :  { %8857 = vmatmul.mubr.msk.f32.gmra.mrb[12].mxu1 %vm42_vm0, %v33_v9  ;;  %8845 = vmatprep.mubr.msk.f32.mxu0 %vm42_vm0, %v34_v10 }
  0x30   :  { %8859 = vmatprep.mubr.msk.f32.mxu1 %vm42_vm0, %v34_v10 }
  0x32   :  { %8846 = vmatmul.mubr.msk.f32.gmra.mrb[14].mxu0 %vm42_vm0, %v35_v12 }
  0x33   :  { %8860 = vmatmul.mubr.msk.f32.gmra.mrb[14].mxu1 %vm42_vm0, %v35_v12  ;;  %8870 = vmatprep.mubr.msk.f32.mxu0 %vm10924_vm1, %v10925_v29 }
  0x34   :  { %8881 = vmatprep.mubr.msk.f32.mxu1 %vm10924_vm1, %v10925_v29 }
  0x36   :  { %8871 = vmatmul.mubr.f32.vlgmr.msra.gmra.mrb[16].mxu0 %v10925_v29 }
  0x37   :  { %8882 = vmatmul.mubr.f32.vlgmr.msra.gmra.mrb[16].mxu1 %v10925_v29  ;;  %9954 = vmatpush3.bf16.msra.mxu0 %v11036_v30 }
  0x38   :  { %9960 = vmatpush3.bf16.msra.mxu1 %v11038_v31  ;;  %9955 = vmatprep.subr.bf16.mxu0 %v10923_v11 }
  0x39   :  { %9961 = vmatprep.subr.bf16.mxu1 %v10923_v11  ;;  %8892 = vmatprep.mubr.msk.f32.mxu0 %vm10924_vm1, %v10925_v29 }
  0x3a   :  { %8903 = vmatprep.mubr.msk.f32.mxu1 %vm10924_vm1, %v10925_v29 }
  0x3b   :  { %9957 = vmatpush3.bf16.msra.mxu0 %v11044_v36 }
  0x3c   :  { %9963 = vmatpush3.bf16.msra.mxu1 %v11046_v37  ;;  %9964 = vmatprep.subr.bf16.mxu0 %v10923_v11 }
  0x3d   :  { %9976 = vmatprep.subr.bf16.mxu1 %v10923_v11 }
  0x3e   :  { %8893 = vmatmul.mubr.f32.vlgmr.msra.gmra.mrb[18].mxu0 %v10925_v29 }
  0x3f   :  { %8904 = vmatmul.mubr.f32.vlgmr.msra.gmra.mrb[18].mxu1 %v10925_v29  ;;  %8914 = vmatprep.mubr.msk.f32.mxu0 %vm10924_vm1, %v10925_v29 }
  0x40   :  { %8936 = vmatprep.mubr.msk.f32.mxu1 %vm10924_vm1, %v10925_v29  ;;  %9966 = vmatpush3.bf16.msra.mxu0 %v11064_v41 }
  0x41   :  { %9978 = vmatpush3.bf16.msra.mxu1 %v11066_v43  ;;  %9967 = vmatprep.subr.bf16.mxu0 %v10923_v11 }
  0x42   :  { %9979 = vmatprep.subr.bf16.mxu1 %v10923_v11 }
  0x44   :  { %9969 = vmatpush3.bf16.msra.mxu0 %v11072_v47 }
  0x45   :  { %9981 = vmatpush3.bf16.msra.mxu1 %v11074_v49  ;;  %9970 = vmatprep.subr.bf16.mxu0 %v10923_v11 }
  0x46   :  { %9982 = vmatprep.subr.bf16.mxu1 %v10923_v11 }
  0x47   :  { %8915 = vmatmul.mubr.f32.vlgmr.msra.gmra.mrb[20].mxu0 %v10925_v29 }
  0x48   :  { %9972 = vmatpush3.bf16.msra.mxu0 %v11080_v53  ;;  %8937 = vmatmul.mubr.f32.vlgmr.msra.gmra.mrb[20].mxu1 %v10925_v29 }
  0x49   :  { %9984 = vmatpush3.bf16.msra.mxu1 %v11083_v55  ;;  %9973 = vmatprep.subr.bf16.mxu0 %v10923_v11 }
  0x4a   :  { %9985 = vmatprep.subr.bf16.mxu1 %v10923_v11  ;;  %8925 = vmatprep.mubr.msk.f32.mxu0 %vm10924_vm1, %v10925_v29 }
  0x4b   :  { %8947 = vmatprep.mubr.msk.f32.mxu1 %vm10924_vm1, %v10925_v29 }
  0x4c   :  { %9975 = vmatpush3.bf16.msra.mxu0 %v11090_v59 }
  0x4d   :  { %9987 = vmatpush3.bf16.msra.mxu1 %v11094_v61  ;;  %9988 = vmatprep.subr.bf16.mxu0 %v10923_v11 }
  0x4e   :  { %10000 = vmatprep.subr.bf16.mxu1 %v10923_v11 }
  0xe9   :  { %v8810_v0 = vpop.f32.mrb[0].mxu0 }
  0xea   :  { %v8824_v1 = vpop.f32.mrb[0].mxu1  ;;  %v139_v2 = vadd.f32 %v8810_v0, %v8100_v62  ;;  %v133_v4 = vpop.f32.mrb[1].mxu0 }
  0xeb   :  { %v260_v3 = vadd.f32 %v8824_v1, %v8109_v63  ;;  %v254_v5 = vpop.f32.mrb[1].mxu1  ;;  %v134_v6 = vadd.f32 %v8100_v62, %v133_v4 }
  0xec   :  { %v255_v7 = vadd.f32 %v8109_v63, %v254_v5  ;;  %174 = vst.msk [vmem:[#allocation2 + $0x8] sm:$0xff] %vm172_vm2, %v139_v2 }
  0xed   :  { %295 = vst.msk [vmem:[#allocation2 + $0x48] sm:$0xff] %vm172_vm2, %v260_v3  ;;  %173 = vst.msk [vmem:[#allocation2] sm:$0xff] %vm172_vm2, %v134_v6  ;;  %v8813_v8 = vpop.f32.mrb[2].mxu0 }
  0xee   :  { %294 = vst.msk [vmem:[#allocation2 + $0x40] sm:$0xff] %vm172_vm2, %v255_v7  ;;  %v8827_v9 = vpop.f32.mrb[2].mxu1  ;;  %v149_v10 = vadd.f32 %v8813_v8, %v8100_v62  ;;  %v143_v13 = vpop.f32.mrb[3].mxu0 }
  0xef   :  { %v270_v12 = vadd.f32 %v8827_v9, %v8109_v63  ;;  %v264_v14 = vpop.f32.mrb[3].mxu1  ;;  %v144_v15 = vadd.f32 %v8100_v62, %v143_v13 }
  0xf0   :  { %v265_v16 = vadd.f32 %v8109_v63, %v264_v14  ;;  %176 = vst.msk [vmem:[#allocation2 + $0x18] sm:$0xff] %vm172_vm2, %v149_v10 }
  0xf1   :  { %297 = vst.msk [vmem:[#allocation2 + $0x58] sm:$0xff] %vm172_vm2, %v270_v12  ;;  %175 = vst.msk [vmem:[#allocation2 + $0x10] sm:$0xff] %vm172_vm2, %v144_v15  ;;  %v8816_v19 = vpop.f32.mrb[4].mxu0 }
  0xf2   :  { %296 = vst.msk [vmem:[#allocation2 + $0x50] sm:$0xff] %vm172_vm2, %v265_v16  ;;  %v8830_v20 = vpop.f32.mrb[4].mxu1  ;;  %v159_v21 = vadd.f32 %v8816_v19, %v8100_v62  ;;  %v153_v25 = vpop.f32.mrb[5].mxu0 }
  0xf3   :  { %v280_v22 = vadd.f32 %v8830_v20, %v8109_v63  ;;  %v274_v26 = vpop.f32.mrb[5].mxu1  ;;  %v154_v27 = vadd.f32 %v8100_v62, %v153_v25 }
  0xf4   :  { %v275_v28 = vadd.f32 %v8109_v63, %v274_v26  ;;  %178 = vst.msk [vmem:[#allocation2 + $0x28] sm:$0xff] %vm172_vm2, %v159_v21  ;;  %v564_v25 = vld [vmem:[#allocation2] sm:$0xff] }
  0xf5   :  { %299 = vst.msk [vmem:[#allocation2 + $0x68] sm:$0xff] %vm172_vm2, %v280_v22  ;;  %177 = vst.msk [vmem:[#allocation2 + $0x20] sm:$0xff] %vm172_vm2, %v154_v27  ;;  %v8819_v32 = vpop.f32.mrb[6].mxu0  ;;  %v644_v27 = vld [vmem:[#allocation2 + $0x40] sm:$0xff] }
  0xf6   :  { %298 = vst.msk [vmem:[#allocation2 + $0x60] sm:$0xff] %vm172_vm2, %v275_v28  ;;  %v8833_v33 = vpop.f32.mrb[6].mxu1  ;;  %v169_v34 = vadd.f32 %v8819_v32, %v8100_v62  ;;  %v163_v38 = vpop.f32.mrb[7].mxu0 }
  0xf7   :  { %v290_v35 = vadd.f32 %v8833_v33, %v8109_v63  ;;  %v284_v39 = vpop.f32.mrb[7].mxu1  ;;  %v164_v40 = vadd.f32 %v8100_v62, %v163_v38 }
  0xf8   :  { %v285_v42 = vadd.f32 %v8109_v63, %v284_v39  ;;  %180 = vst.msk [vmem:[#allocation2 + $0x38] sm:$0xff] %vm172_vm2, %v169_v34 }
  0xf9   :  { %301 = vst.msk [vmem:[#allocation2 + $0x78] sm:$0xff] %vm172_vm2, %v290_v35  ;;  %179 = vst.msk [vmem:[#allocation2 + $0x30] sm:$0xff] %vm172_vm2, %v164_v40  ;;  %v8838_v46 = vpop.f32.mrb[8].mxu0 }
  0xfa   :  { %300 = vst.msk [vmem:[#allocation2 + $0x70] sm:$0xff] %vm172_vm2, %v285_v42  ;;  %v8852_v48 = vpop.f32.mrb[8].mxu1  ;;  %v381_v50 = vadd.f32 %v8838_v46, %v8118_v44  ;;  %v375_v52 = vpop.f32.mrb[9].mxu0 }
  0xfb   :  { %v502_v51 = vadd.f32 %v8852_v48, %v8127_v45  ;;  %v496_v54 = vpop.f32.mrb[9].mxu1  ;;  %v376_v56 = vadd.f32 %v8118_v44, %v375_v52 }
  0xfc   :  { %v497_v57 = vadd.f32 %v8127_v45, %v496_v54  ;;  %416 = vst.msk [vmem:[#allocation2 + $0x88] sm:$0xff] %vm172_vm2, %v381_v50 }
  0xfd   :  { %537 = vst.msk [vmem:[#allocation2 + $0xc8] sm:$0xff] %vm172_vm2, %v502_v51  ;;  %415 = vst.msk [vmem:[#allocation2 + $0x80] sm:$0xff] %vm172_vm2, %v376_v56  ;;  %v8841_v58 = vpop.f32.mrb[10].mxu0 }
  0xfe   :  { %536 = vst.msk [vmem:[#allocation2 + $0xc0] sm:$0xff] %vm172_vm2, %v497_v57  ;;  %v8855_v60 = vpop.f32.mrb[10].mxu1  ;;  %v391_v62 = vadd.f32 %v8841_v58, %v8118_v44  ;;  %v385_v0 = vpop.f32.mrb[11].mxu0 }
  0xff   :  { %v512_v63 = vadd.f32 %v8855_v60, %v8127_v45  ;;  %v506_v1 = vpop.f32.mrb[11].mxu1  ;;  %v386_v2 = vadd.f32 %v8118_v44, %v385_v0 }
 0x100   :  { %v507_v3 = vadd.f32 %v8127_v45, %v506_v1  ;;  %418 = vst.msk [vmem:[#allocation2 + $0x98] sm:$0xff] %vm172_vm2, %v391_v62 }
 0x101   :  { %539 = vst.msk [vmem:[#allocation2 + $0xd8] sm:$0xff] %vm172_vm2, %v512_v63  ;;  %417 = vst.msk [vmem:[#allocation2 + $0x90] sm:$0xff] %vm172_vm2, %v386_v2  ;;  %v8844_v4 = vpop.f32.mrb[12].mxu0 }
 0x102   :  { %538 = vst.msk [vmem:[#allocation2 + $0xd0] sm:$0xff] %vm172_vm2, %v507_v3  ;;  %v8858_v5 = vpop.f32.mrb[12].mxu1  ;;  %v401_v6 = vadd.f32 %v8844_v4, %v8118_v44  ;;  %v395_v8 = vpop.f32.mrb[13].mxu0 }
 0x103   :  { %v522_v7 = vadd.f32 %v8858_v5, %v8127_v45  ;;  %v516_v9 = vpop.f32.mrb[13].mxu1  ;;  %v396_v10 = vadd.f32 %v8118_v44, %v395_v8  ;;  %v1207_v5 = vld [vmem:[#allocation3 + $0x1c0] sm:$0xff]  ;;  %v1360_v8 = vld [vmem:[#allocation3 + $0x1e8] sm:$0xff] }
 0x104   :  { %v517_v12 = vadd.f32 %v8127_v45, %v516_v9  ;;  %420 = vst.msk [vmem:[#allocation2 + $0xa8] sm:$0xff] %vm172_vm2, %v401_v6  ;;  %v721_v50 = vld [vmem:[#allocation2 + $0x80] sm:$0xff]  ;;  %v1208_v6 = vld [vmem:[#allocation3 + $0x1c8] sm:$0xff] }
 0x105   :  { %541 = vst.msk [vmem:[#allocation2 + $0xe8] sm:$0xff] %vm172_vm2, %v522_v7  ;;  %419 = vst.msk [vmem:[#allocation2 + $0xa0] sm:$0xff] %vm172_vm2, %v396_v10  ;;  %v8847_v13 = vpop.f32.mrb[14].mxu0  ;;  %v798_v42 = vld [vmem:[#allocation2 + $0xc0] sm:$0xff] }
 0x106   :  { %540 = vst.msk [vmem:[#allocation2 + $0xe0] sm:$0xff] %vm172_vm2, %v517_v12  ;;  %v8861_v14 = vpop.f32.mrb[14].mxu1  ;;  %v411_v15 = vadd.f32 %v8847_v13, %v8118_v44  ;;  %v405_v19 = vpop.f32.mrb[15].mxu0  ;;  %v1359_v7 = vld [vmem:[#allocation3 + $0x1e0] sm:$0xff]  ;;  %v11149_v12 = vpack.c.bf16 %v1208_v6, %v1207_v5 }
 0x107   :  { %v532_v16 = vadd.f32 %v8861_v14, %v8127_v45  ;;  %v526_v20 = vpop.f32.mrb[15].mxu1  ;;  %v406_v21 = vadd.f32 %v8118_v44, %v405_v19  ;;  %v11151_v13 = vpack.c.bf16 %v1360_v8, %v1359_v7  ;;  %v1209_v14 = vld [vmem:[#allocation3 + $0x1d0] sm:$0xff] }
 0x108   :  { %v527_v22 = vadd.f32 %v8127_v45, %v526_v20  ;;  %422 = vst.msk [vmem:[#allocation2 + $0xb8] sm:$0xff] %vm172_vm2, %v411_v15  ;;  %v1361_v19 = vld [vmem:[#allocation3 + $0x1f0] sm:$0xff]  ;;  %v1362_v20 = vld [vmem:[#allocation3 + $0x1f8] sm:$0xff] }
 0x109   :  { %543 = vst.msk [vmem:[#allocation2 + $0xf8] sm:$0xff] %vm172_vm2, %v532_v16  ;;  %421 = vst.msk [vmem:[#allocation2 + $0xb0] sm:$0xff] %vm172_vm2, %v406_v21  ;;  %v639_v26 = vpop.f32.mrb[16].mxu0  ;;  %v1210_v16 = vld [vmem:[#allocation3 + $0x1d8] sm:$0xff] }
 0x10a   :  { %542 = vst.msk [vmem:[#allocation2 + $0xf0] sm:$0xff] %vm172_vm2, %v527_v22  ;;  %v716_v28 = vpop.f32.mrb[16].mxu1  ;;  %v643_v32 = vadd.f32 %v639_v26, %v564_v25  ;;  %v8872_v34 = vpop.f32.mrb[17].mxu0  ;;  %v11161_v21 = vpack.c.bf16 %v1210_v16, %v1209_v14  ;;  %v11163_v22 = vpack.c.bf16 %v1362_v20, %v1361_v19  ;;  %v1283_v25 = vld [vmem:[#allocation3 + $0x140] sm:$0xff]  ;;  %v1284_v26 = vld [vmem:[#allocation3 + $0x148] sm:$0xff] }
 0x10b   :  { %v720_v33 = vadd.f32 %v716_v28, %v644_v27  ;;  %v8883_v35 = vpop.f32.mrb[17].mxu1  ;;  %v1435_v27 = vld [vmem:[#allocation3 + $0x160] sm:$0xff]  ;;  %v1436_v28 = vld [vmem:[#allocation3 + $0x168] sm:$0xff]  ;;  %v1285_v34 = vld [vmem:[#allocation3 + $0x150] sm:$0xff] }
 0x10c   :  { %v8140_v38 = vmul.f32 -1.442695, %v643_v32  ;;  %v11173_v32 = vpack.c.bf16 %v1284_v26, %v1283_v25  ;;  %v1286_v35 = vld [vmem:[#allocation3 + $0x158] sm:$0xff] }
 0x10d   :  { %v8141_v39 = vmul.f32 -1.442695, %v720_v33  ;;  %v11175_v33 = vpack.c.bf16 %v1436_v28, %v1435_v27 }
 0x10e   :  { %10630 = vpow2.f32 %v8140_v38  ;;  %v1437_v38 = vld [vmem:[#allocation3 + $0x170] sm:$0xff] }
 0x10f   :  { %10632 = vpow2.f32 %v8141_v39  ;;  %v1438_v39 = vld [vmem:[#allocation3 + $0x178] sm:$0xff] }
 0x111   :  { %v793_v40 = vpop.f32.mrb[18].mxu0 }
 0x112   :  { %v870_v44 = vpop.f32.mrb[18].mxu1  ;;  %v8894_v46 = vpop.f32.mrb[19].mxu0  ;;  %v797_v52 = vadd.f32 %v793_v40, %v721_v50  ;;  %v11183_v40 = vpack.c.bf16 %v1286_v35, %v1285_v34 }
 0x113   :  { %v874_v45 = vadd.f32 %v870_v44, %v798_v42  ;;  %v8905_v48 = vpop.f32.mrb[19].mxu1  ;;  %v11185_v42 = vpack.c.bf16 %v1438_v39, %v1437_v38  ;;  %v11248_v44 = vld [vmem:[%s11965_s2 + $0x4] ss:$0 sm:$0xff] }
 0x115   :  { %v8142_v51 = vmul.f32 -1.442695, %v874_v45  ;;  %v11253_v45 = vld [vmem:[%s11965_s2 + $0x5] ss:$0 sm:$0xff] }
 0x117   :  { %10634 = vpow2.f32 %v8142_v51 }
 0x118   :  { %v10631_v54 = vpop.eup %10630  ;;  %10636 = vtanh.f32 %v797_v52 }
 0x119   :  { %v10633_v56 = vpop.eup %10632  ;;  %v878_v57 = vadd.f32 1.0, %v10631_v54 }
 0x11a   :  { %v884_v58 = vadd.f32 1.0, %v10633_v56 }
 0x11b   :  { %10638 = vrcp.f32 %v878_v57 }
 0x11c   :  { %10640 = vrcp.f32 %v884_v58  ;;  %v11260_v58 = vld [vmem:[%s11965_s2 + $0x6] ss:$0 sm:$0xff] }
 0x121   :  { %v10635_v60 = vpop.eup %10634 }
 0x122   :  { %v10637_v62 = vpop.eup %10636  ;;  %v891_v2 = vadd.f32 1.0, %v10635_v60  ;;  %v11265_v60 = vld [vmem:[%s11965_s2 + $0x7] ss:$0 sm:$0xff] }
 0x124   :  { %10642 = vrcp.f32 %v891_v2 }
 0x125   :  { %v10639_v63 = vpop.eup %10638 }
 0x126   :  { %v10641_v0 = vpop.eup %10640  ;;  %v895_v1 = vmul.f32 %v10639_v63, %v10637_v62 }
 0x127   :  { %v894_v3 = vmul.f32 0.0, %v10641_v0 }
 0x129   :  { %v11146_v4 = vadd.f32 %v895_v1, %v894_v3 }
 0x12b   :  { %10644 = vtanh.f32 %v11146_v4 }
 0x12e   :  { %v10643_v9 = vpop.eup %10642 }
 0x135   :  { %v10645_v10 = vpop.eup %10644 }
 0x136   :  { %v11153_v15 = vmul.f32 %v10645_v10, %v10643_v9  ;;  %v1534_v10 = vld [vmem:[#allocation2 + $0x8] sm:$0xff] }
 0x138   :  { %8926 = vmatmul.mubr.msk.f32.vlgmr.msra.gmra.mrb[20].mxu0 %vm172_vm2, %v11153_v15  ;;  %8948 = vmatmul.mubr.msk.f32.vlgmr.msra.gmra.mrb[20].mxu1 %vm172_vm2, %v11153_v15 }
 0x139   :  { %9990 = vmatpush3.bf16.msra.mxu0 %v11149_v12  ;;  %10002 = vmatpush3.bf16.msra.mxu1 %v11151_v13 }
 0x13a   :  { %9991 = vmatprep.subr.bf16.mxu0 %v10923_v11  ;;  %10003 = vmatprep.subr.bf16.mxu1 %v10923_v11 }
 0x13b   :  { %8958 = vmatprep.mubr.msk.f32.mxu0 %vm10924_vm1, %v10925_v29  ;;  %8980 = vmatprep.mubr.msk.f32.mxu1 %vm10924_vm1, %v10925_v29 }
 0x13d   :  { %9993 = vmatpush3.bf16.msra.mxu0 %v11161_v21  ;;  %10005 = vmatpush3.bf16.msra.mxu1 %v11163_v22 }
 0x13e   :  { %9994 = vmatprep.subr.bf16.mxu0 %v10923_v11  ;;  %10006 = vmatprep.subr.bf16.mxu1 %v10923_v11 }
 0x140   :  { %8959 = vmatmul.mubr.f32.vlgmr.msra.gmra.mrb[22].mxu0 %v10925_v29  ;;  %8981 = vmatmul.mubr.f32.vlgmr.msra.gmra.mrb[22].mxu1 %v10925_v29 }
 0x141   :  { %9996 = vmatpush3.bf16.msra.mxu0 %v11173_v32  ;;  %10008 = vmatpush3.bf16.msra.mxu1 %v11175_v33 }
 0x142   :  { %9997 = vmatprep.subr.bf16.mxu0 %v10923_v11  ;;  %10009 = vmatprep.subr.bf16.mxu1 %v10923_v11 }
 0x143   :  { %8969 = vmatprep.mubr.msk.f32.mxu0 %vm10924_vm1, %v10925_v29  ;;  %8991 = vmatprep.mubr.msk.f32.mxu1 %vm10924_vm1, %v10925_v29 }
 0x145   :  { %9999 = vmatpush3.bf16.msra.mxu0 %v11183_v40  ;;  %10011 = vmatpush3.bf16.msra.mxu1 %v11185_v42 }
 0x146   :  { %10012 = vmatprep.subr.bf16.mxu0 %v10923_v11  ;;  %10018 = vmatprep.subr.bf16.mxu1 %v10923_v11 }
 0x148   :  { %8970 = vmatmul.mubr.msk.f32.vlgmr.msra.gmra.mrb[22].mxu0 %vm172_vm2, %v11153_v15  ;;  %8992 = vmatmul.mubr.msk.f32.vlgmr.msra.gmra.mrb[22].mxu1 %vm172_vm2, %v11153_v15 }
 0x149   :  { %10014 = vmatpush3.bf16.msra.mxu0 %v11002_v17  ;;  %10020 = vmatpush3.bf16.msra.mxu1 %v11004_v18 }
 0x14a   :  { %10015 = vmatprep.subr.bf16.mxu0 %v10923_v11  ;;  %10021 = vmatprep.subr.bf16.mxu1 %v10923_v11 }
 0x14b   :  { %9002 = vmatprep.mubr.msk.f32.mxu0 %vm10924_vm1, %v10925_v29  ;;  %9013 = vmatprep.mubr.msk.f32.mxu1 %vm10924_vm1, %v10925_v29 }
 0x14d   :  { %10017 = vmatpush3.bf16.msra.mxu0 %v11012_v23  ;;  %10023 = vmatpush3.bf16.msra.mxu1 %v11014_v24 }
 0x14e   :  { %10024 = vmatprep.subr.bf16.mxu0 %v10923_v11  ;;  %10030 = vmatprep.subr.bf16.mxu1 %v10923_v11 }
 0x150   :  { %9003 = vmatmul.mubr.msk.f32.vlgmr.msra.gmra.mrb[24].mxu0 %vm172_vm2, %v11153_v15  ;;  %9014 = vmatmul.mubr.msk.f32.vlgmr.msra.gmra.mrb[24].mxu1 %vm172_vm2, %v11153_v15 }
 0x151   :  { %10026 = vmatpush3.bf16.msra.mxu0 %v11036_v30  ;;  %10032 = vmatpush3.bf16.msra.mxu1 %v11038_v31 }
 0x152   :  { %10027 = vmatprep.subr.bf16.mxu0 %v10923_v11  ;;  %10033 = vmatprep.subr.bf16.mxu1 %v10923_v11 }
 0x153   :  { %9024 = vmatprep.mubr.msk.f32.mxu0 %vm10924_vm1, %v10925_v29  ;;  %9035 = vmatprep.mubr.msk.f32.mxu1 %vm10924_vm1, %v10925_v29 }
 0x155   :  { %10029 = vmatpush3.bf16.msra.mxu0 %v11044_v36  ;;  %10035 = vmatpush3.bf16.msra.mxu1 %v11046_v37 }
 0x156   :  { %10036 = vmatprep.subr.bf16.mxu0 %v10923_v11  ;;  %10048 = vmatprep.subr.bf16.mxu1 %v10923_v11 }
 0x158   :  { %9025 = vmatmul.mubr.msk.f32.vlgmr.msra.gmra.mrb[26].mxu0 %vm172_vm2, %v11153_v15  ;;  %9036 = vmatmul.mubr.msk.f32.vlgmr.msra.gmra.mrb[26].mxu1 %vm172_vm2, %v11153_v15  ;;  %v1606_v15 = vld [vmem:[#allocation2 + $0x48] sm:$0xff] }
 0x159   :  { %10038 = vmatpush3.bf16.msra.mxu0 %v11064_v41  ;;  %10050 = vmatpush3.bf16.msra.mxu1 %v11066_v43 }
 0x15a   :  { %10039 = vmatprep.subr.bf16.mxu0 %v10923_v11  ;;  %10051 = vmatprep.subr.bf16.mxu1 %v10923_v11 }
 0x15b   :  { %9046 = vmatprep.mubr.msk.f32.mxu0 %vm10924_vm1, %v10925_v29  ;;  %9068 = vmatprep.mubr.msk.f32.mxu1 %vm10924_vm1, %v10925_v29 }
 0x15d   :  { %10041 = vmatpush3.bf16.msra.mxu0 %v11072_v47  ;;  %10053 = vmatpush3.bf16.msra.mxu1 %v11074_v49 }
 0x15e   :  { %10042 = vmatprep.subr.bf16.mxu0 %v10923_v11  ;;  %10054 = vmatprep.subr.bf16.mxu1 %v10923_v11 }
 0x20b   :  { %v1049_v46 = vpop.f32.mrb[20].mxu0  ;;  %v1201_v48 = vpop.f32.mrb[20].mxu1 }
 0x20c   :  { %v10528_v50 = vadd.f32 %v11248_v44, %v1049_v46  ;;  %v10529_v51 = vadd.f32 %v11253_v45, %v1201_v48  ;;  %v8927_v52 = vpop.f32.mrb[21].mxu0  ;;  %v8949_v54 = vpop.f32.mrb[21].mxu1 }
 0x20d   :  { %v1750_v52 = vld [vmem:[#allocation2 + $0xc8] sm:$0xff] }
 0x20e   :  { %v8147_v56 = vmul.f32 -1.442695, %v10528_v50  ;;  %v8148_v57 = vmul.f32 -1.442695, %v10529_v51 }
 0x210   :  { %10646 = vpow2.f32 %v8147_v56 }
 0x211   :  { %10648 = vpow2.f32 %v8148_v57 }
 0x21a   :  { %v10647_v62 = vpop.eup %10646 }
 0x21b   :  { %v10649_v63 = vpop.eup %10648  ;;  %v1513_v0 = vadd.f32 1.0, %v10647_v62  ;;  %v1353_v1 = vpop.f32.mrb[22].mxu0 }
 0x21c   :  { %v1505_v2 = vpop.f32.mrb[22].mxu1  ;;  %v1519_v3 = vadd.f32 1.0, %v10649_v63  ;;  %v10530_v5 = vadd.f32 %v11260_v58, %v1353_v1  ;;  %v8971_v7 = vpop.f32.mrb[23].mxu0 }
 0x21d   :  { %v10531_v6 = vadd.f32 %v11265_v60, %v1505_v2  ;;  %v8993_v8 = vpop.f32.mrb[23].mxu1  ;;  %10650 = vrcp.f32 %v1513_v0  ;;  %v1678_v0 = vld [vmem:[#allocation2 + $0x88] sm:$0xff] }
 0x21e   :  { %10652 = vrcp.f32 %v1519_v3 }
 0x21f   :  { %v8149_v9 = vmul.f32 -1.442695, %v10531_v6  ;;  %10654 = vtanh.f32 %v10530_v5 }
 0x221   :  { %10656 = vpow2.f32 %v8149_v9 }
 0x223   :  { %v1601_v14 = vpop.f32.mrb[24].mxu0  ;;  %v1673_v16 = vpop.f32.mrb[24].mxu1 }
 0x224   :  { %v1605_v19 = vadd.f32 %v1601_v14, %v1534_v10  ;;  %v1677_v20 = vadd.f32 %v1673_v16, %v1606_v15  ;;  %v9004_v25 = vpop.f32.mrb[25].mxu0  ;;  %v9015_v26 = vpop.f32.mrb[25].mxu1 }
 0x226   :  { %v8154_v27 = vmul.f32 -1.442695, %v1605_v19  ;;  %v8155_v28 = vmul.f32 -1.442695, %v1677_v20 }
 0x227   :  { %v10651_v34 = vpop.eup %10650 }
 0x228   :  { %v10653_v35 = vpop.eup %10652  ;;  %10658 = vpow2.f32 %v8154_v27 }
 0x229   :  { %v10655_v38 = vpop.eup %10654  ;;  %v1529_v39 = vmul.f32 0.0, %v10653_v35  ;;  %10660 = vpow2.f32 %v8155_v28 }
 0x22a   :  { %v1530_v48 = vmul.f32 %v10655_v38, %v10651_v34 }
 0x22b   :  { %v10657_v46 = vpop.eup %10656  ;;  %v1745_v51 = vpop.f32.mrb[26].mxu0 }
 0x22c   :  { %v1526_v50 = vadd.f32 1.0, %v10657_v46  ;;  %v1817_v54 = vpop.f32.mrb[26].mxu1  ;;  %v11269_v56 = vadd.f32 %v1530_v48, %v1529_v39  ;;  %v9026_v62 = vpop.f32.mrb[27].mxu0  ;;  %v1749_v2 = vadd.f32 %v1745_v51, %v1678_v0 }
 0x22d   :  { %v1821_v57 = vadd.f32 %v1817_v54, %v1750_v52  ;;  %v9037_v63 = vpop.f32.mrb[27].mxu1 }
 0x22e   :  { %10662 = vrcp.f32 %v1526_v50 }
 0x22f   :  { %10664 = vtanh.f32 %v11269_v56  ;;  %v8156_v1 = vmul.f32 -1.442695, %v1821_v57 }
 0x231   :  { %10666 = vpow2.f32 %v8156_v1 }
 0x232   :  { %v10659_v3 = vpop.eup %10658  ;;  %10668 = vtanh.f32 %v1749_v2 }
 0x233   :  { %v10661_v5 = vpop.eup %10660  ;;  %v1825_v6 = vadd.f32 1.0, %v10659_v3 }
 0x234   :  { %v1831_v7 = vadd.f32 1.0, %v10661_v5 }
 0x235   :  { %10670 = vrcp.f32 %v1825_v6 }
 0x236   :  { %10672 = vrcp.f32 %v1831_v7 }
 0x238   :  { %v10663_v8 = vpop.eup %10662 }
 0x239   :  { %v10665_v9 = vpop.eup %10664 }
 0x23a   :  { %v1533_v10 = vmul.f32 %v10665_v9, %v10663_v8  ;;  %v2444_v8 = vld [vmem:[#allocation2 + $0x10] sm:$0xff] }
 0x23b   :  { %v10667_v14 = vpop.eup %10666 }
 0x23c   :  { %9047 = vmatmul.mubr.msk.f32.vlgmr.msra.gmra.mrb[28].mxu0 %vm172_vm2, %v1533_v10  ;;  %9069 = vmatmul.mubr.msk.f32.vlgmr.msra.gmra.mrb[28].mxu1 %vm172_vm2, %v1533_v10  ;;  %v10669_v15 = vpop.eup %10668  ;;  %v1838_v25 = vadd.f32 1.0, %v10667_v14 }
 0x23d   :  { %10044 = vmatpush3.bf16.msra.mxu0 %v11080_v53  ;;  %10056 = vmatpush3.bf16.msra.mxu1 %v11083_v55 }
 0x23e   :  { %10045 = vmatprep.subr.bf16.mxu0 %v10923_v11  ;;  %10057 = vmatprep.subr.bf16.mxu1 %v10923_v11  ;;  %10674 = vrcp.f32 %v1838_v25 }
 0x23f   :  { %9057 = vmatprep.mubr.msk.f32.mxu0 %vm10924_vm1, %v10925_v29  ;;  %9079 = vmatprep.mubr.msk.f32.mxu1 %vm10924_vm1, %v10925_v29  ;;  %v10671_v16 = vpop.eup %10670 }
 0x240   :  { %v10673_v19 = vpop.eup %10672  ;;  %v1842_v20 = vmul.f32 %v10671_v16, %v10669_v15 }
 0x241   :  { %10047 = vmatpush3.bf16.msra.mxu0 %v11090_v59  ;;  %10059 = vmatpush3.bf16.msra.mxu1 %v11094_v61  ;;  %v1841_v26 = vmul.f32 %v10673_v19, %v11146_v4 }
 0x242   :  { %10060 = vmatprep.subr.bf16.mxu0 %v10923_v11  ;;  %10072 = vmatprep.subr.bf16.mxu1 %v10923_v11 }
 0x243   :  { %v11287_v27 = vadd.f32 %v1842_v20, %v1841_v26 }
 0x245   :  { %10676 = vtanh.f32 %v11287_v27 }
 0x248   :  { %v10675_v28 = vpop.eup %10674 }
 0x24f   :  { %v10677_v34 = vpop.eup %10676 }
 0x250   :  { %v1845_v35 = vmul.f32 %v10677_v34, %v10675_v28 }
 0x252   :  { %9058 = vmatmul.mubr.msk.f32.vlgmr.msra.gmra.mrb[28].mxu0 %vm172_vm2, %v1845_v35  ;;  %9080 = vmatmul.mubr.msk.f32.vlgmr.msra.gmra.mrb[28].mxu1 %vm172_vm2, %v1845_v35 }
 0x253   :  { %10062 = vmatpush3.bf16.msra.mxu0 %v11149_v12  ;;  %10074 = vmatpush3.bf16.msra.mxu1 %v11151_v13 }
 0x254   :  { %10063 = vmatprep.subr.bf16.mxu0 %v10923_v11  ;;  %10075 = vmatprep.subr.bf16.mxu1 %v10923_v11 }
 0x255   :  { %9090 = vmatprep.mubr.msk.f32.mxu0 %vm10924_vm1, %v10925_v29  ;;  %9112 = vmatprep.mubr.msk.f32.mxu1 %vm10924_vm1, %v10925_v29 }
 0x257   :  { %10065 = vmatpush3.bf16.msra.mxu0 %v11161_v21  ;;  %10077 = vmatpush3.bf16.msra.mxu1 %v11163_v22 }
 0x258   :  { %10066 = vmatprep.subr.bf16.mxu0 %v10923_v11  ;;  %10078 = vmatprep.subr.bf16.mxu1 %v10923_v11 }
 0x25a   :  { %9091 = vmatmul.mubr.msk.f32.vlgmr.msra.gmra.mrb[30].mxu0 %vm172_vm2, %v1533_v10  ;;  %9113 = vmatmul.mubr.msk.f32.vlgmr.msra.gmra.mrb[30].mxu1 %vm172_vm2, %v1533_v10  ;;  %v2516_v10 = vld [vmem:[#allocation2 + $0x50] sm:$0xff] }
 0x25b   :  { %10068 = vmatpush3.bf16.msra.mxu0 %v11173_v32  ;;  %10080 = vmatpush3.bf16.msra.mxu1 %v11175_v33 }
 0x25c   :  { %10069 = vmatprep.subr.bf16.mxu0 %v10923_v11  ;;  %10081 = vmatprep.subr.bf16.mxu1 %v10923_v11 }
 0x25d   :  { %9101 = vmatprep.mubr.msk.f32.mxu0 %vm10924_vm1, %v10925_v29  ;;  %9123 = vmatprep.mubr.msk.f32.mxu1 %vm10924_vm1, %v10925_v29 }
 0x25f   :  { %10071 = vmatpush3.bf16.msra.mxu0 %v11183_v40  ;;  %10083 = vmatpush3.bf16.msra.mxu1 %v11185_v42 }
 0x260   :  { %10084 = vmatprep.subr.bf16.mxu0 %v10923_v11  ;;  %10090 = vmatprep.subr.bf16.mxu1 %v10923_v11 }
 0x262   :  { %9102 = vmatmul.mubr.msk.f32.vlgmr.msra.gmra.mrb[30].mxu0 %vm172_vm2, %v1845_v35  ;;  %9124 = vmatmul.mubr.msk.f32.vlgmr.msra.gmra.mrb[30].mxu1 %vm172_vm2, %v1845_v35 }
 0x263   :  { %10086 = vmatpush3.bf16.msra.mxu0 %v11002_v17  ;;  %10092 = vmatpush3.bf16.msra.mxu1 %v11004_v18 }
 0x264   :  { %10087 = vmatprep.subr.bf16.mxu0 %v10923_v11  ;;  %10093 = vmatprep.subr.bf16.mxu1 %v10923_v11 }
 0x265   :  { %9134 = vmatprep.mubr.msk.f32.mxu0 %vm10924_vm1, %v10925_v29  ;;  %9145 = vmatprep.mubr.msk.f32.mxu1 %vm10924_vm1, %v10925_v29 }
 0x267   :  { %10089 = vmatpush3.bf16.msra.mxu0 %v11012_v23  ;;  %10095 = vmatpush3.bf16.msra.mxu1 %v11014_v24 }
 0x268   :  { %10096 = vmatprep.subr.bf16.mxu0 %v10923_v11  ;;  %10102 = vmatprep.subr.bf16.mxu1 %v10923_v11 }
 0x26a   :  { %9135 = vmatmul.mubr.msk.f32.vlgmr.msra.gmra.mrb[32].mxu0 %vm172_vm2, %v1845_v35  ;;  %9146 = vmatmul.mubr.msk.f32.vlgmr.msra.gmra.mrb[32].mxu1 %vm172_vm2, %v1845_v35 }
 0x26b   :  { %10098 = vmatpush3.bf16.msra.mxu0 %v11036_v30  ;;  %10104 = vmatpush3.bf16.msra.mxu1 %v11038_v31 }
 0x26c   :  { %10099 = vmatprep.subr.bf16.mxu0 %v10923_v11  ;;  %10105 = vmatprep.subr.bf16.mxu1 %v10923_v11 }
 0x26d   :  { %9156 = vmatprep.mubr.msk.f32.mxu0 %vm10924_vm1, %v10925_v29  ;;  %9167 = vmatprep.mubr.msk.f32.mxu1 %vm10924_vm1, %v10925_v29 }
 0x26f   :  { %10101 = vmatpush3.bf16.msra.mxu0 %v11044_v36  ;;  %10107 = vmatpush3.bf16.msra.mxu1 %v11046_v37 }
 0x270   :  { %10108 = vmatprep.subr.bf16.mxu0 %v10923_v11  ;;  %10120 = vmatprep.subr.bf16.mxu1 %v10923_v11 }
 0x272   :  { %9157 = vmatmul.mubr.msk.f32.vlgmr.msra.gmra.mrb[34].mxu0 %vm172_vm2, %v1845_v35  ;;  %9168 = vmatmul.mubr.msk.f32.vlgmr.msra.gmra.mrb[34].mxu1 %vm172_vm2, %v1845_v35 }
 0x273   :  { %10110 = vmatpush3.bf16.msra.mxu0 %v11064_v41  ;;  %10122 = vmatpush3.bf16.msra.mxu1 %v11066_v43 }
 0x274   :  { %10111 = vmatprep.subr.bf16.mxu0 %v10923_v11  ;;  %10123 = vmatprep.subr.bf16.mxu1 %v10923_v11 }
 0x275   :  { %9178 = vmatprep.mubr.msk.f32.mxu0 %vm10924_vm1, %v10925_v29  ;;  %9200 = vmatprep.mubr.msk.f32.mxu1 %vm10924_vm1, %v10925_v29 }
 0x277   :  { %10113 = vmatpush3.bf16.msra.mxu0 %v11072_v47  ;;  %10125 = vmatpush3.bf16.msra.mxu1 %v11074_v49 }
 0x278   :  { %10114 = vmatprep.subr.bf16.mxu0 %v10923_v11  ;;  %10126 = vmatprep.subr.bf16.mxu1 %v10923_v11 }
 0x325   :  { %v1989_v4 = vpop.f32.mrb[28].mxu0  ;;  %v2131_v38 = vpop.f32.mrb[28].mxu1 }
 0x326   :  { %v10532_v39 = vadd.f32 %v11248_v44, %v1989_v4  ;;  %v10533_v46 = vadd.f32 %v11253_v45, %v2131_v38  ;;  %v9059_v48 = vpop.f32.mrb[29].mxu0  ;;  %v9081_v50 = vpop.f32.mrb[29].mxu1 }
 0x327   :  { %v2660_v50 = vld [vmem:[#allocation2 + $0xd0] sm:$0xff] }
 0x328   :  { %v8165_v51 = vmul.f32 -1.442695, %v10532_v39  ;;  %v8166_v52 = vmul.f32 -1.442695, %v10533_v46 }
 0x32a   :  { %10678 = vpow2.f32 %v8165_v51 }
 0x32b   :  { %10680 = vpow2.f32 %v8166_v52 }
 0x334   :  { %v10679_v54 = vpop.eup %10678 }
 0x335   :  { %v10681_v57 = vpop.eup %10680  ;;  %v2423_v62 = vadd.f32 1.0, %v10679_v54  ;;  %v2273_v63 = vpop.f32.mrb[30].mxu0 }
 0x336   :  { %v2415_v0 = vpop.f32.mrb[30].mxu1  ;;  %v2429_v1 = vadd.f32 1.0, %v10681_v57  ;;  %v10534_v2 = vadd.f32 %v11260_v58, %v2273_v63  ;;  %v9103_v5 = vpop.f32.mrb[31].mxu0  ;;  %v2588_v63 = vld [vmem:[#allocation2 + $0x90] sm:$0xff] }
 0x337   :  { %v10535_v3 = vadd.f32 %v11265_v60, %v2415_v0  ;;  %v9125_v6 = vpop.f32.mrb[31].mxu1  ;;  %10682 = vrcp.f32 %v2423_v62 }
 0x338   :  { %10684 = vrcp.f32 %v2429_v1 }
 0x339   :  { %v8167_v7 = vmul.f32 -1.442695, %v10535_v3  ;;  %10686 = vtanh.f32 %v10534_v2 }
 0x33b   :  { %10688 = vpow2.f32 %v8167_v7 }
 0x33d   :  { %v2511_v9 = vpop.f32.mrb[32].mxu0  ;;  %v2583_v14 = vpop.f32.mrb[32].mxu1 }
 0x33e   :  { %v2515_v15 = vadd.f32 %v2511_v9, %v2444_v8  ;;  %v2587_v16 = vadd.f32 %v2583_v14, %v2516_v10  ;;  %v9136_v19 = vpop.f32.mrb[33].mxu0  ;;  %v9147_v20 = vpop.f32.mrb[33].mxu1 }
 0x340   :  { %v8172_v25 = vmul.f32 -1.442695, %v2515_v15  ;;  %v8173_v26 = vmul.f32 -1.442695, %v2587_v16 }
 0x341   :  { %v10683_v28 = vpop.eup %10682 }
 0x342   :  { %v10685_v34 = vpop.eup %10684  ;;  %10690 = vpow2.f32 %v8172_v25 }
 0x343   :  { %v10687_v35 = vpop.eup %10686  ;;  %v2439_v4 = vmul.f32 %v10685_v34, %v11269_v56  ;;  %10692 = vpow2.f32 %v8173_v26 }
 0x344   :  { %v2440_v39 = vmul.f32 %v10687_v35, %v10683_v28 }
 0x345   :  { %v10689_v38 = vpop.eup %10688  ;;  %v2655_v48 = vpop.f32.mrb[34].mxu0 }
 0x346   :  { %v2436_v46 = vadd.f32 1.0, %v10689_v38  ;;  %v2727_v51 = vpop.f32.mrb[34].mxu1  ;;  %v11365_v52 = vadd.f32 %v2440_v39, %v2439_v4  ;;  %v9158_v57 = vpop.f32.mrb[35].mxu0  ;;  %v2659_v1 = vadd.f32 %v2655_v48, %v2588_v63 }
 0x347   :  { %v2731_v54 = vadd.f32 %v2727_v51, %v2660_v50  ;;  %v9169_v62 = vpop.f32.mrb[35].mxu1 }
 0x348   :  { %10694 = vrcp.f32 %v2436_v46 }
 0x349   :  { %10696 = vtanh.f32 %v11365_v52  ;;  %v8174_v0 = vmul.f32 -1.442695, %v2731_v54 }
 0x34b   :  { %10698 = vpow2.f32 %v8174_v0 }
 0x34c   :  { %v10691_v2 = vpop.eup %10690  ;;  %10700 = vtanh.f32 %v2659_v1 }
 0x34d   :  { %v10693_v56 = vpop.eup %10692  ;;  %v2735_v3 = vadd.f32 1.0, %v10691_v2 }
 0x34e   :  { %v2741_v5 = vadd.f32 1.0, %v10693_v56 }
 0x34f   :  { %10702 = vrcp.f32 %v2735_v3 }
 0x350   :  { %10704 = vrcp.f32 %v2741_v5 }
 0x352   :  { %v10695_v6 = vpop.eup %10694 }
 0x353   :  { %v10697_v7 = vpop.eup %10696 }
 0x354   :  { %v2443_v8 = vmul.f32 %v10697_v7, %v10695_v6  ;;  %v3354_v6 = vld [vmem:[#allocation2 + $0x18] sm:$0xff] }
 0x355   :  { %v10699_v9 = vpop.eup %10698 }
 0x356   :  { %9179 = vmatmul.mubr.msk.f32.vlgmr.msra.gmra.mrb[36].mxu0 %vm172_vm2, %v2443_v8  ;;  %9201 = vmatmul.mubr.msk.f32.vlgmr.msra.gmra.mrb[36].mxu1 %vm172_vm2, %v2443_v8  ;;  %v10701_v10 = vpop.eup %10700  ;;  %v2748_v19 = vadd.f32 1.0, %v10699_v9 }
 0x357   :  { %10116 = vmatpush3.bf16.msra.mxu0 %v11080_v53  ;;  %10128 = vmatpush3.bf16.msra.mxu1 %v11083_v55 }
 0x358   :  { %10117 = vmatprep.subr.bf16.mxu0 %v10923_v11  ;;  %10129 = vmatprep.subr.bf16.mxu1 %v10923_v11  ;;  %10706 = vrcp.f32 %v2748_v19 }
 0x359   :  { %9189 = vmatprep.mubr.msk.f32.mxu0 %vm10924_vm1, %v10925_v29  ;;  %9211 = vmatprep.mubr.msk.f32.mxu1 %vm10924_vm1, %v10925_v29  ;;  %v10703_v14 = vpop.eup %10702 }
 0x35a   :  { %v10705_v15 = vpop.eup %10704  ;;  %v2752_v16 = vmul.f32 %v10703_v14, %v10701_v10 }
 0x35b   :  { %10119 = vmatpush3.bf16.msra.mxu0 %v11090_v59  ;;  %10131 = vmatpush3.bf16.msra.mxu1 %v11094_v61  ;;  %v2751_v20 = vmul.f32 %v10705_v15, %v11287_v27 }
 0x35c   :  { %10132 = vmatprep.subr.bf16.mxu0 %v10923_v11  ;;  %10144 = vmatprep.subr.bf16.mxu1 %v10923_v11 }
 0x35d   :  { %v11383_v25 = vadd.f32 %v2752_v16, %v2751_v20 }
 0x35f   :  { %10708 = vtanh.f32 %v11383_v25 }
 0x362   :  { %v10707_v26 = vpop.eup %10706 }
 0x369   :  { %v10709_v28 = vpop.eup %10708 }
 0x36a   :  { %v2755_v34 = vmul.f32 %v10709_v28, %v10707_v26 }
 0x36c   :  { %9190 = vmatmul.mubr.msk.f32.vlgmr.msra.gmra.mrb[36].mxu0 %vm172_vm2, %v2755_v34  ;;  %9212 = vmatmul.mubr.msk.f32.vlgmr.msra.gmra.mrb[36].mxu1 %vm172_vm2, %v2755_v34 }
 0x36d   :  { %10134 = vmatpush3.bf16.msra.mxu0 %v11149_v12  ;;  %10146 = vmatpush3.bf16.msra.mxu1 %v11151_v13 }
 0x36e   :  { %10135 = vmatprep.subr.bf16.mxu0 %v10923_v11  ;;  %10147 = vmatprep.subr.bf16.mxu1 %v10923_v11 }
 0x36f   :  { %9222 = vmatprep.mubr.msk.f32.mxu0 %vm10924_vm1, %v10925_v29  ;;  %9244 = vmatprep.mubr.msk.f32.mxu1 %vm10924_vm1, %v10925_v29 }
 0x371   :  { %10137 = vmatpush3.bf16.msra.mxu0 %v11161_v21  ;;  %10149 = vmatpush3.bf16.msra.mxu1 %v11163_v22 }
 0x372   :  { %10138 = vmatprep.subr.bf16.mxu0 %v10923_v11  ;;  %10150 = vmatprep.subr.bf16.mxu1 %v10923_v11 }
 0x374   :  { %9223 = vmatmul.mubr.msk.f32.vlgmr.msra.gmra.mrb[38].mxu0 %vm172_vm2, %v2443_v8  ;;  %9245 = vmatmul.mubr.msk.f32.vlgmr.msra.gmra.mrb[38].mxu1 %vm172_vm2, %v2443_v8  ;;  %v3426_v8 = vld [vmem:[#allocation2 + $0x58] sm:$0xff] }
 0x375   :  { %10140 = vmatpush3.bf16.msra.mxu0 %v11173_v32  ;;  %10152 = vmatpush3.bf16.msra.mxu1 %v11175_v33 }
 0x376   :  { %10141 = vmatprep.subr.bf16.mxu0 %v10923_v11  ;;  %10153 = vmatprep.subr.bf16.mxu1 %v10923_v11 }
 0x377   :  { %9233 = vmatprep.mubr.msk.f32.mxu0 %vm10924_vm1, %v10925_v29  ;;  %9255 = vmatprep.mubr.msk.f32.mxu1 %vm10924_vm1, %v10925_v29 }
 0x379   :  { %10143 = vmatpush3.bf16.msra.mxu0 %v11183_v40  ;;  %10155 = vmatpush3.bf16.msra.mxu1 %v11185_v42 }
 0x37a   :  { %10156 = vmatprep.subr.bf16.mxu0 %v10923_v11  ;;  %10162 = vmatprep.subr.bf16.mxu1 %v10923_v11 }
 0x37c   :  { %9234 = vmatmul.mubr.msk.f32.vlgmr.msra.gmra.mrb[38].mxu0 %vm172_vm2, %v2755_v34  ;;  %9256 = vmatmul.mubr.msk.f32.vlgmr.msra.gmra.mrb[38].mxu1 %vm172_vm2, %v2755_v34 }
 0x37d   :  { %10158 = vmatpush3.bf16.msra.mxu0 %v11002_v17  ;;  %10164 = vmatpush3.bf16.msra.mxu1 %v11004_v18 }
 0x37e   :  { %10159 = vmatprep.subr.bf16.mxu0 %v10923_v11  ;;  %10165 = vmatprep.subr.bf16.mxu1 %v10923_v11 }
 0x37f   :  { %9266 = vmatprep.mubr.msk.f32.mxu0 %vm10924_vm1, %v10925_v29  ;;  %9277 = vmatprep.mubr.msk.f32.mxu1 %vm10924_vm1, %v10925_v29 }
 0x381   :  { %10161 = vmatpush3.bf16.msra.mxu0 %v11012_v23  ;;  %10167 = vmatpush3.bf16.msra.mxu1 %v11014_v24 }
 0x382   :  { %10168 = vmatprep.subr.bf16.mxu0 %v10923_v11  ;;  %10174 = vmatprep.subr.bf16.mxu1 %v10923_v11 }
 0x384   :  { %9267 = vmatmul.mubr.msk.f32.vlgmr.msra.gmra.mrb[40].mxu0 %vm172_vm2, %v2755_v34  ;;  %9278 = vmatmul.mubr.msk.f32.vlgmr.msra.gmra.mrb[40].mxu1 %vm172_vm2, %v2755_v34 }
 0x385   :  { %10170 = vmatpush3.bf16.msra.mxu0 %v11036_v30  ;;  %10176 = vmatpush3.bf16.msra.mxu1 %v11038_v31 }
 0x386   :  { %10171 = vmatprep.subr.bf16.mxu0 %v10923_v11  ;;  %10177 = vmatprep.subr.bf16.mxu1 %v10923_v11 }
 0x387   :  { %9288 = vmatprep.mubr.msk.f32.mxu0 %vm10924_vm1, %v10925_v29  ;;  %9299 = vmatprep.mubr.msk.f32.mxu1 %vm10924_vm1, %v10925_v29 }
 0x389   :  { %10173 = vmatpush3.bf16.msra.mxu0 %v11044_v36  ;;  %10179 = vmatpush3.bf16.msra.mxu1 %v11046_v37 }
 0x38a   :  { %10180 = vmatprep.subr.bf16.mxu0 %v10923_v11  ;;  %10192 = vmatprep.subr.bf16.mxu1 %v10923_v11 }
 0x38c   :  { %9289 = vmatmul.mubr.msk.f32.vlgmr.msra.gmra.mrb[42].mxu0 %vm172_vm2, %v2755_v34  ;;  %9300 = vmatmul.mubr.msk.f32.vlgmr.msra.gmra.mrb[42].mxu1 %vm172_vm2, %v2755_v34 }
 0x38d   :  { %10182 = vmatpush3.bf16.msra.mxu0 %v11064_v41  ;;  %10194 = vmatpush3.bf16.msra.mxu1 %v11066_v43 }
 0x38e   :  { %10183 = vmatprep.subr.bf16.mxu0 %v10923_v11  ;;  %10195 = vmatprep.subr.bf16.mxu1 %v10923_v11 }
 0x38f   :  { %9310 = vmatprep.mubr.msk.f32.mxu0 %vm10924_vm1, %v10925_v29  ;;  %9332 = vmatprep.mubr.msk.f32.mxu1 %vm10924_vm1, %v10925_v29 }
 0x391   :  { %10185 = vmatpush3.bf16.msra.mxu0 %v11072_v47  ;;  %10197 = vmatpush3.bf16.msra.mxu1 %v11074_v49 }
 0x392   :  { %10186 = vmatprep.subr.bf16.mxu0 %v10923_v11  ;;  %10198 = vmatprep.subr.bf16.mxu1 %v10923_v11 }
 0x43f   :  { %v2899_v27 = vpop.f32.mrb[36].mxu0  ;;  %v3041_v35 = vpop.f32.mrb[36].mxu1 }
 0x440   :  { %v10536_v4 = vadd.f32 %v11248_v44, %v2899_v27  ;;  %v10537_v38 = vadd.f32 %v11253_v45, %v3041_v35  ;;  %v9191_v39 = vpop.f32.mrb[37].mxu0  ;;  %v9213_v46 = vpop.f32.mrb[37].mxu1 }
 0x441   :  { %v3570_v46 = vld [vmem:[#allocation2 + $0xd8] sm:$0xff] }
 0x442   :  { %v8183_v48 = vmul.f32 -1.442695, %v10536_v4  ;;  %v8184_v50 = vmul.f32 -1.442695, %v10537_v38 }
 0x444   :  { %10710 = vpow2.f32 %v8183_v48 }
 0x445   :  { %10712 = vpow2.f32 %v8184_v50 }
 0x44e   :  { %v10711_v51 = vpop.eup %10710 }
 0x44f   :  { %v10713_v54 = vpop.eup %10712  ;;  %v3333_v57 = vadd.f32 1.0, %v10711_v51  ;;  %v3183_v62 = vpop.f32.mrb[38].mxu0 }
 0x450   :  { %v3325_v63 = vpop.f32.mrb[38].mxu1  ;;  %v3339_v0 = vadd.f32 1.0, %v10713_v54  ;;  %v10538_v1 = vadd.f32 %v11260_v58, %v3183_v62  ;;  %v9235_v56 = vpop.f32.mrb[39].mxu0  ;;  %v3498_v62 = vld [vmem:[#allocation2 + $0x98] sm:$0xff] }
 0x451   :  { %v10539_v2 = vadd.f32 %v11265_v60, %v3325_v63  ;;  %v9257_v3 = vpop.f32.mrb[39].mxu1  ;;  %10714 = vrcp.f32 %v3333_v57 }
 0x452   :  { %10716 = vrcp.f32 %v3339_v0 }
 0x453   :  { %v8185_v5 = vmul.f32 -1.442695, %v10539_v2  ;;  %10718 = vtanh.f32 %v10538_v1 }
 0x455   :  { %10720 = vpow2.f32 %v8185_v5 }
 0x457   :  { %v3421_v7 = vpop.f32.mrb[40].mxu0  ;;  %v3493_v9 = vpop.f32.mrb[40].mxu1 }
 0x458   :  { %v3425_v10 = vadd.f32 %v3421_v7, %v3354_v6  ;;  %v3497_v14 = vadd.f32 %v3493_v9, %v3426_v8  ;;  %v9268_v15 = vpop.f32.mrb[41].mxu0  ;;  %v9279_v16 = vpop.f32.mrb[41].mxu1 }
 0x45a   :  { %v8190_v19 = vmul.f32 -1.442695, %v3425_v10  ;;  %v8191_v20 = vmul.f32 -1.442695, %v3497_v14 }
 0x45b   :  { %v10715_v26 = vpop.eup %10714 }
 0x45c   :  { %v10717_v28 = vpop.eup %10716  ;;  %10722 = vpow2.f32 %v8190_v19 }
 0x45d   :  { %v10719_v34 = vpop.eup %10718  ;;  %v3349_v27 = vmul.f32 %v10717_v28, %v11365_v52  ;;  %10724 = vpow2.f32 %v8191_v20 }
 0x45e   :  { %v3350_v4 = vmul.f32 %v10719_v34, %v10715_v26 }
 0x45f   :  { %v10721_v35 = vpop.eup %10720  ;;  %v3565_v39 = vpop.f32.mrb[42].mxu0 }
 0x460   :  { %v3346_v38 = vadd.f32 1.0, %v10721_v35  ;;  %v3637_v48 = vpop.f32.mrb[42].mxu1  ;;  %v11461_v50 = vadd.f32 %v3350_v4, %v3349_v27  ;;  %v9290_v54 = vpop.f32.mrb[43].mxu0  ;;  %v3569_v0 = vadd.f32 %v3565_v39, %v3498_v62 }
 0x461   :  { %v3641_v51 = vadd.f32 %v3637_v48, %v3570_v46  ;;  %v9301_v57 = vpop.f32.mrb[43].mxu1 }
 0x462   :  { %10726 = vrcp.f32 %v3346_v38 }
 0x463   :  { %10728 = vtanh.f32 %v11461_v50  ;;  %v8192_v63 = vmul.f32 -1.442695, %v3641_v51 }
 0x465   :  { %10730 = vpow2.f32 %v8192_v63 }
 0x466   :  { %v10723_v1 = vpop.eup %10722  ;;  %10732 = vtanh.f32 %v3569_v0 }
 0x467   :  { %v10725_v52 = vpop.eup %10724  ;;  %v3645_v2 = vadd.f32 1.0, %v10723_v1 }
 0x468   :  { %v3651_v56 = vadd.f32 1.0, %v10725_v52 }
 0x469   :  { %10734 = vrcp.f32 %v3645_v2  ;;  %v4264_v2 = vld [vmem:[#allocation2 + $0x20] sm:$0xff] }
 0x46a   :  { %10736 = vrcp.f32 %v3651_v56 }
 0x46c   :  { %v10727_v3 = vpop.eup %10726 }
 0x46d   :  { %v10729_v5 = vpop.eup %10728 }
 0x46e   :  { %v3353_v6 = vmul.f32 %v10729_v5, %v10727_v3  ;;  %v4336_v3 = vld [vmem:[#allocation2 + $0x60] sm:$0xff] }
 0x46f   :  { %v10731_v7 = vpop.eup %10730 }
 0x470   :  { %9311 = vmatmul.mubr.msk.f32.vlgmr.msra.gmra.mrb[44].mxu0 %vm172_vm2, %v3353_v6  ;;  %9333 = vmatmul.mubr.msk.f32.vlgmr.msra.gmra.mrb[44].mxu1 %vm172_vm2, %v3353_v6  ;;  %v10733_v8 = vpop.eup %10732  ;;  %v3658_v15 = vadd.f32 1.0, %v10731_v7 }
 0x471   :  { %10188 = vmatpush3.bf16.msra.mxu0 %v11080_v53  ;;  %10200 = vmatpush3.bf16.msra.mxu1 %v11083_v55 }
 0x472   :  { %10189 = vmatprep.subr.bf16.mxu0 %v10923_v11  ;;  %10201 = vmatprep.subr.bf16.mxu1 %v10923_v11  ;;  %10738 = vrcp.f32 %v3658_v15 }
 0x473   :  { %9321 = vmatprep.mubr.msk.f32.mxu0 %vm10924_vm1, %v10925_v29  ;;  %9343 = vmatprep.mubr.msk.f32.mxu1 %vm10924_vm1, %v10925_v29  ;;  %v10735_v9 = vpop.eup %10734 }
 0x474   :  { %v10737_v10 = vpop.eup %10736  ;;  %v3662_v14 = vmul.f32 %v10735_v9, %v10733_v8 }
 0x475   :  { %10191 = vmatpush3.bf16.msra.mxu0 %v11090_v59  ;;  %10203 = vmatpush3.bf16.msra.mxu1 %v11094_v61  ;;  %v3661_v16 = vmul.f32 %v10737_v10, %v11383_v25 }
 0x476   :  { %10204 = vmatprep.subr.bf16.mxu0 %v10923_v11  ;;  %10216 = vmatprep.subr.bf16.mxu1 %v10923_v11 }
 0x477   :  { %v11479_v19 = vadd.f32 %v3662_v14, %v3661_v16 }
 0x479   :  { %10740 = vtanh.f32 %v11479_v19 }
 0x47c   :  { %v10739_v20 = vpop.eup %10738 }
 0x483   :  { %v10741_v26 = vpop.eup %10740 }
 0x484   :  { %v3665_v28 = vmul.f32 %v10741_v26, %v10739_v20 }
 0x486   :  { %9322 = vmatmul.mubr.msk.f32.vlgmr.msra.gmra.mrb[44].mxu0 %vm172_vm2, %v3665_v28  ;;  %9344 = vmatmul.mubr.msk.f32.vlgmr.msra.gmra.mrb[44].mxu1 %vm172_vm2, %v3665_v28 }
 0x487   :  { %10206 = vmatpush3.bf16.msra.mxu0 %v11149_v12  ;;  %10218 = vmatpush3.bf16.msra.mxu1 %v11151_v13 }
 0x488   :  { %10207 = vmatprep.subr.bf16.mxu0 %v10923_v11  ;;  %10219 = vmatprep.subr.bf16.mxu1 %v10923_v11 }
 0x489   :  { %9354 = vmatprep.mubr.msk.f32.mxu0 %vm10924_vm1, %v10925_v29  ;;  %9376 = vmatprep.mubr.msk.f32.mxu1 %vm10924_vm1, %v10925_v29 }
 0x48b   :  { %10209 = vmatpush3.bf16.msra.mxu0 %v11161_v21  ;;  %10221 = vmatpush3.bf16.msra.mxu1 %v11163_v22 }
 0x48c   :  { %10210 = vmatprep.subr.bf16.mxu0 %v10923_v11  ;;  %10222 = vmatprep.subr.bf16.mxu1 %v10923_v11 }
 0x48e   :  { %9355 = vmatmul.mubr.msk.f32.vlgmr.msra.gmra.mrb[46].mxu0 %vm172_vm2, %v3353_v6  ;;  %9377 = vmatmul.mubr.msk.f32.vlgmr.msra.gmra.mrb[46].mxu1 %vm172_vm2, %v3353_v6 }
 0x48f   :  { %10212 = vmatpush3.bf16.msra.mxu0 %v11173_v32  ;;  %10224 = vmatpush3.bf16.msra.mxu1 %v11175_v33 }
 0x490   :  { %10213 = vmatprep.subr.bf16.mxu0 %v10923_v11  ;;  %10225 = vmatprep.subr.bf16.mxu1 %v10923_v11 }
 0x491   :  { %9365 = vmatprep.mubr.msk.f32.mxu0 %vm10924_vm1, %v10925_v29  ;;  %9387 = vmatprep.mubr.msk.f32.mxu1 %vm10924_vm1, %v10925_v29 }
 0x493   :  { %10215 = vmatpush3.bf16.msra.mxu0 %v11183_v40  ;;  %10227 = vmatpush3.bf16.msra.mxu1 %v11185_v42 }
 0x494   :  { %10228 = vmatprep.subr.bf16.mxu0 %v10923_v11  ;;  %10234 = vmatprep.subr.bf16.mxu1 %v10923_v11 }
 0x496   :  { %9366 = vmatmul.mubr.msk.f32.vlgmr.msra.gmra.mrb[46].mxu0 %vm172_vm2, %v3665_v28  ;;  %9388 = vmatmul.mubr.msk.f32.vlgmr.msra.gmra.mrb[46].mxu1 %vm172_vm2, %v3665_v28 }
 0x497   :  { %10230 = vmatpush3.bf16.msra.mxu0 %v11002_v17  ;;  %10236 = vmatpush3.bf16.msra.mxu1 %v11004_v18 }
 0x498   :  { %10231 = vmatprep.subr.bf16.mxu0 %v10923_v11  ;;  %10237 = vmatprep.subr.bf16.mxu1 %v10923_v11 }
 0x499   :  { %9398 = vmatprep.mubr.msk.f32.mxu0 %vm10924_vm1, %v10925_v29  ;;  %9409 = vmatprep.mubr.msk.f32.mxu1 %vm10924_vm1, %v10925_v29 }
 0x49b   :  { %10233 = vmatpush3.bf16.msra.mxu0 %v11012_v23  ;;  %10239 = vmatpush3.bf16.msra.mxu1 %v11014_v24 }
 0x49c   :  { %10240 = vmatprep.subr.bf16.mxu0 %v10923_v11  ;;  %10246 = vmatprep.subr.bf16.mxu1 %v10923_v11 }
 0x49e   :  { %9399 = vmatmul.mubr.msk.f32.vlgmr.msra.gmra.mrb[48].mxu0 %vm172_vm2, %v3665_v28  ;;  %9410 = vmatmul.mubr.msk.f32.vlgmr.msra.gmra.mrb[48].mxu1 %vm172_vm2, %v3665_v28 }
 0x49f   :  { %10242 = vmatpush3.bf16.msra.mxu0 %v11036_v30  ;;  %10248 = vmatpush3.bf16.msra.mxu1 %v11038_v31 }
 0x4a0   :  { %10243 = vmatprep.subr.bf16.mxu0 %v10923_v11  ;;  %10249 = vmatprep.subr.bf16.mxu1 %v10923_v11 }
 0x4a1   :  { %9420 = vmatprep.mubr.msk.f32.mxu0 %vm10924_vm1, %v10925_v29  ;;  %9431 = vmatprep.mubr.msk.f32.mxu1 %vm10924_vm1, %v10925_v29 }
 0x4a3   :  { %10245 = vmatpush3.bf16.msra.mxu0 %v11044_v36  ;;  %10251 = vmatpush3.bf16.msra.mxu1 %v11046_v37 }
 0x4a4   :  { %10252 = vmatprep.subr.bf16.mxu0 %v10923_v11  ;;  %10264 = vmatprep.subr.bf16.mxu1 %v10923_v11 }
 0x4a6   :  { %9421 = vmatmul.mubr.msk.f32.vlgmr.msra.gmra.mrb[50].mxu0 %vm172_vm2, %v3665_v28  ;;  %9432 = vmatmul.mubr.msk.f32.vlgmr.msra.gmra.mrb[50].mxu1 %vm172_vm2, %v3665_v28 }
 0x4a7   :  { %10254 = vmatpush3.bf16.msra.mxu0 %v11064_v41  ;;  %10266 = vmatpush3.bf16.msra.mxu1 %v11066_v43 }
 0x4a8   :  { %10255 = vmatprep.subr.bf16.mxu0 %v10923_v11  ;;  %10267 = vmatprep.subr.bf16.mxu1 %v10923_v11 }
 0x4a9   :  { %9442 = vmatprep.mubr.msk.f32.mxu0 %vm10924_vm1, %v10925_v29  ;;  %9464 = vmatprep.mubr.msk.f32.mxu1 %vm10924_vm1, %v10925_v29 }
 0x4ab   :  { %10257 = vmatpush3.bf16.msra.mxu0 %v11072_v47  ;;  %10269 = vmatpush3.bf16.msra.mxu1 %v11074_v49 }
 0x4ac   :  { %10258 = vmatprep.subr.bf16.mxu0 %v10923_v11  ;;  %10270 = vmatprep.subr.bf16.mxu1 %v10923_v11 }
 0x559   :  { %v3809_v25 = vpop.f32.mrb[44].mxu0  ;;  %v3951_v34 = vpop.f32.mrb[44].mxu1 }
 0x55a   :  { %v10540_v27 = vadd.f32 %v11248_v44, %v3809_v25  ;;  %v10541_v35 = vadd.f32 %v11253_v45, %v3951_v34  ;;  %v9323_v4 = vpop.f32.mrb[45].mxu0  ;;  %v9345_v38 = vpop.f32.mrb[45].mxu1  ;;  %v4480_v34 = vld [vmem:[#allocation2 + $0xe0] sm:$0xff] }
 0x55c   :  { %v8201_v39 = vmul.f32 -1.442695, %v10540_v27  ;;  %v8202_v46 = vmul.f32 -1.442695, %v10541_v35 }
 0x55e   :  { %10742 = vpow2.f32 %v8201_v39 }
 0x55f   :  { %10744 = vpow2.f32 %v8202_v46  ;;  %v4408_v46 = vld [vmem:[#allocation2 + $0xa0] sm:$0xff] }
 0x568   :  { %v10743_v48 = vpop.eup %10742 }
 0x569   :  { %v10745_v51 = vpop.eup %10744  ;;  %v4243_v54 = vadd.f32 1.0, %v10743_v48  ;;  %v4093_v57 = vpop.f32.mrb[46].mxu0 }
 0x56a   :  { %v4235_v62 = vpop.f32.mrb[46].mxu1  ;;  %v4249_v63 = vadd.f32 1.0, %v10745_v51  ;;  %v10542_v0 = vadd.f32 %v11260_v58, %v4093_v57  ;;  %v9367_v52 = vpop.f32.mrb[47].mxu0 }
 0x56b   :  { %v10543_v1 = vadd.f32 %v11265_v60, %v4235_v62  ;;  %v9389_v44 = vpop.f32.mrb[47].mxu1  ;;  %10746 = vrcp.f32 %v4243_v54 }
 0x56c   :  { %10748 = vrcp.f32 %v4249_v63 }
 0x56d   :  { %v8203_v45 = vmul.f32 -1.442695, %v10543_v1  ;;  %10750 = vtanh.f32 %v10542_v0 }
 0x56f   :  { %10752 = vpow2.f32 %v8203_v45 }
 0x571   :  { %v4331_v56 = vpop.f32.mrb[48].mxu0  ;;  %v4403_v5 = vpop.f32.mrb[48].mxu1 }
 0x572   :  { %v4335_v6 = vadd.f32 %v4331_v56, %v4264_v2  ;;  %v4407_v7 = vadd.f32 %v4403_v5, %v4336_v3  ;;  %v9400_v8 = vpop.f32.mrb[49].mxu0  ;;  %v9411_v9 = vpop.f32.mrb[49].mxu1 }
 0x574   :  { %v8208_v10 = vmul.f32 -1.442695, %v4335_v6  ;;  %v8209_v14 = vmul.f32 -1.442695, %v4407_v7 }
 0x575   :  { %v10747_v58 = vpop.eup %10746 }
 0x576   :  { %v10749_v15 = vpop.eup %10748  ;;  %10754 = vpow2.f32 %v8208_v10 }
 0x577   :  { %v10751_v60 = vpop.eup %10750  ;;  %v4259_v16 = vmul.f32 %v10749_v15, %v11461_v50  ;;  %10756 = vpow2.f32 %v8209_v14  ;;  %v11651_v14 = vld [vmem:[%s11965_s2 + $0x4] ss:$0 sm:$0xff]  ;;  %v11657_v15 = vld [vmem:[%s11965_s2 + $0x5] ss:$0 sm:$0xff] }
 0x578   :  { %v4260_v26 = vmul.f32 %v10751_v60, %v10747_v58 }
 0x579   :  { %v10753_v20 = vpop.eup %10752  ;;  %v4475_v25 = vpop.f32.mrb[50].mxu0 }
 0x57a   :  { %v4256_v28 = vadd.f32 1.0, %v10753_v20  ;;  %v4547_v27 = vpop.f32.mrb[50].mxu1  ;;  %v11557_v35 = vadd.f32 %v4260_v26, %v4259_v16  ;;  %v9422_v38 = vpop.f32.mrb[51].mxu0  ;;  %v4479_v51 = vadd.f32 %v4475_v25, %v4408_v46  ;;  %v11663_v46 = vld [vmem:[%s11965_s2 + $0x6] ss:$0 sm:$0xff] }
 0x57b   :  { %v4551_v4 = vadd.f32 %v4547_v27, %v4480_v34  ;;  %v9433_v39 = vpop.f32.mrb[51].mxu1 }
 0x57c   :  { %10758 = vrcp.f32 %v4256_v28 }
 0x57d   :  { %10760 = vtanh.f32 %v11557_v35  ;;  %v8210_v48 = vmul.f32 -1.442695, %v4551_v4 }
 0x57f   :  { %10762 = vpow2.f32 %v8210_v48 }
 0x580   :  { %v10755_v54 = vpop.eup %10754  ;;  %10764 = vtanh.f32 %v4479_v51  ;;  %v11669_v51 = vld [vmem:[%s11965_s2 + $0x7] ss:$0 sm:$0xff] }
 0x581   :  { %v10757_v50 = vpop.eup %10756  ;;  %v4555_v57 = vadd.f32 1.0, %v10755_v54 }
 0x582   :  { %v4561_v62 = vadd.f32 1.0, %v10757_v50 }
 0x583   :  { %10766 = vrcp.f32 %v4555_v57 }
 0x584   :  { %10768 = vrcp.f32 %v4561_v62 }
 0x586   :  { %v10759_v63 = vpop.eup %10758 }
 0x587   :  { %v10761_v0 = vpop.eup %10760 }
 0x588   :  { %v4263_v1 = vmul.f32 %v10761_v0, %v10759_v63  ;;  %v5174_v63 = vld [vmem:[#allocation2 + $0x28] sm:$0xff] }
 0x589   :  { %v10763_v52 = vpop.eup %10762 }
 0x58a   :  { %9443 = vmatmul.mubr.msk.f32.vlgmr.msra.gmra.mrb[52].mxu0 %vm172_vm2, %v4263_v1  ;;  %9465 = vmatmul.mubr.msk.f32.vlgmr.msra.gmra.mrb[52].mxu1 %vm172_vm2, %v4263_v1  ;;  %v10765_v44 = vpop.eup %10764  ;;  %v4568_v3 = vadd.f32 1.0, %v10763_v52 }
 0x58b   :  { %10260 = vmatpush3.bf16.msra.mxu0 %v11080_v53  ;;  %10272 = vmatpush3.bf16.msra.mxu1 %v11083_v55 }
 0x58c   :  { %10261 = vmatprep.subr.bf16.mxu0 %v10923_v11  ;;  %10273 = vmatprep.subr.bf16.mxu1 %v10923_v11  ;;  %10770 = vrcp.f32 %v4568_v3 }
 0x58d   :  { %9453 = vmatprep.mubr.msk.f32.mxu0 %vm10924_vm1, %v10925_v29  ;;  %9475 = vmatprep.mubr.msk.f32.mxu1 %vm10924_vm1, %v10925_v29  ;;  %v10767_v45 = vpop.eup %10766 }
 0x58e   :  { %v10769_v2 = vpop.eup %10768  ;;  %v4572_v56 = vmul.f32 %v10767_v45, %v10765_v44 }
 0x58f   :  { %10263 = vmatpush3.bf16.msra.mxu0 %v11090_v59  ;;  %10275 = vmatpush3.bf16.msra.mxu1 %v11094_v61  ;;  %v4571_v5 = vmul.f32 %v10769_v2, %v11479_v19 }
 0x590   :  { %10276 = vmatprep.subr.bf16.mxu0 %v10923_v11  ;;  %10288 = vmatprep.subr.bf16.mxu1 %v10923_v11 }
 0x591   :  { %v11575_v6 = vadd.f32 %v4572_v56, %v4571_v5 }
 0x593   :  { %10772 = vtanh.f32 %v11575_v6 }
 0x596   :  { %v10771_v7 = vpop.eup %10770 }
 0x59d   :  { %v10773_v8 = vpop.eup %10772 }
 0x59e   :  { %v4575_v9 = vmul.f32 %v10773_v8, %v10771_v7 }
 0x5a0   :  { %9454 = vmatmul.mubr.msk.f32.vlgmr.msra.gmra.mrb[52].mxu0 %vm172_vm2, %v4575_v9  ;;  %9476 = vmatmul.mubr.msk.f32.vlgmr.msra.gmra.mrb[52].mxu1 %vm172_vm2, %v4575_v9 }
 0x5a1   :  { %10278 = vmatpush3.bf16.msra.mxu0 %v11149_v12  ;;  %10290 = vmatpush3.bf16.msra.mxu1 %v11151_v13 }
 0x5a2   :  { %10279 = vmatprep.subr.bf16.mxu0 %v10923_v11  ;;  %10291 = vmatprep.subr.bf16.mxu1 %v10923_v11 }
 0x5a3   :  { %9486 = vmatprep.mubr.msk.f32.mxu0 %vm10924_vm1, %v10925_v29  ;;  %9508 = vmatprep.mubr.msk.f32.mxu1 %vm10924_vm1, %v10925_v29 }
 0x5a5   :  { %10281 = vmatpush3.bf16.msra.mxu0 %v11161_v21  ;;  %10293 = vmatpush3.bf16.msra.mxu1 %v11163_v22 }
 0x5a6   :  { %10282 = vmatprep.subr.bf16.mxu0 %v10923_v11  ;;  %10294 = vmatprep.subr.bf16.mxu1 %v10923_v11 }
 0x5a8   :  { %9487 = vmatmul.mubr.msk.f32.vlgmr.msra.gmra.mrb[54].mxu0 %vm172_vm2, %v4263_v1  ;;  %9509 = vmatmul.mubr.msk.f32.vlgmr.msra.gmra.mrb[54].mxu1 %vm172_vm2, %v4263_v1  ;;  %v5246_v1 = vld [vmem:[#allocation2 + $0x68] sm:$0xff] }
 0x5a9   :  { %10284 = vmatpush3.bf16.msra.mxu0 %v11173_v32  ;;  %10296 = vmatpush3.bf16.msra.mxu1 %v11175_v33 }
 0x5aa   :  { %10285 = vmatprep.subr.bf16.mxu0 %v10923_v11  ;;  %10297 = vmatprep.subr.bf16.mxu1 %v10923_v11 }
 0x5ab   :  { %9497 = vmatprep.mubr.msk.f32.mxu0 %vm10924_vm1, %v10925_v29  ;;  %9519 = vmatprep.mubr.msk.f32.mxu1 %vm10924_vm1, %v10925_v29 }
 0x5ad   :  { %10287 = vmatpush3.bf16.msra.mxu0 %v11183_v40  ;;  %10299 = vmatpush3.bf16.msra.mxu1 %v11185_v42 }
 0x5ae   :  { %10300 = vmatprep.subr.bf16.mxu0 %v10923_v11  ;;  %10306 = vmatprep.subr.bf16.mxu1 %v10923_v11 }
 0x5b0   :  { %9498 = vmatmul.mubr.msk.f32.vlgmr.msra.gmra.mrb[54].mxu0 %vm172_vm2, %v4575_v9  ;;  %9520 = vmatmul.mubr.msk.f32.vlgmr.msra.gmra.mrb[54].mxu1 %vm172_vm2, %v4575_v9 }
 0x5b1   :  { %10302 = vmatpush3.bf16.msra.mxu0 %v11002_v17  ;;  %10308 = vmatpush3.bf16.msra.mxu1 %v11004_v18 }
 0x5b2   :  { %10303 = vmatprep.subr.bf16.mxu0 %v10923_v11  ;;  %10309 = vmatprep.subr.bf16.mxu1 %v10923_v11 }
 0x5b3   :  { %9530 = vmatprep.mubr.msk.f32.mxu0 %vm10924_vm1, %v10925_v29  ;;  %9541 = vmatprep.mubr.msk.f32.mxu1 %vm10924_vm1, %v10925_v29 }
 0x5b5   :  { %10305 = vmatpush3.bf16.msra.mxu0 %v11012_v23  ;;  %10311 = vmatpush3.bf16.msra.mxu1 %v11014_v24 }
 0x5b6   :  { %10312 = vmatprep.subr.bf16.mxu0 %v10923_v11  ;;  %10318 = vmatprep.subr.bf16.mxu1 %v10923_v11 }
 0x5b8   :  { %9531 = vmatmul.mubr.msk.f32.vlgmr.msra.gmra.mrb[56].mxu0 %vm172_vm2, %v4575_v9  ;;  %9542 = vmatmul.mubr.msk.f32.vlgmr.msra.gmra.mrb[56].mxu1 %vm172_vm2, %v4575_v9 }
 0x5b9   :  { %10314 = vmatpush3.bf16.msra.mxu0 %v11036_v30  ;;  %10320 = vmatpush3.bf16.msra.mxu1 %v11038_v31 }
 0x5ba   :  { %10315 = vmatprep.subr.bf16.mxu0 %v10923_v11  ;;  %10321 = vmatprep.subr.bf16.mxu1 %v10923_v11 }
 0x5bb   :  { %9552 = vmatprep.mubr.msk.f32.mxu0 %vm10924_vm1, %v10925_v29  ;;  %9563 = vmatprep.mubr.msk.f32.mxu1 %vm10924_vm1, %v10925_v29 }
 0x5bd   :  { %10317 = vmatpush3.bf16.msra.mxu0 %v11044_v36  ;;  %10323 = vmatpush3.bf16.msra.mxu1 %v11046_v37 }
 0x5be   :  { %10324 = vmatprep.subr.bf16.mxu0 %v10923_v11  ;;  %10336 = vmatprep.subr.bf16.mxu1 %v10923_v11 }
 0x5c0   :  { %9553 = vmatmul.mubr.msk.f32.vlgmr.msra.gmra.mrb[58].mxu0 %vm172_vm2, %v4575_v9  ;;  %9564 = vmatmul.mubr.msk.f32.vlgmr.msra.gmra.mrb[58].mxu1 %vm172_vm2, %v4575_v9 }
 0x5c1   :  { %10326 = vmatpush3.bf16.msra.mxu0 %v11064_v41  ;;  %10338 = vmatpush3.bf16.msra.mxu1 %v11066_v43 }
 0x5c2   :  { %10327 = vmatprep.subr.bf16.mxu0 %v10923_v11  ;;  %10339 = vmatprep.subr.bf16.mxu1 %v10923_v11 }
 0x5c3   :  { %9574 = vmatprep.mubr.msk.f32.mxu0 %vm10924_vm1, %v10925_v29  ;;  %9596 = vmatprep.mubr.msk.f32.mxu1 %vm10924_vm1, %v10925_v29 }
 0x5c5   :  { %10329 = vmatpush3.bf16.msra.mxu0 %v11072_v47  ;;  %10341 = vmatpush3.bf16.msra.mxu1 %v11074_v49 }
 0x5c6   :  { %10330 = vmatprep.subr.bf16.mxu0 %v10923_v11  ;;  %10342 = vmatprep.subr.bf16.mxu1 %v10923_v11 }
 0x673   :  { %v4719_v19 = vpop.f32.mrb[52].mxu0  ;;  %v4861_v10 = vpop.f32.mrb[52].mxu1 }
 0x674   :  { %v10544_v58 = vadd.f32 %v11651_v14, %v4719_v19  ;;  %v10545_v60 = vadd.f32 %v11657_v15, %v4861_v10  ;;  %v9455_v16 = vpop.f32.mrb[53].mxu0  ;;  %v9477_v20 = vpop.f32.mrb[53].mxu1 }
 0x675   :  { %v5390_v20 = vld [vmem:[#allocation2 + $0xe8] sm:$0xff] }
 0x676   :  { %v8219_v26 = vmul.f32 -1.442695, %v10544_v58  ;;  %v8220_v28 = vmul.f32 -1.442695, %v10545_v60 }
 0x678   :  { %10774 = vpow2.f32 %v8219_v26 }
 0x679   :  { %10776 = vpow2.f32 %v8220_v28 }
 0x682   :  { %v10775_v25 = vpop.eup %10774 }
 0x683   :  { %v10777_v34 = vpop.eup %10776  ;;  %v5153_v27 = vadd.f32 1.0, %v10775_v25  ;;  %v5003_v4 = vpop.f32.mrb[54].mxu0 }
 0x684   :  { %v5145_v38 = vpop.f32.mrb[54].mxu1  ;;  %v5159_v39 = vadd.f32 1.0, %v10777_v34  ;;  %v10546_v48 = vadd.f32 %v11663_v46, %v5003_v4  ;;  %v9499_v50 = vpop.f32.mrb[55].mxu0  ;;  %v5318_v4 = vld [vmem:[#allocation2 + $0xa8] sm:$0xff] }
 0x685   :  { %v10547_v54 = vadd.f32 %v11669_v51, %v5145_v38  ;;  %v9521_v57 = vpop.f32.mrb[55].mxu1  ;;  %10778 = vrcp.f32 %v5153_v27 }
 0x686   :  { %10780 = vrcp.f32 %v5159_v39 }
 0x687   :  { %v8221_v62 = vmul.f32 -1.442695, %v10547_v54  ;;  %10782 = vtanh.f32 %v10546_v48 }
 0x689   :  { %10784 = vpow2.f32 %v8221_v62 }
 0x68b   :  { %v5241_v0 = vpop.f32.mrb[56].mxu0  ;;  %v5313_v52 = vpop.f32.mrb[56].mxu1 }
 0x68c   :  { %v5245_v44 = vadd.f32 %v5241_v0, %v5174_v63  ;;  %v5317_v45 = vadd.f32 %v5313_v52, %v5246_v1  ;;  %v9532_v2 = vpop.f32.mrb[57].mxu0  ;;  %v9543_v56 = vpop.f32.mrb[57].mxu1 }
 0x68e   :  { %v8226_v3 = vmul.f32 -1.442695, %v5245_v44  ;;  %v8227_v5 = vmul.f32 -1.442695, %v5317_v45 }
 0x68f   :  { %v10779_v7 = vpop.eup %10778 }
 0x690   :  { %v10781_v8 = vpop.eup %10780  ;;  %10786 = vpow2.f32 %v8226_v3 }
 0x691   :  { %v10783_v9 = vpop.eup %10782  ;;  %v5169_v19 = vmul.f32 %v10781_v8, %v11557_v35  ;;  %10788 = vpow2.f32 %v8227_v5 }
 0x692   :  { %v5170_v58 = vmul.f32 %v10783_v9, %v10779_v7 }
 0x693   :  { %v10785_v10 = vpop.eup %10784  ;;  %v5385_v16 = vpop.f32.mrb[58].mxu0 }
 0x694   :  { %v5166_v60 = vadd.f32 1.0, %v10785_v10  ;;  %v5457_v26 = vpop.f32.mrb[58].mxu1  ;;  %v11673_v28 = vadd.f32 %v5170_v58, %v5169_v19  ;;  %v9554_v34 = vpop.f32.mrb[59].mxu0  ;;  %v5389_v39 = vadd.f32 %v5385_v16, %v5318_v4 }
 0x695   :  { %v5461_v25 = vadd.f32 %v5457_v26, %v5390_v20  ;;  %v9565_v27 = vpop.f32.mrb[59].mxu1 }
 0x696   :  { %10790 = vrcp.f32 %v5166_v60 }
 0x697   :  { %10792 = vtanh.f32 %v11673_v28  ;;  %v8228_v38 = vmul.f32 -1.442695, %v5461_v25 }
 0x699   :  { %10794 = vpow2.f32 %v8228_v38 }
 0x69a   :  { %v10787_v48 = vpop.eup %10786  ;;  %10796 = vtanh.f32 %v5389_v39 }
 0x69b   :  { %v10789_v35 = vpop.eup %10788  ;;  %v5465_v54 = vadd.f32 1.0, %v10787_v48 }
 0x69c   :  { %v5471_v50 = vadd.f32 1.0, %v10789_v35 }
 0x69d   :  { %10798 = vrcp.f32 %v5465_v54 }
 0x69e   :  { %10800 = vrcp.f32 %v5471_v50 }
 0x6a0   :  { %v10791_v57 = vpop.eup %10790 }
 0x6a1   :  { %v10793_v62 = vpop.eup %10792 }
 0x6a2   :  { %v5173_v63 = vmul.f32 %v10793_v62, %v10791_v57  ;;  %v6084_v57 = vld [vmem:[#allocation2 + $0x30] sm:$0xff] }
 0x6a3   :  { %v10795_v0 = vpop.eup %10794 }
 0x6a4   :  { %9575 = vmatmul.mubr.msk.f32.vlgmr.msra.gmra.mrb[60].mxu0 %vm172_vm2, %v5173_v63  ;;  %9597 = vmatmul.mubr.msk.f32.vlgmr.msra.gmra.mrb[60].mxu1 %vm172_vm2, %v5173_v63  ;;  %v10797_v1 = vpop.eup %10796  ;;  %v5478_v2 = vadd.f32 1.0, %v10795_v0 }
 0x6a5   :  { %10332 = vmatpush3.bf16.msra.mxu0 %v11080_v53  ;;  %10344 = vmatpush3.bf16.msra.mxu1 %v11083_v55 }
 0x6a6   :  { %10333 = vmatprep.subr.bf16.mxu0 %v10923_v11  ;;  %10345 = vmatprep.subr.bf16.mxu1 %v10923_v11  ;;  %10802 = vrcp.f32 %v5478_v2 }
 0x6a7   :  { %9585 = vmatprep.mubr.msk.f32.mxu0 %vm10924_vm1, %v10925_v29  ;;  %9607 = vmatprep.mubr.msk.f32.mxu1 %vm10924_vm1, %v10925_v29  ;;  %v10799_v52 = vpop.eup %10798 }
 0x6a8   :  { %v10801_v44 = vpop.eup %10800  ;;  %v5482_v45 = vmul.f32 %v10799_v52, %v10797_v1 }
 0x6a9   :  { %10335 = vmatpush3.bf16.msra.mxu0 %v11090_v59  ;;  %10347 = vmatpush3.bf16.msra.mxu1 %v11094_v61  ;;  %v5481_v56 = vmul.f32 %v10801_v44, %v11575_v6 }
 0x6aa   :  { %10348 = vmatprep.subr.bf16.mxu0 %v10923_v11  ;;  %10360 = vmatprep.subr.bf16.mxu1 %v10923_v11 }
 0x6ab   :  { %v11691_v3 = vadd.f32 %v5482_v45, %v5481_v56 }
 0x6ad   :  { %10804 = vtanh.f32 %v11691_v3 }
 0x6b0   :  { %v10803_v5 = vpop.eup %10802 }
 0x6b7   :  { %v10805_v7 = vpop.eup %10804 }
 0x6b8   :  { %v5485_v8 = vmul.f32 %v10805_v7, %v10803_v5 }
 0x6ba   :  { %9586 = vmatmul.mubr.msk.f32.vlgmr.msra.gmra.mrb[60].mxu0 %vm172_vm2, %v5485_v8  ;;  %9608 = vmatmul.mubr.msk.f32.vlgmr.msra.gmra.mrb[60].mxu1 %vm172_vm2, %v5485_v8 }
 0x6bb   :  { %10350 = vmatpush3.bf16.msra.mxu0 %v11149_v12  ;;  %10362 = vmatpush3.bf16.msra.mxu1 %v11151_v13 }
 0x6bc   :  { %10351 = vmatprep.subr.bf16.mxu0 %v10923_v11  ;;  %10363 = vmatprep.subr.bf16.mxu1 %v10923_v11 }
 0x6bd   :  { %9618 = vmatprep.mubr.msk.f32.mxu0 %vm10924_vm1, %v10925_v29  ;;  %9640 = vmatprep.mubr.msk.f32.mxu1 %vm10924_vm1, %v10925_v29 }
 0x6bf   :  { %10353 = vmatpush3.bf16.msra.mxu0 %v11161_v21  ;;  %10365 = vmatpush3.bf16.msra.mxu1 %v11163_v22 }
 0x6c0   :  { %10354 = vmatprep.subr.bf16.mxu0 %v10923_v11  ;;  %10366 = vmatprep.subr.bf16.mxu1 %v10923_v11 }
 0x6c2   :  { %9619 = vmatmul.mubr.msk.f32.vlgmr.msra.gmra.mrb[62].mxu0 %vm172_vm2, %v5173_v63  ;;  %9641 = vmatmul.mubr.msk.f32.vlgmr.msra.gmra.mrb[62].mxu1 %vm172_vm2, %v5173_v63  ;;  %v6156_v63 = vld [vmem:[#allocation2 + $0x70] sm:$0xff] }
 0x6c3   :  { %10356 = vmatpush3.bf16.msra.mxu0 %v11173_v32  ;;  %10368 = vmatpush3.bf16.msra.mxu1 %v11175_v33 }
 0x6c4   :  { %10357 = vmatprep.subr.bf16.mxu0 %v10923_v11  ;;  %10369 = vmatprep.subr.bf16.mxu1 %v10923_v11 }
 0x6c5   :  { %9629 = vmatprep.mubr.msk.f32.mxu0 %vm10924_vm1, %v10925_v29  ;;  %9651 = vmatprep.mubr.msk.f32.mxu1 %vm10924_vm1, %v10925_v29 }
 0x6c7   :  { %10359 = vmatpush3.bf16.msra.mxu0 %v11183_v40  ;;  %10371 = vmatpush3.bf16.msra.mxu1 %v11185_v42 }
 0x6c8   :  { %10372 = vmatprep.subr.bf16.mxu0 %v10923_v11  ;;  %10378 = vmatprep.subr.bf16.mxu1 %v10923_v11 }
 0x6ca   :  { %9630 = vmatmul.mubr.msk.f32.vlgmr.msra.gmra.mrb[62].mxu0 %vm172_vm2, %v5485_v8  ;;  %9652 = vmatmul.mubr.msk.f32.vlgmr.msra.gmra.mrb[62].mxu1 %vm172_vm2, %v5485_v8 }
 0x6cb   :  { %10374 = vmatpush3.bf16.msra.mxu0 %v11002_v17  ;;  %10380 = vmatpush3.bf16.msra.mxu1 %v11004_v18 }
 0x6cc   :  { %10375 = vmatprep.subr.bf16.mxu0 %v10923_v11  ;;  %10381 = vmatprep.subr.bf16.mxu1 %v10923_v11 }
 0x6cd   :  { %9662 = vmatprep.mubr.msk.f32.mxu0 %vm10924_vm1, %v10925_v29  ;;  %9673 = vmatprep.mubr.msk.f32.mxu1 %vm10924_vm1, %v10925_v29 }
 0x6cf   :  { %10377 = vmatpush3.bf16.msra.mxu0 %v11012_v23  ;;  %10383 = vmatpush3.bf16.msra.mxu1 %v11014_v24 }
 0x6d0   :  { %10384 = vmatprep.subr.bf16.mxu0 %v10923_v11  ;;  %10390 = vmatprep.subr.bf16.mxu1 %v10923_v11 }
 0x6d2   :  { %9663 = vmatmul.mubr.msk.f32.vlgmr.msra.gmra.mrb[64].mxu0 %vm172_vm2, %v5485_v8  ;;  %9674 = vmatmul.mubr.msk.f32.vlgmr.msra.gmra.mrb[64].mxu1 %vm172_vm2, %v5485_v8 }
 0x6d3   :  { %10386 = vmatpush3.bf16.msra.mxu0 %v11036_v30  ;;  %10392 = vmatpush3.bf16.msra.mxu1 %v11038_v31 }
 0x6d4   :  { %10387 = vmatprep.subr.bf16.mxu0 %v10923_v11  ;;  %10393 = vmatprep.subr.bf16.mxu1 %v10923_v11 }
 0x6d5   :  { %9684 = vmatprep.mubr.msk.f32.mxu0 %vm10924_vm1, %v10925_v29  ;;  %9695 = vmatprep.mubr.msk.f32.mxu1 %vm10924_vm1, %v10925_v29 }
 0x6d7   :  { %10389 = vmatpush3.bf16.msra.mxu0 %v11044_v36  ;;  %10395 = vmatpush3.bf16.msra.mxu1 %v11046_v37 }
 0x6d8   :  { %10396 = vmatprep.subr.bf16.mxu0 %v10923_v11  ;;  %10408 = vmatprep.subr.bf16.mxu1 %v10923_v11 }
 0x6da   :  { %9685 = vmatmul.mubr.msk.f32.vlgmr.msra.gmra.mrb[66].mxu0 %vm172_vm2, %v5485_v8  ;;  %9696 = vmatmul.mubr.msk.f32.vlgmr.msra.gmra.mrb[66].mxu1 %vm172_vm2, %v5485_v8 }
 0x6db   :  { %10398 = vmatpush3.bf16.msra.mxu0 %v11064_v41  ;;  %10410 = vmatpush3.bf16.msra.mxu1 %v11066_v43 }
 0x6dc   :  { %10399 = vmatprep.subr.bf16.mxu0 %v10923_v11  ;;  %10411 = vmatprep.subr.bf16.mxu1 %v10923_v11 }
 0x6dd   :  { %9706 = vmatprep.mubr.msk.f32.mxu0 %vm10924_vm1, %v10925_v29  ;;  %9728 = vmatprep.mubr.msk.f32.mxu1 %vm10924_vm1, %v10925_v29 }
 0x6df   :  { %10401 = vmatpush3.bf16.msra.mxu0 %v11072_v47  ;;  %10413 = vmatpush3.bf16.msra.mxu1 %v11074_v49 }
 0x6e0   :  { %10402 = vmatprep.subr.bf16.mxu0 %v10923_v11  ;;  %10414 = vmatprep.subr.bf16.mxu1 %v10923_v11 }
 0x78d   :  { %v5629_v6 = vpop.f32.mrb[60].mxu0  ;;  %v5771_v9 = vpop.f32.mrb[60].mxu1 }
 0x78e   :  { %v10548_v19 = vadd.f32 %v11651_v14, %v5629_v6  ;;  %v10549_v10 = vadd.f32 %v11657_v15, %v5771_v9  ;;  %v9587_v58 = vpop.f32.mrb[61].mxu0  ;;  %v9609_v60 = vpop.f32.mrb[61].mxu1 }
 0x78f   :  { %v6300_v60 = vld [vmem:[#allocation2 + $0xf0] sm:$0xff] }
 0x790   :  { %v8237_v16 = vmul.f32 -1.442695, %v10548_v19  ;;  %v8238_v20 = vmul.f32 -1.442695, %v10549_v10 }
 0x792   :  { %10806 = vpow2.f32 %v8237_v16 }
 0x793   :  { %10808 = vpow2.f32 %v8238_v20 }
 0x79c   :  { %v10807_v26 = vpop.eup %10806 }
 0x79d   :  { %v10809_v25 = vpop.eup %10808  ;;  %v6063_v34 = vadd.f32 1.0, %v10807_v26  ;;  %v5913_v27 = vpop.f32.mrb[62].mxu0 }
 0x79e   :  { %v6055_v4 = vpop.f32.mrb[62].mxu1  ;;  %v6069_v38 = vadd.f32 1.0, %v10809_v25  ;;  %v10550_v39 = vadd.f32 %v11663_v46, %v5913_v27  ;;  %v9631_v35 = vpop.f32.mrb[63].mxu0  ;;  %v6228_v27 = vld [vmem:[#allocation2 + $0xb0] sm:$0xff] }
 0x79f   :  { %v10551_v48 = vadd.f32 %v11669_v51, %v6055_v4  ;;  %v9653_v54 = vpop.f32.mrb[63].mxu1  ;;  %10810 = vrcp.f32 %v6063_v34 }
 0x7a0   :  { %10812 = vrcp.f32 %v6069_v38 }
 0x7a1   :  { %v8239_v50 = vmul.f32 -1.442695, %v10551_v48  ;;  %10814 = vtanh.f32 %v10550_v39 }
 0x7a3   :  { %10816 = vpow2.f32 %v8239_v50 }
 0x7a5   :  { %v6151_v62 = vpop.f32.mrb[64].mxu0  ;;  %v6223_v0 = vpop.f32.mrb[64].mxu1 }
 0x7a6   :  { %v6155_v1 = vadd.f32 %v6151_v62, %v6084_v57  ;;  %v6227_v52 = vadd.f32 %v6223_v0, %v6156_v63  ;;  %v9664_v44 = vpop.f32.mrb[65].mxu0  ;;  %v9675_v45 = vpop.f32.mrb[65].mxu1 }
 0x7a8   :  { %v8244_v2 = vmul.f32 -1.442695, %v6155_v1  ;;  %v8245_v56 = vmul.f32 -1.442695, %v6227_v52 }
 0x7a9   :  { %v10811_v5 = vpop.eup %10810 }
 0x7aa   :  { %v10813_v7 = vpop.eup %10812  ;;  %10818 = vpow2.f32 %v8244_v2 }
 0x7ab   :  { %v10815_v8 = vpop.eup %10814  ;;  %v6079_v6 = vmul.f32 %v10813_v7, %v11673_v28  ;;  %10820 = vpow2.f32 %v8245_v56 }
 0x7ac   :  { %v6080_v19 = vmul.f32 %v10815_v8, %v10811_v5 }
 0x7ad   :  { %v10817_v9 = vpop.eup %10816  ;;  %v6295_v58 = vpop.f32.mrb[66].mxu0 }
 0x7ae   :  { %v6076_v10 = vadd.f32 1.0, %v10817_v9  ;;  %v6367_v16 = vpop.f32.mrb[66].mxu1  ;;  %v11769_v20 = vadd.f32 %v6080_v19, %v6079_v6  ;;  %v9686_v25 = vpop.f32.mrb[67].mxu0  ;;  %v6299_v38 = vadd.f32 %v6295_v58, %v6228_v27 }
 0x7af   :  { %v6371_v26 = vadd.f32 %v6367_v16, %v6300_v60  ;;  %v9697_v34 = vpop.f32.mrb[67].mxu1  ;;  %v6994_v60 = vld [vmem:[#allocation2 + $0x38] sm:$0xff] }
 0x7b0   :  { %10822 = vrcp.f32 %v6076_v10 }
 0x7b1   :  { %10824 = vtanh.f32 %v11769_v20  ;;  %v8246_v4 = vmul.f32 -1.442695, %v6371_v26  ;;  %v7066_v26 = vld [vmem:[#allocation2 + $0x78] sm:$0xff] }
 0x7b3   :  { %10826 = vpow2.f32 %v8246_v4 }
 0x7b4   :  { %v10819_v39 = vpop.eup %10818  ;;  %10828 = vtanh.f32 %v6299_v38 }
 0x7b5   :  { %v10821_v28 = vpop.eup %10820  ;;  %v6375_v48 = vadd.f32 1.0, %v10819_v39 }
 0x7b6   :  { %v6381_v35 = vadd.f32 1.0, %v10821_v28 }
 0x7b7   :  { %10830 = vrcp.f32 %v6375_v48 }
 0x7b8   :  { %10832 = vrcp.f32 %v6381_v35 }
 0x7ba   :  { %v10823_v54 = vpop.eup %10822 }
 0x7bb   :  { %v10825_v50 = vpop.eup %10824 }
 0x7bc   :  { %v6083_v57 = vmul.f32 %v10825_v50, %v10823_v54 }
 0x7bd   :  { %v10827_v62 = vpop.eup %10826 }
 0x7be   :  { %9707 = vmatmul.mubr.msk.f32.vlgmr.msra.gmra.mrb[68].mxu0 %vm172_vm2, %v6083_v57  ;;  %9729 = vmatmul.mubr.msk.f32.vlgmr.msra.gmra.mrb[68].mxu1 %vm172_vm2, %v6083_v57  ;;  %v10829_v63 = vpop.eup %10828  ;;  %v6388_v44 = vadd.f32 1.0, %v10827_v62 }
 0x7bf   :  { %10404 = vmatpush3.bf16.msra.mxu0 %v11080_v53  ;;  %10416 = vmatpush3.bf16.msra.mxu1 %v11083_v55 }
 0x7c0   :  { %10405 = vmatprep.subr.bf16.mxu0 %v10923_v11  ;;  %10417 = vmatprep.subr.bf16.mxu1 %v10923_v11  ;;  %10834 = vrcp.f32 %v6388_v44 }
 0x7c1   :  { %9717 = vmatprep.mubr.msk.f32.mxu0 %vm10924_vm1, %v10925_v29  ;;  %9739 = vmatprep.mubr.msk.f32.mxu1 %vm10924_vm1, %v10925_v29  ;;  %v10831_v0 = vpop.eup %10830 }
 0x7c2   :  { %v10833_v1 = vpop.eup %10832  ;;  %v6392_v52 = vmul.f32 %v10831_v0, %v10829_v63 }
 0x7c3   :  { %10407 = vmatpush3.bf16.msra.mxu0 %v11090_v59  ;;  %10419 = vmatpush3.bf16.msra.mxu1 %v11094_v61  ;;  %v6391_v45 = vmul.f32 %v10833_v1, %v11691_v3  ;;  %v7210_v1 = vld [vmem:[#allocation2 + $0xf8] sm:$0xff] }
 0x7c4   :  { %10420 = vmatprep.subr.bf16.mxu0 %v10923_v11  ;;  %10432 = vmatprep.subr.bf16.mxu1 %v10923_v11 }
 0x7c5   :  { %v11787_v2 = vadd.f32 %v6392_v52, %v6391_v45 }
 0x7c7   :  { %10836 = vtanh.f32 %v11787_v2 }
 0x7ca   :  { %v10835_v56 = vpop.eup %10834 }
 0x7d1   :  { %v10837_v5 = vpop.eup %10836 }
 0x7d2   :  { %v6395_v7 = vmul.f32 %v10837_v5, %v10835_v56 }
 0x7d4   :  { %9718 = vmatmul.mubr.msk.f32.vlgmr.msra.gmra.mrb[68].mxu0 %vm172_vm2, %v6395_v7  ;;  %9740 = vmatmul.mubr.msk.f32.vlgmr.msra.gmra.mrb[68].mxu1 %vm172_vm2, %v6395_v7 }
 0x7d5   :  { %10422 = vmatpush3.bf16.msra.mxu0 %v11149_v12  ;;  %10434 = vmatpush3.bf16.msra.mxu1 %v11151_v13 }
 0x7d6   :  { %10423 = vmatprep.subr.bf16.mxu0 %v10923_v11  ;;  %10435 = vmatprep.subr.bf16.mxu1 %v10923_v11 }
 0x7d7   :  { %9750 = vmatprep.mubr.msk.f32.mxu0 %vm10924_vm1, %v10925_v29  ;;  %9772 = vmatprep.mubr.msk.f32.mxu1 %vm10924_vm1, %v10925_v29 }
 0x7d9   :  { %10425 = vmatpush3.bf16.msra.mxu0 %v11161_v21  ;;  %10437 = vmatpush3.bf16.msra.mxu1 %v11163_v22 }
 0x7da   :  { %10426 = vmatprep.subr.bf16.mxu0 %v10923_v11  ;;  %10438 = vmatprep.subr.bf16.mxu1 %v10923_v11 }
 0x7dc   :  { %9751 = vmatmul.mubr.msk.f32.vlgmr.msra.gmra.mrb[70].mxu0 %vm172_vm2, %v6083_v57  ;;  %9773 = vmatmul.mubr.msk.f32.vlgmr.msra.gmra.mrb[70].mxu1 %vm172_vm2, %v6083_v57 }
 0x7dd   :  { %10428 = vmatpush3.bf16.msra.mxu0 %v11173_v32  ;;  %10440 = vmatpush3.bf16.msra.mxu1 %v11175_v33 }
 0x7de   :  { %10429 = vmatprep.subr.bf16.mxu0 %v10923_v11  ;;  %10441 = vmatprep.subr.bf16.mxu1 %v10923_v11 }
 0x7df   :  { %9761 = vmatprep.mubr.msk.f32.mxu0 %vm10924_vm1, %v10925_v29  ;;  %9783 = vmatprep.mubr.msk.f32.mxu1 %vm10924_vm1, %v10925_v29 }
 0x7e1   :  { %10431 = vmatpush3.bf16.msra.mxu0 %v11183_v40  ;;  %10443 = vmatpush3.bf16.msra.mxu1 %v11185_v42 }
 0x7e2   :  { %10444 = vmatprep.subr.bf16.mxu0 %v10923_v11  ;;  %10450 = vmatprep.subr.bf16.mxu1 %v10923_v11 }
 0x7e4   :  { %9762 = vmatmul.mubr.msk.f32.vlgmr.msra.gmra.mrb[70].mxu0 %vm172_vm2, %v6395_v7  ;;  %9784 = vmatmul.mubr.msk.f32.vlgmr.msra.gmra.mrb[70].mxu1 %vm172_vm2, %v6395_v7 }
 0x7e5   :  { %10446 = vmatpush3.bf16.msra.mxu0 %v11002_v17  ;;  %10452 = vmatpush3.bf16.msra.mxu1 %v11004_v18 }
 0x7e6   :  { %10447 = vmatprep.subr.bf16.mxu0 %v10923_v11  ;;  %10453 = vmatprep.subr.bf16.mxu1 %v10923_v11 }
 0x7e7   :  { %9794 = vmatprep.mubr.msk.f32.mxu0 %vm10924_vm1, %v10925_v29  ;;  %9805 = vmatprep.mubr.msk.f32.mxu1 %vm10924_vm1, %v10925_v29 }
 0x7e9   :  { %10449 = vmatpush3.bf16.msra.mxu0 %v11012_v23  ;;  %10455 = vmatpush3.bf16.msra.mxu1 %v11014_v24 }
 0x7ea   :  { %10456 = vmatprep.subr.bf16.mxu0 %v10923_v11  ;;  %10462 = vmatprep.subr.bf16.mxu1 %v10923_v11 }
 0x7ec   :  { %9795 = vmatmul.mubr.msk.f32.vlgmr.msra.gmra.mrb[72].mxu0 %vm172_vm2, %v6395_v7  ;;  %9806 = vmatmul.mubr.msk.f32.vlgmr.msra.gmra.mrb[72].mxu1 %vm172_vm2, %v6395_v7 }
 0x7ed   :  { %10458 = vmatpush3.bf16.msra.mxu0 %v11036_v30  ;;  %10464 = vmatpush3.bf16.msra.mxu1 %v11038_v31 }
 0x7ee   :  { %10459 = vmatprep.subr.bf16.mxu0 %v10923_v11  ;;  %10465 = vmatprep.subr.bf16.mxu1 %v10923_v11 }
 0x7ef   :  { %9816 = vmatprep.mubr.msk.f32.mxu0 %vm10924_vm1, %v10925_v29  ;;  %9827 = vmatprep.mubr.msk.f32.mxu1 %vm10924_vm1, %v10925_v29 }
 0x7f1   :  { %10461 = vmatpush3.bf16.msra.mxu0 %v11044_v36  ;;  %10467 = vmatpush3.bf16.msra.mxu1 %v11046_v37 }
 0x7f2   :  { %10468 = vmatprep.subr.bf16.mxu0 %v10923_v11  ;;  %10480 = vmatprep.subr.bf16.mxu1 %v10923_v11 }
 0x7f4   :  { %9817 = vmatmul.mubr.msk.f32.vlgmr.msra.gmra.mrb[74].mxu0 %vm172_vm2, %v6395_v7  ;;  %9828 = vmatmul.mubr.msk.f32.vlgmr.msra.gmra.mrb[74].mxu1 %vm172_vm2, %v6395_v7  ;;  %v7138_v7 = vld [vmem:[#allocation2 + $0xb8] sm:$0xff] }
 0x7f5   :  { %10470 = vmatpush3.bf16.msra.mxu0 %v11064_v41  ;;  %10482 = vmatpush3.bf16.msra.mxu1 %v11066_v43 }
 0x7f6   :  { %10471 = vmatprep.subr.bf16.mxu0 %v10923_v11  ;;  %10483 = vmatprep.subr.bf16.mxu1 %v10923_v11 }
 0x7f7   :  { %9838 = vmatprep.mubr.msk.f32.mxu0 %vm10924_vm1, %v10925_v29  ;;  %9860 = vmatprep.mubr.msk.f32.mxu1 %vm10924_vm1, %v10925_v29 }
 0x7f9   :  { %10473 = vmatpush3.bf16.msra.mxu0 %v11072_v47  ;;  %10485 = vmatpush3.bf16.msra.mxu1 %v11074_v49 }
 0x7fa   :  { %10474 = vmatprep.subr.bf16.mxu0 %v10923_v11  ;;  %10486 = vmatprep.subr.bf16.mxu1 %v10923_v11 }
 0x8a7   :  { %v6539_v17 = vpop.f32.mrb[68].mxu0  ;;  %v6681_v18 = vpop.f32.mrb[68].mxu1 }
 0x8a8   :  { %v10552_v23 = vadd.f32 %v11651_v14, %v6539_v17  ;;  %v10553_v24 = vadd.f32 %v11657_v15, %v6681_v18  ;;  %v9719_v30 = vpop.f32.mrb[69].mxu0  ;;  %v9741_v31 = vpop.f32.mrb[69].mxu1 }
 0x8aa   :  { %v8255_v36 = vmul.f32 -1.442695, %v10552_v23  ;;  %v8256_v37 = vmul.f32 -1.442695, %v10553_v24 }
 0x8ac   :  { %10838 = vpow2.f32 %v8255_v36 }
 0x8ad   :  { %10840 = vpow2.f32 %v8256_v37 }
 0x8b6   :  { %v10839_v41 = vpop.eup %10838 }
 0x8b7   :  { %v10841_v43 = vpop.eup %10840  ;;  %v6973_v47 = vadd.f32 1.0, %v10839_v41  ;;  %v6823_v49 = vpop.f32.mrb[70].mxu0 }
 0x8b8   :  { %v6965_v3 = vpop.f32.mrb[70].mxu1  ;;  %v6979_v8 = vadd.f32 1.0, %v10841_v43  ;;  %v10554_v6 = vadd.f32 %v11663_v46, %v6823_v49  ;;  %v9763_v19 = vpop.f32.mrb[71].mxu0 }
 0x8b9   :  { %v10555_v9 = vadd.f32 %v11669_v51, %v6965_v3  ;;  %v9785_v10 = vpop.f32.mrb[71].mxu1  ;;  %10842 = vrcp.f32 %v6973_v47 }
 0x8ba   :  { %10844 = vrcp.f32 %v6979_v8 }
 0x8bb   :  { %v8257_v58 = vmul.f32 -1.442695, %v10555_v9  ;;  %10846 = vtanh.f32 %v10554_v6 }
 0x8bd   :  { %10848 = vpow2.f32 %v8257_v58 }
 0x8bf   :  { %v7061_v16 = vpop.f32.mrb[72].mxu0  ;;  %v7133_v25 = vpop.f32.mrb[72].mxu1 }
 0x8c0   :  { %v7065_v34 = vadd.f32 %v7061_v16, %v6994_v60  ;;  %v7137_v27 = vadd.f32 %v7133_v25, %v7066_v26  ;;  %v9796_v4 = vpop.f32.mrb[73].mxu0  ;;  %v9807_v38 = vpop.f32.mrb[73].mxu1 }
 0x8c2   :  { %v8262_v39 = vmul.f32 -1.442695, %v7065_v34  ;;  %v8263_v28 = vmul.f32 -1.442695, %v7137_v27 }
 0x8c3   :  { %v10843_v48 = vpop.eup %10842 }
 0x8c4   :  { %v10845_v35 = vpop.eup %10844  ;;  %10850 = vpow2.f32 %v8262_v39 }
 0x8c5   :  { %v10847_v54 = vpop.eup %10846  ;;  %v6989_v50 = vmul.f32 %v10845_v35, %v11769_v20  ;;  %10852 = vpow2.f32 %v8263_v28 }
 0x8c6   :  { %v6990_v62 = vmul.f32 %v10847_v54, %v10843_v48 }
 0x8c7   :  { %v10849_v57 = vpop.eup %10848  ;;  %v7205_v0 = vpop.f32.mrb[74].mxu0 }
 0x8c8   :  { %v6986_v63 = vadd.f32 1.0, %v10849_v57  ;;  %v7277_v52 = vpop.f32.mrb[74].mxu1  ;;  %v11865_v44 = vadd.f32 %v6990_v62, %v6989_v50  ;;  %v9818_v56 = vpop.f32.mrb[75].mxu0  ;;  %v7209_v18 = vadd.f32 %v7205_v0, %v7138_v7 }
 0x8c9   :  { %v7281_v45 = vadd.f32 %v7277_v52, %v7210_v1  ;;  %v9829_v5 = vpop.f32.mrb[75].mxu1  ;;  %v7913_v56 = vld [vmem:[%s11965_s2 + $0x48] sm:$0xff] }
 0x8ca   :  { %10854 = vrcp.f32 %v6986_v63  ;;  %v8276_v5 = vld [vmem:[%s11965_s2 + $0x28] ss:$0 sm:$0xff] }
 0x8cb   :  { %10856 = vtanh.f32 %v11865_v44  ;;  %v8264_v17 = vmul.f32 -1.442695, %v7281_v45  ;;  %v7912_v45 = vld [vmem:[%s11965_s2 + $0x40] sm:$0xff] }
 0x8cd   :  { %10858 = vpow2.f32 %v8264_v17 }
 0x8ce   :  { %v10851_v23 = vpop.eup %10850  ;;  %10860 = vtanh.f32 %v7209_v18 }
 0x8cf   :  { %v10853_v20 = vpop.eup %10852  ;;  %v7285_v24 = vadd.f32 1.0, %v10851_v23 }
 0x8d0   :  { %v7291_v30 = vadd.f32 1.0, %v10853_v20  ;;  %v8278_v20 = vld [vmem:[%s11965_s2 + $0x29] ss:$0 sm:$0xff] }
 0x8d1   :  { %10862 = vrcp.f32 %v7285_v24 }
 0x8d2   :  { %10864 = vrcp.f32 %v7291_v30 }
 0x8d4   :  { %v10855_v31 = vpop.eup %10854 }
 0x8d5   :  { %v10857_v36 = vpop.eup %10856 }
 0x8d6   :  { %v6993_v37 = vmul.f32 %v10857_v36, %v10855_v31 }
 0x8d7   :  { %v10859_v41 = vpop.eup %10858 }
 0x8d8   :  { %9839 = vmatmul.mubr.msk.f32.vlgmr.msra.gmra.mrb[76].mxu0 %vm172_vm2, %v6993_v37  ;;  %9861 = vmatmul.mubr.msk.f32.vlgmr.msra.gmra.mrb[76].mxu1 %vm172_vm2, %v6993_v37  ;;  %v10861_v43 = vpop.eup %10860  ;;  %v7298_v8 = vadd.f32 1.0, %v10859_v41 }
 0x8d9   :  { %10476 = vmatpush3.bf16.msra.mxu0 %v11080_v53  ;;  %10488 = vmatpush3.bf16.msra.mxu1 %v11083_v55 }
 0x8da   :  { %10477 = vmatprep.subr.bf16.mxu0 %v10923_v11  ;;  %10489 = vmatprep.subr.bf16.mxu1 %v10923_v11  ;;  %10866 = vrcp.f32 %v7298_v8 }
 0x8db   :  { %9849 = vmatprep.mubr.msk.f32.mxu0 %vm10924_vm1, %v10925_v29  ;;  %9871 = vmatprep.mubr.msk.f32.mxu1 %vm10924_vm1, %v10925_v29  ;;  %v10863_v47 = vpop.eup %10862 }
 0x8dc   :  { %v10865_v49 = vpop.eup %10864  ;;  %v7302_v3 = vmul.f32 %v10863_v47, %v10861_v43 }
 0x8dd   :  { %10479 = vmatpush3.bf16.msra.mxu0 %v11090_v59  ;;  %10491 = vmatpush3.bf16.msra.mxu1 %v11094_v61  ;;  %v7301_v53 = vmul.f32 %v10865_v49, %v11787_v2  ;;  %v7904_v59 = vld [vmem:[%s11965_s2 + $0x8] sm:$0xff]  ;;  %v7905_v61 = vld [vmem:[%s11965_s2 + $0x10] sm:$0xff] }
 0x8de   :  { %10492 = vmatprep.subr.bf16.mxu0 %v10923_v11  ;;  %10504 = vmatprep.subr.bf16.mxu1 %v10923_v11 }
 0x8df   :  { %v7303_v55 = vadd.f32 %v7302_v3, %v7301_v53 }
 0x8e1   :  { %10868 = vtanh.f32 %v7303_v55 }
 0x8e4   :  { %v10867_v6 = vpop.eup %10866 }
 0x8eb   :  { %v10869_v9 = vpop.eup %10868 }
 0x8ec   :  { %v7305_v19 = vmul.f32 %v10869_v9, %v10867_v6 }
 0x8ee   :  { %9850 = vmatmul.mubr.msk.f32.vlgmr.msra.gmra.mrb[76].mxu0 %vm172_vm2, %v7305_v19  ;;  %9872 = vmatmul.mubr.msk.f32.vlgmr.msra.gmra.mrb[76].mxu1 %vm172_vm2, %v7305_v19 }
 0x8ef   :  { %10494 = vmatpush3.bf16.msra.mxu0 %v11149_v12  ;;  %10506 = vmatpush3.bf16.msra.mxu1 %v11151_v13  ;;  %v7906_v12 = vld [vmem:[%s11965_s2 + $0x18] sm:$0xff]  ;;  %v10517_v13 = vpack.c.bf16 %v7905_v61, %v7904_v59 }
 0x8f0   :  { %10495 = vmatprep.subr.bf16.mxu0 %v10923_v11  ;;  %10507 = vmatprep.subr.bf16.mxu1 %v10923_v11 }
 0x8f1   :  { %9882 = vmatprep.mubr.msk.f32.mxu0 %vm10924_vm1, %v10925_v29  ;;  %9904 = vmatprep.mubr.msk.f32.mxu1 %vm10924_vm1, %v10925_v29 }
 0x8f3   :  { %10497 = vmatpush3.bf16.msra.mxu0 %v11161_v21  ;;  %10509 = vmatpush3.bf16.msra.mxu1 %v11163_v22  ;;  %v7907_v21 = vld [vmem:[%s11965_s2 + $0x20] sm:$0xff] }
 0x8f4   :  { %10498 = vmatprep.subr.bf16.mxu0 %v10923_v11  ;;  %10510 = vmatprep.subr.bf16.mxu1 %v10923_v11  ;;  %v10520_v22 = vpack.c.bf16 %v7907_v21, %v7906_v12 }
 0x8f6   :  { %9883 = vmatmul.mubr.msk.f32.vlgmr.msra.gmra.mrb[78].mxu0 %vm172_vm2, %v6993_v37  ;;  %9905 = vmatmul.mubr.msk.f32.vlgmr.msra.gmra.mrb[78].mxu1 %vm172_vm2, %v6993_v37 }
 0x8f7   :  { %10500 = vmatpush3.bf16.msra.mxu0 %v11173_v32  ;;  %10512 = vmatpush3.bf16.msra.mxu1 %v11175_v33  ;;  %v7911_v32 = vld [vmem:[%s11965_s2 + $0x38] sm:$0xff] }
 0x8f8   :  { %10501 = vmatprep.subr.bf16.mxu0 %v10923_v11  ;;  %10513 = vmatprep.subr.bf16.mxu1 %v10923_v11 }
 0x8f9   :  { %9893 = vmatprep.mubr.msk.f32.mxu0 %vm10924_vm1, %v10925_v29  ;;  %9915 = vmatprep.mubr.msk.f32.mxu1 %vm10924_vm1, %v10925_v29 }
 0x8fb   :  { %10503 = vmatpush3.bf16.msra.mxu0 %v11183_v40  ;;  %10515 = vmatpush3.bf16.msra.mxu1 %v11185_v42 }
 0x8fc   :  { %10516 = vmatprep.subr.bf16.mxu0 %v10923_v11  ;;  %10522 = vmatprep.subr.bf16.mxu1 %v10923_v11 }
 0x8fe   :  { %9894 = vmatmul.mubr.msk.f32.vlgmr.msra.gmra.mrb[78].mxu0 %vm172_vm2, %v7305_v19  ;;  %9916 = vmatmul.mubr.msk.f32.vlgmr.msra.gmra.mrb[78].mxu1 %vm172_vm2, %v7305_v19 }
 0x8ff   :  { %9926 = vmatprep.mubr.msk.f32.mxu0 %vm10924_vm1, %v10925_v29  ;;  %9937 = vmatprep.mubr.msk.f32.mxu1 %vm10924_vm1, %v10925_v29  ;;  %v7910_v29 = vld [vmem:[%s11965_s2 + $0x30] sm:$0xff] }
 0x900   :  { %10518 = vmatpush3.bf16.msra.mxu0 %v10517_v13  ;;  %v10523_v33 = vpack.c.bf16 %v7911_v32, %v7910_v29 }
 0x901   :  { %10519 = vmatprep.subr.bf16.mxu0 %v10923_v11 }
 0x902   :  { %10524 = vmatpush3.bf16.msra.mxu1 %v10523_v33 }
 0x903   :  { %10525 = vmatprep.subr.bf16.mxu1 %v10923_v11 }
 0x904   :  { %10521 = vmatpush3.bf16.msra.mxu0 %v10520_v22 }
 0x9c1   :  { %v7449_v40 = vpop.f32.mrb[76].mxu0  ;;  %v7591_v42 = vpop.f32.mrb[76].mxu1 }
 0x9c2   :  { %v10556_v2 = vadd.f32 %v11651_v14, %v7449_v40  ;;  %v10557_v10 = vadd.f32 %v11657_v15, %v7591_v42  ;;  %v9851_v58 = vpop.f32.mrb[77].mxu0  ;;  %v9873_v60 = vpop.f32.mrb[77].mxu1 }
 0x9c4   :  { %v8273_v16 = vmul.f32 -1.442695, %v10556_v2  ;;  %v8274_v26 = vmul.f32 -1.442695, %v10557_v10 }
 0x9c6   :  { %10870 = vpow2.f32 %v8273_v16 }
 0x9c7   :  { %10872 = vpow2.f32 %v8274_v26 }
 0x9d0   :  { %v10871_v25 = vpop.eup %10870 }
 0x9d1   :  { %v10873_v34 = vpop.eup %10872  ;;  %v7883_v27 = vadd.f32 1.0, %v10871_v25  ;;  %v7733_v4 = vpop.f32.mrb[78].mxu0 }
 0x9d2   :  { %v7875_v38 = vpop.f32.mrb[78].mxu1  ;;  %v7889_v39 = vadd.f32 1.0, %v10873_v34  ;;  %v10558_v11 = vadd.f32 %v11663_v46, %v7733_v4  ;;  %v9895_v48 = vpop.f32.mrb[79].mxu0 }
 0x9d3   :  { %v10559_v28 = vadd.f32 %v11669_v51, %v7875_v38  ;;  %v9917_v14 = vpop.f32.mrb[79].mxu1  ;;  %10874 = vrcp.f32 %v7883_v27 }
 0x9d4   :  { %10876 = vrcp.f32 %v7889_v39 }
 0x9d5   :  { %v8275_v15 = vmul.f32 -1.442695, %v10559_v28  ;;  %10878 = vtanh.f32 %v10558_v11 }
 0x9d7   :  { %10880 = vpow2.f32 %v8275_v15 }
 0x9dd   :  { %v10875_v35 = vpop.eup %10874 }
 0x9de   :  { %v10877_v54 = vpop.eup %10876 }
 0x9df   :  { %v10879_v50 = vpop.eup %10878  ;;  %v7899_v57 = vmul.f32 %v10877_v54, %v11865_v44  ;;  %v10526_v44 = vpack.c.bf16 %v7913_v56, %v7912_v45 }
 0x9e0   :  { %v7900_v63 = vmul.f32 %v10879_v50, %v10875_v35 }
 0x9e1   :  { %v10881_v62 = vpop.eup %10880  ;;  %10527 = vmatpush3.bf16.msra.mxu1 %v10526_v44 }
 0x9e2   :  { %v7896_v0 = vadd.f32 1.0, %v10881_v62  ;;  %v7901_v1 = vadd.f32 %v7900_v63, %v7899_v57 }
 0x9e4   :  { %10882 = vrcp.f32 %v7896_v0 }
 0x9e5   :  { %10884 = vtanh.f32 %v7901_v1 }
 0x9ee   :  { %v10883_v46 = vpop.eup %10882 }
 0x9ef   :  { %v10885_v51 = vpop.eup %10884 }
 0x9f0   :  { %v7903_v52 = vmul.f32 %v10885_v51, %v10883_v46 }
 0x9f2   :  { %9927 = vmatmul.mubr.msk.f32.vlgmr.msra.gmra.mrb[80].mxu0 %vm172_vm2, %v7903_v52 }
 0xac5   :  { %v7987_v7 = vpop.f32.mrb[80].mxu0 }
 0xac6   :  { %v7988_v17 = vadd.f32 %v8276_v5, %v7987_v7  ;;  %v9928_v18 = vpop.f32.mrb[81].mxu0 }
 0xac8   :  { %v7991_v23 = vmax.f32 %v7988_v17, 0.0 }
 0xaca   :  { %9938 = vmatmul.mubr.msk.f32.vlgmr.msra.gmra.mrb[80].mxu1 %vm172_vm2, %v7991_v23 }
 0xb9d   :  { %v8065_v24 = vpop.f32.mrb[80].mxu1 }
 0xb9e   :  { %v8066_v30 = vadd.f32 %v8278_v20, %v8065_v24  ;;  %v9939_v31 = vpop.f32.mrb[81].mxu1 }
 0xba0   :  { %v8070_v36 = vsel %vm8069_vm3, %v8066_v30, -inf }
 0xba1   :  { %8071 = vmax.xlane.f32.xlu0 %v8070_v36 }
 0xc2e   :  { %v8072_v37 = vpop.xlane.xlu0 %8071 }
 0xc2f   :  { %v8073_v41 = vsub.f32 %v8066_v30, %v8072_v37 }
 0xc31   :  { %v8074_v43 = vmul.f32 1.442695, %v8073_v41 }
 0xc33   :  { %10886 = vpow2.f32 %v8074_v43 }
 0xc3d   :  { %v10887_v47 = vpop.eup %10886 }
 0xc3e   :  { %v8076_v49 = vsel %vm8069_vm3, %v10887_v47, 0.0 }
 0xc3f   :  { %8077 = vadd.xlane.f32.xlu0 %v8076_v49 }
 0xccc   :  { %v8078_v3 = vpop.xlane.xlu0 %8077 }
 0xccd   :  { %10888 = vrcp.f32 %v8078_v3 }
 0xcd7   :  { %v10889_v8 = vpop.eup %10888 }
 0xcd8   :  { %v8080_v53 = vmul.f32 %v10889_v8, %v8078_v3 }
 0xcda   :  { %v8081_v55 = vsub.f32 2.0, %v8080_v53 }
 0xcdc   :  { %v8082_v6 = vmul.f32 %v10889_v8, %v8081_v55 }
 0xcde   :  { %v8083_v9 = vmul.f32 %v10887_v47, %v8082_v6 }
 0xce0   :  { %v8084_v19 = vmax.f32 %v8083_v9, 0.05 }
 0xce2   :  { %v8085_v59 = vmin.f32 %v8084_v19, 0.4 }
 0xce4   :  { %v8086_v61 = vsel %vm8069_vm3, %v8085_v59, 0.0 }
 0xce5   :  { %8087 = vadd.xlane.f32.xlu1 %v8086_v61 }
 0xd72   :  { %v8088_v12 = vpop.xlane.xlu1 %8087 }
 0xd73   :  { %10890 = vrcp.f32 %v8088_v12 }
 0xd7d   :  { %v10891_v13 = vpop.eup %10890 }
 0xd7e   :  { %v8090_v21 = vmul.f32 %v10891_v13, %v8088_v12 }
 0xd80   :  { %v8091_v22 = vsub.f32 2.0, %v8090_v21 }
 0xd82   :  { %v8092_v29 = vmul.f32 %v10891_v13, %v8091_v22 }
 0xd84   :  { %v8093_v32 = vmul.f32 %v8092_v29, %v8085_v59 }
 0xd86   :  { %8094 = vst.msk [vmem:[%s11966_s3] sm:$0xff] %vm8069_vm3, %v8093_v32 }
 0xd87   :  { %8099 = vsyncpa [#allocation4], 1 }

</bundles_post_ra>
